<compile_context>
chip_gen: v7x
topology: tpu7x:2x2x1
jax: 0.10.0
libtpu: 0.0.40
codegen_flags: <defaults>
</compile_context>

<pallas_src>
import functools
import math

import jax
import jax.numpy as jnp
from jax.experimental import pallas as pl
from jax.experimental.pallas import tpu as pltpu


# --------------------------- tiling helpers ---------------------------------

# Tile caps (f32/bf16 friendly, MXU aligned).
_TM_CAP = 256     # rows per block (sublane dim, multiple of 8)
_TN_CAP = 256     # output cols per block (lane dim, multiple of 128)
_TK_CAP = 512     # contraction per block (lane/sublane dim, multiple of 128)
_LN_TM_CAP = 512  # rows per block for the add+LN kernel


def _pick_tile(dim, cap, align):
    """Largest block size <= cap that divides `dim` and is a multiple of `align`.
    Falls back to the full dimension (block == array dim is always legal)."""
    if dim <= cap:
        return dim
    t = (cap // align) * align
    while t >= align:
        if dim % t == 0:
            return t
        t -= align
    return dim


# ----------------------------- Pallas kernels -------------------------------

def _apply_activation(y, activation):
    if activation == "gelu":
        # TODO(synk): tanh-approx GELU; exact HF 'gelu' is erf-based (~1e-3 delta).
        y = 0.5 * y * (1.0 + jnp.tanh(0.7978845608028654 * (y + 0.044715 * y * y * y)))
    elif activation == "tanh":
        y = jnp.tanh(y)
    return y


def _matmul_kernel(*refs, activation, has_residual):
    # refs: x, w, b, [residual], out, acc
    if has_residual:
        x_ref, w_ref, b_ref, r_ref, o_ref, acc_ref = refs
    else:
        x_ref, w_ref, b_ref, o_ref, acc_ref = refs
        r_ref = None

    k = pl.program_id(2)

    @pl.when(k == 0)
    def _():
        acc_ref[...] = jnp.zeros_like(acc_ref)

    acc_ref[...] += jnp.dot(x_ref[...], w_ref[...],
                            preferred_element_type=jnp.float32)

    @pl.when(k == pl.num_programs(2) - 1)
    def _():
        y = acc_ref[...] + b_ref[...].astype(jnp.float32)
        if r_ref is not None:
            y = y + r_ref[...].astype(jnp.float32)
        y = _apply_activation(y, activation)
        o_ref[...] = y.astype(o_ref.dtype)


def _matmul_add_ln_kernel(x_ref, w_ref, b_ref, r_ref, g_ref, bt_ref,
                          o_ref, acc_ref, *, eps):
    # Fused: (x @ W + b + residual) -> LayerNorm(gamma, beta).
    k = pl.program_id(1)

    @pl.when(k == 0)
    def _():
        acc_ref[...] = jnp.zeros_like(acc_ref)

    acc_ref[...] += jnp.dot(x_ref[...], w_ref[...],
                            preferred_element_type=jnp.float32)

    @pl.when(k == pl.num_programs(1) - 1)
    def _():
        y = acc_ref[...] + b_ref[...].astype(jnp.float32) + r_ref[...].astype(jnp.float32)
        mu = jnp.mean(y, axis=-1, keepdims=True)
        var = jnp.mean((y - mu) ** 2, axis=-1, keepdims=True)
        y = (y - mu) * jax.lax.rsqrt(var + eps)
        y = y * g_ref[...].astype(jnp.float32) + bt_ref[...].astype(jnp.float32)
        o_ref[...] = y.astype(o_ref.dtype)


def _add_ln_kernel(x_ref, r_ref, g_ref, b_ref, o_ref, *, eps):
    x = x_ref[...].astype(jnp.float32) + r_ref[...].astype(jnp.float32)
    mu = jnp.mean(x, axis=-1, keepdims=True)
    var = jnp.mean((x - mu) ** 2, axis=-1, keepdims=True)
    y = (x - mu) * jax.lax.rsqrt(var + eps)
    y = y * g_ref[...].astype(jnp.float32) + b_ref[...].astype(jnp.float32)
    o_ref[...] = y.astype(o_ref.dtype)


def _qkv_attn_kernel(x_ref, w_ref, b_ref, m_ref, o_ref, acc_ref, *,
                     num_heads, head_dim, scale):
    # One batch per grid step on axis 0; QKV projection accumulated over the
    # hidden (K) grid axis 1; on the final K step the multi-head attention
    # epilogue runs and the merged context is written lane-dense.
    A = num_heads * head_dim
    k = pl.program_id(1)

    @pl.when(k == 0)
    def _():
        acc_ref[...] = jnp.zeros_like(acc_ref)

    acc_ref[...] += jnp.dot(x_ref[0], w_ref[...],
                            preferred_element_type=jnp.float32)

    @pl.when(k == pl.num_programs(1) - 1)
    def _():
        qkv = (acc_ref[...] + b_ref[...].astype(jnp.float32)).astype(o_ref.dtype)
        mask = m_ref[0].astype(jnp.float32)           # (1, S) additive mask
        # TODO(synk): full (S, S) scores per head in VMEM; no flash-style S tiling.
        for h in range(num_heads):
            q = qkv[:, h * head_dim:(h + 1) * head_dim]
            kk = qkv[:, A + h * head_dim:A + (h + 1) * head_dim]
            v = qkv[:, 2 * A + h * head_dim:2 * A + (h + 1) * head_dim]
            s = jax.lax.dot_general(q, kk, (((1,), (1,)), ((), ())),
                                    preferred_element_type=jnp.float32)
            s = s * scale + mask
            s = s - jnp.max(s, axis=-1, keepdims=True)
            p = jnp.exp(s)
            denom = jnp.sum(p, axis=-1, keepdims=True)
            p = p * pl.reciprocal(denom, approx=True)     # EUP, frees the VPU divide
            ctx = jnp.dot(p.astype(qkv.dtype), v, preferred_element_type=jnp.float32)
            o_ref[0, :, h * head_dim:(h + 1) * head_dim] = ctx.astype(o_ref.dtype)


# ----------------------------- Pallas wrappers -------------------------------

def pallas_linear(x, w, b, activation=None, residual=None):
    """y = act(x @ w + b [+ residual]) with a tiled (M, N, K) grid and f32 accumulator."""
    M, K = x.shape
    N = w.shape[1]
    tm = _pick_tile(M, _TM_CAP, 8)
    tn = _pick_tile(N, _TN_CAP, 128)
    tk = _pick_tile(K, _TK_CAP, 128)
    grid = (M // tm, N // tn, K // tk)

    in_specs = [
        pl.BlockSpec((tm, tk), lambda i, j, k: (i, k)),
        pl.BlockSpec((tk, tn), lambda i, j, k: (k, j)),
        pl.BlockSpec((1, tn), lambda i, j, k: (0, j)),
    ]
    args = [x, w, b.reshape(1, N)]
    has_residual = residual is not None
    if has_residual:
        in_specs.append(pl.BlockSpec((tm, tn), lambda i, j, k: (i, j)))
        args.append(residual)

    return pl.pallas_call(
        functools.partial(_matmul_kernel, activation=activation,
                          has_residual=has_residual),
        grid=grid,
        out_shape=jax.ShapeDtypeStruct((M, N), x.dtype),
        in_specs=in_specs,
        out_specs=pl.BlockSpec((tm, tn), lambda i, j, k: (i, j)),
        scratch_shapes=[pltpu.VMEM((tm, tn), jnp.float32)],
        compiler_params=pltpu.CompilerParams(
            dimension_semantics=("parallel", "parallel", "arbitrary")),
    )(*args)


def pallas_linear_add_ln(x, w, b, residual, gamma, beta, eps=1e-12):
    """LayerNorm(x @ w + b + residual) fused in one kernel (N kept whole)."""
    M, K = x.shape
    N = w.shape[1]
    tm = _pick_tile(M, _TM_CAP, 8)
    tk = _pick_tile(K, _TK_CAP, 128)
    grid = (M // tm, K // tk)

    return pl.pallas_call(
        functools.partial(_matmul_add_ln_kernel, eps=eps),
        grid=grid,
        out_shape=jax.ShapeDtypeStruct((M, N), x.dtype),
        in_specs=[
            pl.BlockSpec((tm, tk), lambda i, k: (i, k)),
            pl.BlockSpec((tk, N), lambda i, k: (k, 0)),
            pl.BlockSpec((1, N), lambda i, k: (0, 0)),
            pl.BlockSpec((tm, N), lambda i, k: (i, 0)),
            pl.BlockSpec((1, N), lambda i, k: (0, 0)),
            pl.BlockSpec((1, N), lambda i, k: (0, 0)),
        ],
        out_specs=pl.BlockSpec((tm, N), lambda i, k: (i, 0)),
        scratch_shapes=[pltpu.VMEM((tm, N), jnp.float32)],
        compiler_params=pltpu.CompilerParams(
            dimension_semantics=("parallel", "arbitrary")),
    )(x, w, b.reshape(1, N), residual, gamma.reshape(1, N), beta.reshape(1, N))


def pallas_add_ln(x, r, gamma, beta, eps=1e-12):
    """LayerNorm(x + r), M-tiled."""
    M, N = x.shape
    tm = _pick_tile(M, _LN_TM_CAP, 8)
    grid = (M // tm,)
    return pl.pallas_call(
        functools.partial(_add_ln_kernel, eps=eps),
        grid=grid,
        out_shape=jax.ShapeDtypeStruct((M, N), x.dtype),
        in_specs=[pl.BlockSpec((tm, N), lambda i: (i, 0)),
                  pl.BlockSpec((tm, N), lambda i: (i, 0)),
                  pl.BlockSpec((1, N), lambda i: (0, 0)),
                  pl.BlockSpec((1, N), lambda i: (0, 0))],
        out_specs=pl.BlockSpec((tm, N), lambda i: (i, 0)),
        compiler_params=pltpu.CompilerParams(dimension_semantics=("parallel",)),
    )(x, r, gamma.reshape(1, N), beta.reshape(1, N))


def pallas_qkv_attention(x, wqkv, bqkv, mask, num_heads, head_dim, scale):
    """Fused QKV projection + multi-head attention.

    x: (B, S, H); wqkv: (H, 3*A); bqkv: (3*A,); mask: (B, 1, S) additive.
    Returns merged context (B, S, A) with A = num_heads*head_dim, lane-dense."""
    B, S, H = x.shape
    threeA = wqkv.shape[1]
    A = threeA // 3
    tk = _pick_tile(H, _TK_CAP, 128)
    grid = (B, H // tk)

    return pl.pallas_call(
        functools.partial(_qkv_attn_kernel, num_heads=num_heads,
                          head_dim=head_dim, scale=scale),
        grid=grid,
        out_shape=jax.ShapeDtypeStruct((B, S, A), x.dtype),
        in_specs=[pl.BlockSpec((1, S, tk), lambda b, k: (b, 0, k)),
                  pl.BlockSpec((tk, threeA), lambda b, k: (k, 0)),
                  pl.BlockSpec((1, threeA), lambda b, k: (0, 0)),
                  pl.BlockSpec((1, 1, S), lambda b, k: (b, 0, 0))],
        out_specs=pl.BlockSpec((1, S, A), lambda b, k: (b, 0, 0)),
        scratch_shapes=[pltpu.VMEM((S, threeA), jnp.float32)],
        compiler_params=pltpu.CompilerParams(
            dimension_semantics=("parallel", "arbitrary")),
    )(x, wqkv, bqkv.reshape(1, threeA), mask)


# ----------------------------- model (glue in JAX) ---------------------------

def bert_layer(x, ext_mask, p, num_heads):
    """BertLayer: fused(QKV proj + self-attn) -> fused(proj+add+LN) -> GELU MLP
    -> fused(proj+add+LN)."""
    B, S, H = x.shape
    A = p["Wqkv"].shape[1] // 3
    hd = A // num_heads
    xf = x.reshape(B * S, H)

    # Fused QKV projection + attention: x read once, qkv never round-trips HBM.
    ctx = pallas_qkv_attention(x, p["Wqkv"], p["bqkv"], ext_mask,
                               num_heads, hd, 1.0 / math.sqrt(hd))
    ctx = ctx.reshape(B * S, A)

    # Attention output projection fused with residual add + LayerNorm.
    h1 = pallas_linear_add_ln(ctx, p["Wao"], p["bao"], xf, p["ln1_g"], p["ln1_b"])

    # MLP: GELU intermediate, then output projection fused with residual add + LayerNorm.
    inter = pallas_linear(h1, p["Wi"], p["bi"], activation="gelu")
    h2 = pallas_linear_add_ln(inter, p["Wo"], p["bo"], h1, p["ln2_g"], p["ln2_b"])
    return h2.reshape(B, S, H)


def side_pp_bert_forward(params, cfg, input_ids, hidden_state=None,
                         hidden_state_side=None, token_type_ids=None,
                         attention_mask=None):
    B, S = input_ids.shape
    H = cfg["hidden_size"]
    Hs = H // cfg["side_reduction_factor"]
    nh = cfg["num_attention_heads"]

    if attention_mask is None:
        attention_mask = jnp.ones_like(input_ids)
    if token_type_ids is None:
        token_type_ids = jnp.zeros_like(input_ids)

    # extended attention mask: additive, 0 keep / -1e4 drop; kept as (B, 1, S)
    ext = (1.0 - attention_mask.astype(jnp.float32))[:, None, :] * -10000.0

    if cfg["is_first_stage"]:
        # embeddings: word + position + token_type -> LayerNorm (dropout = identity)
        we = jnp.take(params["word_emb"], input_ids, axis=0)            # (B,S,H)
        pe = jnp.take(params["pos_emb"], jnp.arange(S), axis=0)[None]   # (1,S,H)
        te = jnp.take(params["type_emb"], token_type_ids, axis=0)       # (B,S,H)
        emb = we + pe
        hidden = pallas_add_ln(emb.reshape(B * S, H), te.reshape(B * S, H),
                               params["emb_ln_g"], params["emb_ln_b"]).reshape(B, S, H)
        side = pallas_linear(hidden.reshape(B * S, H),
                             params["first_down_W"], params["first_down_b"]).reshape(B, S, Hs)
    else:
        hidden, side = hidden_state, hidden_state_side
    assert hidden is not None and side is not None

    # encoder: main layer -> (side residual + downsample fused) -> side layer
    for lp in params["layers"]:
        hidden = bert_layer(hidden, ext, lp["main"], nh)
        side = pallas_linear(hidden.reshape(B * S, H), lp["down_W"], lp["down_b"],
                             residual=side.reshape(B * S, Hs)).reshape(B, S, Hs)
        side = bert_layer(side, ext, lp["side"], nh)

    if cfg["is_last_stage"]:
        # Only pooled_output is returned and BertPooler reads token 0 only, so
        # compute upsample + residual add + pooler for the first token rows only.
        seq0 = pallas_linear(side[:, 0, :], params["final_up_W"], params["final_up_b"],
                             residual=hidden[:, 0, :])                  # (B, H)
        pooled = pallas_linear(seq0, params["pool_W"], params["pool_b"],
                               activation="tanh")
        return pooled
    return hidden, side


# ----------------------------- parameter init --------------------------------

def _dense(key, fan_in, fan_out, dtype):
    w = (jax.random.normal(key, (fan_in, fan_out), jnp.float32) * 0.02).astype(dtype)
    b = jnp.zeros((fan_out,), dtype)
    return w, b


def _ln(n, dtype):
    return jnp.ones((n,), dtype), jnp.zeros((n,), dtype)


def _bert_layer_params(key, hidden, inter, dtype):
    ks = jax.random.split(key, 4)
    p = {}
    # fused QKV weight: [H, 3*H]
    p["Wqkv"], p["bqkv"] = _dense(ks[0], hidden, 3 * hidden, dtype)
    p["Wao"], p["bao"] = _dense(ks[1], hidden, hidden, dtype)
    p["ln1_g"], p["ln1_b"] = _ln(hidden, dtype)
    p["Wi"], p["bi"] = _dense(ks[2], hidden, inter, dtype)
    p["Wo"], p["bo"] = _dense(ks[3], inter, hidden, dtype)
    p["ln2_g"], p["ln2_b"] = _ln(hidden, dtype)
    return p


def make_params(key, cfg, dtype=jnp.bfloat16):
    H = cfg["hidden_size"]
    I = cfg["intermediate_size"]
    r = cfg["side_reduction_factor"]
    Hs, Is = H // r, I // r
    L = cfg["num_pp_hidden_layers"]

    keys = jax.random.split(key, 8 + 3 * L)
    params = {}
    params["word_emb"] = (jax.random.normal(keys[0], (cfg["vocab_size"], H), jnp.float32) * 0.02).astype(dtype)
    params["pos_emb"] = (jax.random.normal(keys[1], (cfg["max_position_embeddings"], H), jnp.float32) * 0.02).astype(dtype)
    params["type_emb"] = (jax.random.normal(keys[2], (cfg["type_vocab_size"], H), jnp.float32) * 0.02).astype(dtype)
    params["emb_ln_g"], params["emb_ln_b"] = _ln(H, dtype)
    params["first_down_W"], params["first_down_b"] = _dense(keys[3], H, Hs, dtype)
    params["final_up_W"], params["final_up_b"] = _dense(keys[4], Hs, H, dtype)
    params["pool_W"], params["pool_b"] = _dense(keys[5], H, H, dtype)

    layers = []
    for i in range(L):
        layers.append({
            "main": _bert_layer_params(keys[8 + 3 * i], H, I, dtype),
            "side": _bert_layer_params(keys[9 + 3 * i], Hs, Is, dtype),
            "down_W": _dense(keys[10 + 3 * i], H, Hs, dtype)[0],
            "down_b": jnp.zeros((Hs,), dtype),
        })
    params["layers"] = layers
    return params


# ----------------------------- main -------------------------------------------

if __name__ == "__main__":
    cfg = dict(
        hidden_size=32,
        intermediate_size=64,
        num_attention_heads=4,
        num_pp_hidden_layers=2,
        side_reduction_factor=2,
        vocab_size=64,
        max_position_embeddings=32,
        type_vocab_size=2,
        is_first_stage=True,
        is_last_stage=True,
    )

    key = jax.random.PRNGKey(0)
    k_param, k_ids = jax.random.split(key)
    params = make_params(k_param, cfg, dtype=jnp.bfloat16)

    B, S = 2, 8
    input_ids = jax.random.randint(k_ids, (B, S), 0, cfg["vocab_size"], dtype=jnp.int32)

    fwd = jax.jit(lambda prm, ids: side_pp_bert_forward(prm, cfg, ids))
    pooled = fwd(params, input_ids)
    pooled = jax.block_until_ready(pooled)
    assert pooled.shape == (B, cfg["hidden_size"])
    assert jnp.all(jnp.isfinite(pooled.astype(jnp.float32)))
    print("KERNEL_OK")
</pallas_src>

<mosaic_0001>
module attributes {stable_mosaic.version = 11 : i64} {
  func.func @_add_ln_kernel(%arg0: i32, %arg1: memref<16x32xbf16, #tpu.memory_space<vmem>>, %arg2: memref<16x32xbf16, #tpu.memory_space<vmem>>, %arg3: memref<1x32xbf16, #tpu.memory_space<vmem>>, %arg4: memref<1x32xbf16, #tpu.memory_space<vmem>>, %arg5: memref<16x32xbf16, #tpu.memory_space<vmem>>) attributes {dimension_semantics = [#tpu.dimension_semantics<parallel>], iteration_bounds = array<i64: 1>, scalar_prefetch = 0 : i64, scratch_operands = 0 : i64, tpu.core_type = #tpu.core_type<tc>, window_params = [{transform_indices = @transform_0, window_bounds = array<i64: 16, 32>}, {transform_indices = @transform_1, window_bounds = array<i64: 16, 32>}, {pipeline_mode = #tpu.pipeline_mode<synchronous>, transform_indices = @transform_2, window_bounds = array<i64: 1, 32>}, {pipeline_mode = #tpu.pipeline_mode<synchronous>, transform_indices = @transform_3, window_bounds = array<i64: 1, 32>}, {transform_indices = @transform_4, window_bounds = array<i64: 16, 32>}]} {
    %c0 = arith.constant 0 : index
    %c0_0 = arith.constant 0 : index
    %0 = vector.load %arg1[%c0, %c0_0] : memref<16x32xbf16, #tpu.memory_space<vmem>>, vector<16x32xbf16>
    %1 = arith.extf %0 : vector<16x32xbf16> to vector<16x32xf32>
    %c0_1 = arith.constant 0 : index
    %c0_2 = arith.constant 0 : index
    %2 = vector.load %arg2[%c0_1, %c0_2] : memref<16x32xbf16, #tpu.memory_space<vmem>>, vector<16x32xbf16>
    %3 = arith.extf %2 : vector<16x32xbf16> to vector<16x32xf32>
    %4 = arith.addf %1, %3 : vector<16x32xf32>
    %cst = arith.constant dense<0.000000e+00> : vector<16xf32>
    %5 = vector.multi_reduction <add>, %4, %cst [1] : vector<16x32xf32> to vector<16xf32>
    %6 = vector.shape_cast %5 : vector<16xf32> to vector<16x1xf32>
    %cst_3 = arith.constant 3.200000e+01 : f32
    %7 = vector.broadcast %cst_3 : f32 to vector<16x1xf32>
    %8 = arith.divf %6, %7 : vector<16x1xf32>
    %9 = vector.broadcast %8 : vector<16x1xf32> to vector<16x32xf32>
    %10 = arith.subf %4, %9 : vector<16x32xf32>
    %11 = arith.mulf %10, %10 : vector<16x32xf32>
    %cst_4 = arith.constant dense<0.000000e+00> : vector<16xf32>
    %12 = vector.multi_reduction <add>, %11, %cst_4 [1] : vector<16x32xf32> to vector<16xf32>
    %13 = vector.shape_cast %12 : vector<16xf32> to vector<16x1xf32>
    %cst_5 = arith.constant 3.200000e+01 : f32
    %14 = vector.broadcast %cst_5 : f32 to vector<16x1xf32>
    %15 = arith.divf %13, %14 : vector<16x1xf32>
    %16 = vector.broadcast %8 : vector<16x1xf32> to vector<16x32xf32>
    %17 = arith.subf %4, %16 : vector<16x32xf32>
    %cst_6 = arith.constant 9.99999996E-13 : f32
    %18 = vector.broadcast %cst_6 : f32 to vector<16x1xf32>
    %19 = arith.addf %15, %18 : vector<16x1xf32>
    %20 = math.rsqrt %19 : vector<16x1xf32>
    %21 = vector.broadcast %20 : vector<16x1xf32> to vector<16x32xf32>
    %22 = arith.mulf %17, %21 : vector<16x32xf32>
    %c0_7 = arith.constant 0 : index
    %c0_8 = arith.constant 0 : index
    %23 = vector.load %arg3[%c0_7, %c0_8] : memref<1x32xbf16, #tpu.memory_space<vmem>>, vector<1x32xbf16>
    %24 = arith.extf %23 : vector<1x32xbf16> to vector<1x32xf32>
    %25 = vector.broadcast %24 : vector<1x32xf32> to vector<16x32xf32>
    %26 = arith.mulf %22, %25 : vector<16x32xf32>
    %c0_9 = arith.constant 0 : index
    %c0_10 = arith.constant 0 : index
    %27 = vector.load %arg4[%c0_9, %c0_10] : memref<1x32xbf16, #tpu.memory_space<vmem>>, vector<1x32xbf16>
    %28 = arith.extf %27 : vector<1x32xbf16> to vector<1x32xf32>
    %29 = vector.broadcast %28 : vector<1x32xf32> to vector<16x32xf32>
    %30 = arith.addf %26, %29 : vector<16x32xf32>
    %31 = arith.truncf %30 : vector<16x32xf32> to vector<16x32xbf16>
    %c0_11 = arith.constant 0 : index
    %c0_12 = arith.constant 0 : index
    %32 = vector.load %arg5[%c0_11, %c0_12] : memref<16x32xbf16, #tpu.memory_space<vmem>>, vector<16x32xbf16>
    tpu.vector_store %arg5[%c0_11, %c0_12], %31 {strides = array<i32>} : memref<16x32xbf16, #tpu.memory_space<vmem>>, vector<16x32xbf16>,
    return
  }
  func.func @transform_0(%arg0: i32) -> (i32, i32) {
    %c0_i32 = arith.constant 0 : i32
    %c0_i32_0 = arith.constant 0 : i32
    return %arg0, %c0_i32 : i32, i32
  }
  func.func @transform_1(%arg0: i32) -> (i32, i32) {
    %c0_i32 = arith.constant 0 : i32
    %c0_i32_0 = arith.constant 0 : i32
    return %arg0, %c0_i32 : i32, i32
  }
  func.func @transform_2(%arg0: i32) -> (i32, i32) {
    %c0_i32 = arith.constant 0 : i32
    %c0_i32_0 = arith.constant 0 : i32
    %c0_i32_1 = arith.constant 0 : i32
    return %c0_i32, %c0_i32_0 : i32, i32
  }
  func.func @transform_3(%arg0: i32) -> (i32, i32) {
    %c0_i32 = arith.constant 0 : i32
    %c0_i32_0 = arith.constant 0 : i32
    %c0_i32_1 = arith.constant 0 : i32
    return %c0_i32, %c0_i32_0 : i32, i32
  }
  func.func @transform_4(%arg0: i32) -> (i32, i32) {
    %c0_i32 = arith.constant 0 : i32
    %c0_i32_0 = arith.constant 0 : i32
    return %arg0, %c0_i32 : i32, i32
  }
}

module attributes {stable_mosaic.version = 11 : i64} {
  func.func @_qkv_attn_kernel(%arg0: i32, %arg1: i32, %arg2: memref<1x8x32xbf16, #tpu.memory_space<vmem>>, %arg3: memref<32x96xbf16, #tpu.memory_space<vmem>>, %arg4: memref<1x96xbf16, #tpu.memory_space<vmem>>, %arg5: memref<1x1x8xf32, #tpu.memory_space<vmem>>, %arg6: memref<1x8x32xbf16, #tpu.memory_space<vmem>>, %arg7: memref<8x96xf32, #tpu.memory_space<vmem>>) attributes {dimension_semantics = [#tpu.dimension_semantics<parallel>, #tpu.dimension_semantics<arbitrary>], iteration_bounds = array<i64: 2, 1>, scalar_prefetch = 0 : i64, scratch_operands = 1 : i64, tpu.core_type = #tpu.core_type<tc>, window_params = [{transform_indices = @transform_0, window_bounds = array<i64: 1, 8, 32>}, {transform_indices = @transform_1, window_bounds = array<i64: 32, 96>}, {pipeline_mode = #tpu.pipeline_mode<synchronous>, transform_indices = @transform_2, window_bounds = array<i64: 1, 96>}, {transform_indices = @transform_3, window_bounds = array<i64: 1, 1, 8>}, {transform_indices = @transform_4, window_bounds = array<i64: 1, 8, 32>}]} {
    %c0_i32 = arith.constant 0 : i32
    %0 = arith.cmpi eq, %arg1, %c0_i32 : i32
    %1 = arith.extui %0 : i1 to i32
    %c0_i32_0 = arith.constant 0 : i32
    %2 = arith.cmpi ne, %1, %c0_i32_0 : i32
    scf.if %2 {
      %cst_11 = arith.constant 0.000000e+00 : f32
      %13 = vector.broadcast %cst_11 : f32 to vector<8x96xf32>
      %c0_12 = arith.constant 0 : index
      %c0_13 = arith.constant 0 : index
      %14 = vector.load %arg7[%c0_12, %c0_13] : memref<8x96xf32, #tpu.memory_space<vmem>>, vector<8x96xf32>
      tpu.vector_store %arg7[%c0_12, %c0_13], %13 {strides = array<i32>} : memref<8x96xf32, #tpu.memory_space<vmem>>, vector<8x96xf32>,
    } else {
    }
    %c0 = arith.constant 0 : index
    %c0_1 = arith.constant 0 : index
    %3 = vector.load %arg7[%c0, %c0_1] : memref<8x96xf32, #tpu.memory_space<vmem>>, vector<8x96xf32>
    %c0_2 = arith.constant 0 : index
    %c0_3 = arith.constant 0 : index
    %c0_4 = arith.constant 0 : index
    %4 = vector.load %arg2[%c0_2, %c0_3, %c0_4] : memref<1x8x32xbf16, #tpu.memory_space<vmem>>, vector<1x8x32xbf16>
    %5 = vector.shape_cast %4 : vector<1x8x32xbf16> to vector<8x32xbf16>
    %c0_5 = arith.constant 0 : index
    %c0_6 = arith.constant 0 : index
    %6 = vector.load %arg3[%c0_5, %c0_6] : memref<32x96xbf16, #tpu.memory_space<vmem>>, vector<32x96xbf16>
    %cst = arith.constant dense<0.000000e+00> : vector<8x96xf32>
    %7 = tpu.matmul %5, %6, %cst {dimension_numbers = #tpu.dot_dimension_numbers<[1], [0], [0], [1], [0, 0, 1, 1], [], []>} : vector<8x32xbf16>, vector<32x96xbf16>, vector<8x96xf32> -> vector<8x96xf32>
    %8 = arith.addf %3, %7 : vector<8x96xf32>
    %c0_7 = arith.constant 0 : index
    %c0_8 = arith.constant 0 : index
    %9 = vector.load %arg7[%c0_7, %c0_8] : memref<8x96xf32, #tpu.memory_space<vmem>>, vector<8x96xf32>
    tpu.vector_store %arg7[%c0_7, %c0_8], %8 {strides = array<i32>} : memref<8x96xf32, #tpu.memory_space<vmem>>, vector<8x96xf32>,
    %c0_i32_9 = arith.constant 0 : i32
    %10 = arith.cmpi eq, %arg1, %c0_i32_9 : i32
    %11 = arith.extui %10 : i1 to i32
    %c0_i32_10 = arith.constant 0 : i32
    %12 = arith.cmpi ne, %11, %c0_i32_10 : i32
    scf.if %12 {
      %c0_11 = arith.constant 0 : index
      %c0_12 = arith.constant 0 : index
      %13 = vector.load %arg7[%c0_11, %c0_12] : memref<8x96xf32, #tpu.memory_space<vmem>>, vector<8x96xf32>
      %c0_13 = arith.constant 0 : index
      %c0_14 = arith.constant 0 : index
      %14 = vector.load %arg4[%c0_13, %c0_14] : memref<1x96xbf16, #tpu.memory_space<vmem>>, vector<1x96xbf16>
      %15 = arith.extf %14 : vector<1x96xbf16> to vector<1x96xf32>
      %16 = vector.broadcast %15 : vector<1x96xf32> to vector<8x96xf32>
      %17 = arith.addf %13, %16 : vector<8x96xf32>
      %18 = arith.truncf %17 : vector<8x96xf32> to vector<8x96xbf16>
      %c0_15 = arith.constant 0 : index
      %c0_16 = arith.constant 0 : index
      %c0_17 = arith.constant 0 : index
      %19 = vector.load %arg5[%c0_15, %c0_16, %c0_17] : memref<1x1x8xf32, #tpu.memory_space<vmem>>, vector<1x1x8xf32>
      %20 = vector.shape_cast %19 : vector<1x1x8xf32> to vector<1x8xf32>
      %21 = vector.extract_strided_slice %18 {offsets = [0, 0], sizes = [8, 8], strides = [1, 1]} : vector<8x96xbf16> to vector<8x8xbf16>
      %22 = vector.extract_strided_slice %18 {offsets = [0, 32], sizes = [8, 8], strides = [1, 1]} : vector<8x96xbf16> to vector<8x8xbf16>
      %23 = vector.extract_strided_slice %18 {offsets = [0, 64], sizes = [8, 8], strides = [1, 1]} : vector<8x96xbf16> to vector<8x8xbf16>
      %cst_18 = arith.constant dense<0.000000e+00> : vector<8x8xf32>
      %24 = tpu.matmul %21, %22, %cst_18 {dimension_numbers = #tpu.dot_dimension_numbers<[1], [1], [0], [0], [0, 0, 1, 0], [], []>} : vector<8x8xbf16>, vector<8x8xbf16>, vector<8x8xf32> -> vector<8x8xf32>
      %cst_19 = arith.constant 0.353553385 : f32
      %25 = vector.broadcast %cst_19 : f32 to vector<8x8xf32>
      %26 = arith.mulf %24, %25 : vector<8x8xf32>
      %27 = vector.broadcast %20 : vector<1x8xf32> to vector<8x8xf32>
      %28 = arith.addf %26, %27 : vector<8x8xf32>
      %cst_20 = arith.constant dense<0xFF800000> : vector<8xf32>
      %29 = vector.multi_reduction <maximumf>, %28, %cst_20 [1] : vector<8x8xf32> to vector<8xf32>
      %30 = vector.shape_cast %29 : vector<8xf32> to vector<8x1xf32>
      %31 = vector.broadcast %30 : vector<8x1xf32> to vector<8x8xf32>
      %32 = arith.subf %28, %31 : vector<8x8xf32>
      %33 = math.exp %32 : vector<8x8xf32>
      %cst_21 = arith.constant dense<0.000000e+00> : vector<8xf32>
      %34 = vector.multi_reduction <add>, %33, %cst_21 [1] : vector<8x8xf32> to vector<8xf32>
      %35 = vector.shape_cast %34 : vector<8xf32> to vector<8x1xf32>
      %36 = tpu.reciprocal %35 {approx = true} : vector<8x1xf32> -> vector<8x1xf32>
      %37 = vector.broadcast %36 : vector<8x1xf32> to vector<8x8xf32>
      %38 = arith.mulf %33, %37 : vector<8x8xf32>
      %39 = arith.truncf %38 : vector<8x8xf32> to vector<8x8xbf16>
      %cst_22 = arith.constant dense<0.000000e+00> : vector<8x8xf32>
      %40 = tpu.matmul %39, %23, %cst_22 {dimension_numbers = #tpu.dot_dimension_numbers<[1], [0], [0], [1], [0, 0, 1, 1], [], []>} : vector<8x8xbf16>, vector<8x8xbf16>, vector<8x8xf32> -> vector<8x8xf32>
      %41 = arith.truncf %40 : vector<8x8xf32> to vector<8x8xbf16>
      %c0_23 = arith.constant 0 : index
      %c0_24 = arith.constant 0 : index
      %c0_25 = arith.constant 0 : index
      %42 = vector.load %arg6[%c0_23, %c0_24, %c0_25] : memref<1x8x32xbf16, #tpu.memory_space<vmem>>, vector<1x8x8xbf16>
      %43 = vector.shape_cast %42 : vector<1x8x8xbf16> to vector<8x8xbf16>
      %44 = vector.shape_cast %41 : vector<8x8xbf16> to vector<1x8x8xbf16>
      tpu.vector_store %arg6[%c0_23, %c0_24, %c0_25], %44 {strides = array<i32>} : memref<1x8x32xbf16, #tpu.memory_space<vmem>>, vector<1x8x8xbf16>,
      %45 = vector.extract_strided_slice %18 {offsets = [0, 8], sizes = [8, 8], strides = [1, 1]} : vector<8x96xbf16> to vector<8x8xbf16>
      %46 = vector.extract_strided_slice %18 {offsets = [0, 40], sizes = [8, 8], strides = [1, 1]} : vector<8x96xbf16> to vector<8x8xbf16>
      %47 = vector.extract_strided_slice %18 {offsets = [0, 72], sizes = [8, 8], strides = [1, 1]} : vector<8x96xbf16> to vector<8x8xbf16>
      %cst_26 = arith.constant dense<0.000000e+00> : vector<8x8xf32>
      %48 = tpu.matmul %45, %46, %cst_26 {dimension_numbers = #tpu.dot_dimension_numbers<[1], [1], [0], [0], [0, 0, 1, 0], [], []>} : vector<8x8xbf16>, vector<8x8xbf16>, vector<8x8xf32> -> vector<8x8xf32>
      %cst_27 = arith.constant 0.353553385 : f32
      %49 = vector.broadcast %cst_27 : f32 to vector<8x8xf32>
      %50 = arith.mulf %48, %49 : vector<8x8xf32>
      %51 = vector.broadcast %20 : vector<1x8xf32> to vector<8x8xf32>
      %52 = arith.addf %50, %51 : vector<8x8xf32>
      %cst_28 = arith.constant dense<0xFF800000> : vector<8xf32>
      %53 = vector.multi_reduction <maximumf>, %52, %cst_28 [1] : vector<8x8xf32> to vector<8xf32>
      %54 = vector.shape_cast %53 : vector<8xf32> to vector<8x1xf32>
      %55 = vector.broadcast %54 : vector<8x1xf32> to vector<8x8xf32>
      %56 = arith.subf %52, %55 : vector<8x8xf32>
      %57 = math.exp %56 : vector<8x8xf32>
      %cst_29 = arith.constant dense<0.000000e+00> : vector<8xf32>
      %58 = vector.multi_reduction <add>, %57, %cst_29 [1] : vector<8x8xf32> to vector<8xf32>
      %59 = vector.shape_cast %58 : vector<8xf32> to vector<8x1xf32>
      %60 = tpu.reciprocal %59 {approx = true} : vector<8x1xf32> -> vector<8x1xf32>
      %61 = vector.broadcast %60 : vector<8x1xf32> to vector<8x8xf32>
      %62 = arith.mulf %57, %61 : vector<8x8xf32>
      %63 = arith.truncf %62 : vector<8x8xf32> to vector<8x8xbf16>
      %cst_30 = arith.constant dense<0.000000e+00> : vector<8x8xf32>
      %64 = tpu.matmul %63, %47, %cst_30 {dimension_numbers = #tpu.dot_dimension_numbers<[1], [0], [0], [1], [0, 0, 1, 1], [], []>} : vector<8x8xbf16>, vector<8x8xbf16>, vector<8x8xf32> -> vector<8x8xf32>
      %65 = arith.truncf %64 : vector<8x8xf32> to vector<8x8xbf16>
      %c0_31 = arith.constant 0 : index
      %c0_32 = arith.constant 0 : index
      %c8 = arith.constant 8 : index
      %66 = vector.load %arg6[%c0_31, %c0_32, %c8] : memref<1x8x32xbf16, #tpu.memory_space<vmem>>, vector<1x8x8xbf16>
      %67 = vector.shape_cast %66 : vector<1x8x8xbf16> to vector<8x8xbf16>
      %68 = vector.shape_cast %65 : vector<8x8xbf16> to vector<1x8x8xbf16>
      tpu.vector_store %arg6[%c0_31, %c0_32, %c8], %68 {strides = array<i32>} : memref<1x8x32xbf16, #tpu.memory_space<vmem>>, vector<1x8x8xbf16>,
      %69 = vector.extract_strided_slice %18 {offsets = [0, 16], sizes = [8, 8], strides = [1, 1]} : vector<8x96xbf16> to vector<8x8xbf16>
      %70 = vector.extract_strided_slice %18 {offsets = [0, 48], sizes = [8, 8], strides = [1, 1]} : vector<8x96xbf16> to vector<8x8xbf16>
      %71 = vector.extract_strided_slice %18 {offsets = [0, 80], sizes = [8, 8], strides = [1, 1]} : vector<8x96xbf16> to vector<8x8xbf16>
      %cst_33 = arith.constant dense<0.000000e+00> : vector<8x8xf32>
      %72 = tpu.matmul %69, %70, %cst_33 {dimension_numbers = #tpu.dot_dimension_numbers<[1], [1], [0], [0], [0, 0, 1, 0], [], []>} : vector<8x8xbf16>, vector<8x8xbf16>, vector<8x8xf32> -> vector<8x8xf32>
      %cst_34 = arith.constant 0.353553385 : f32
      %73 = vector.broadcast %cst_34 : f32 to vector<8x8xf32>
      %74 = arith.mulf %72, %73 : vector<8x8xf32>
      %75 = vector.broadcast %20 : vector<1x8xf32> to vector<8x8xf32>
      %76 = arith.addf %74, %75 : vector<8x8xf32>
      %cst_35 = arith.constant dense<0xFF800000> : vector<8xf32>
      %77 = vector.multi_reduction <maximumf>, %76, %cst_35 [1] : vector<8x8xf32> to vector<8xf32>
      %78 = vector.shape_cast %77 : vector<8xf32> to vector<8x1xf32>
      %79 = vector.broadcast %78 : vector<8x1xf32> to vector<8x8xf32>
      %80 = arith.subf %76, %79 : vector<8x8xf32>
      %81 = math.exp %80 : vector<8x8xf32>
      %cst_36 = arith.constant dense<0.000000e+00> : vector<8xf32>
      %82 = vector.multi_reduction <add>, %81, %cst_36 [1] : vector<8x8xf32> to vector<8xf32>
      %83 = vector.shape_cast %82 : vector<8xf32> to vector<8x1xf32>
      %84 = tpu.reciprocal %83 {approx = true} : vector<8x1xf32> -> vector<8x1xf32>
      %85 = vector.broadcast %84 : vector<8x1xf32> to vector<8x8xf32>
      %86 = arith.mulf %81, %85 : vector<8x8xf32>
      %87 = arith.truncf %86 : vector<8x8xf32> to vector<8x8xbf16>
      %cst_37 = arith.constant dense<0.000000e+00> : vector<8x8xf32>
      %88 = tpu.matmul %87, %71, %cst_37 {dimension_numbers = #tpu.dot_dimension_numbers<[1], [0], [0], [1], [0, 0, 1, 1], [], []>} : vector<8x8xbf16>, vector<8x8xbf16>, vector<8x8xf32> -> vector<8x8xf32>
      %89 = arith.truncf %88 : vector<8x8xf32> to vector<8x8xbf16>
      %c0_38 = arith.constant 0 : index
      %c0_39 = arith.constant 0 : index
      %c16 = arith.constant 16 : index
      %90 = vector.load %arg6[%c0_38, %c0_39, %c16] : memref<1x8x32xbf16, #tpu.memory_space<vmem>>, vector<1x8x8xbf16>
      %91 = vector.shape_cast %90 : vector<1x8x8xbf16> to vector<8x8xbf16>
      %92 = vector.shape_cast %89 : vector<8x8xbf16> to vector<1x8x8xbf16>
      tpu.vector_store %arg6[%c0_38, %c0_39, %c16], %92 {strides = array<i32>} : memref<1x8x32xbf16, #tpu.memory_space<vmem>>, vector<1x8x8xbf16>,
      %93 = vector.extract_strided_slice %18 {offsets = [0, 24], sizes = [8, 8], strides = [1, 1]} : vector<8x96xbf16> to vector<8x8xbf16>
      %94 = vector.extract_strided_slice %18 {offsets = [0, 56], sizes = [8, 8], strides = [1, 1]} : vector<8x96xbf16> to vector<8x8xbf16>
      %95 = vector.extract_strided_slice %18 {offsets = [0, 88], sizes = [8, 8], strides = [1, 1]} : vector<8x96xbf16> to vector<8x8xbf16>
      %cst_40 = arith.constant dense<0.000000e+00> : vector<8x8xf32>
      %96 = tpu.matmul %93, %94, %cst_40 {dimension_numbers = #tpu.dot_dimension_numbers<[1], [1], [0], [0], [0, 0, 1, 0], [], []>} : vector<8x8xbf16>, vector<8x8xbf16>, vector<8x8xf32> -> vector<8x8xf32>
      %cst_41 = arith.constant 0.353553385 : f32
      %97 = vector.broadcast %cst_41 : f32 to vector<8x8xf32>
      %98 = arith.mulf %96, %97 : vector<8x8xf32>
      %99 = vector.broadcast %20 : vector<1x8xf32> to vector<8x8xf32>
      %100 = arith.addf %98, %99 : vector<8x8xf32>
      %cst_42 = arith.constant dense<0xFF800000> : vector<8xf32>
      %101 = vector.multi_reduction <maximumf>, %100, %cst_42 [1] : vector<8x8xf32> to vector<8xf32>
      %102 = vector.shape_cast %101 : vector<8xf32> to vector<8x1xf32>
      %103 = vector.broadcast %102 : vector<8x1xf32> to vector<8x8xf32>
      %104 = arith.subf %100, %103 : vector<8x8xf32>
      %105 = math.exp %104 : vector<8x8xf32>
      %cst_43 = arith.constant dense<0.000000e+00> : vector<8xf32>
      %106 = vector.multi_reduction <add>, %105, %cst_43 [1] : vector<8x8xf32> to vector<8xf32>
      %107 = vector.shape_cast %106 : vector<8xf32> to vector<8x1xf32>
      %108 = tpu.reciprocal %107 {approx = true} : vector<8x1xf32> -> vector<8x1xf32>
      %109 = vector.broadcast %108 : vector<8x1xf32> to vector<8x8xf32>
      %110 = arith.mulf %105, %109 : vector<8x8xf32>
      %111 = arith.truncf %110 : vector<8x8xf32> to vector<8x8xbf16>
      %cst_44 = arith.constant dense<0.000000e+00> : vector<8x8xf32>
      %112 = tpu.matmul %111, %95, %cst_44 {dimension_numbers = #tpu.dot_dimension_numbers<[1], [0], [0], [1], [0, 0, 1, 1], [], []>} : vector<8x8xbf16>, vector<8x8xbf16>, vector<8x8xf32> -> vector<8x8xf32>
      %113 = arith.truncf %112 : vector<8x8xf32> to vector<8x8xbf16>
      %c0_45 = arith.constant 0 : index
      %c0_46 = arith.constant 0 : index
      %c24 = arith.constant 24 : index
      %114 = vector.load %arg6[%c0_45, %c0_46, %c24] : memref<1x8x32xbf16, #tpu.memory_space<vmem>>, vector<1x8x8xbf16>
      %115 = vector.shape_cast %114 : vector<1x8x8xbf16> to vector<8x8xbf16>
      %116 = vector.shape_cast %113 : vector<8x8xbf16> to vector<1x8x8xbf16>
      tpu.vector_store %arg6[%c0_45, %c0_46, %c24], %116 {strides = array<i32>} : memref<1x8x32xbf16, #tpu.memory_space<vmem>>, vector<1x8x8xbf16>,
    } else {
    }
    return
  }
  func.func @transform_0(%arg0: i32, %arg1: i32) -> (i32, i32, i32) {
    %c0_i32 = arith.constant 0 : i32
    %c0_i32_0 = arith.constant 0 : i32
    return %arg0, %c0_i32, %arg1 : i32, i32, i32
  }
  func.func @transform_1(%arg0: i32, %arg1: i32) -> (i32, i32) {
    %c0_i32 = arith.constant 0 : i32
    %c0_i32_0 = arith.constant 0 : i32
    return %arg1, %c0_i32 : i32, i32
  }
  func.func @transform_2(%arg0: i32, %arg1: i32) -> (i32, i32) {
    %c0_i32 = arith.constant 0 : i32
    %c0_i32_0 = arith.constant 0 : i32
    %c0_i32_1 = arith.constant 0 : i32
    return %c0_i32, %c0_i32_0 : i32, i32
  }
  func.func @transform_3(%arg0: i32, %arg1: i32) -> (i32, i32, i32) {
    %c0_i32 = arith.constant 0 : i32
    %c0_i32_0 = arith.constant 0 : i32
    %c0_i32_1 = arith.constant 0 : i32
    return %arg0, %c0_i32, %c0_i32_0 : i32, i32, i32
  }
  func.func @transform_4(%arg0: i32, %arg1: i32) -> (i32, i32, i32) {
    %c0_i32 = arith.constant 0 : i32
    %c0_i32_0 = arith.constant 0 : i32
    %c0_i32_1 = arith.constant 0 : i32
    return %arg0, %c0_i32, %c0_i32_0 : i32, i32, i32
  }
}

module attributes {stable_mosaic.version = 11 : i64} {
  func.func @_matmul_add_ln_kernel(%arg0: i32, %arg1: i32, %arg2: memref<16x32xbf16, #tpu.memory_space<vmem>>, %arg3: memref<32x32xbf16, #tpu.memory_space<vmem>>, %arg4: memref<1x32xbf16, #tpu.memory_space<vmem>>, %arg5: memref<16x32xbf16, #tpu.memory_space<vmem>>, %arg6: memref<1x32xbf16, #tpu.memory_space<vmem>>, %arg7: memref<1x32xbf16, #tpu.memory_space<vmem>>, %arg8: memref<16x32xbf16, #tpu.memory_space<vmem>>, %arg9: memref<16x32xf32, #tpu.memory_space<vmem>>) attributes {dimension_semantics = [#tpu.dimension_semantics<parallel>, #tpu.dimension_semantics<arbitrary>], iteration_bounds = array<i64: 1, 1>, scalar_prefetch = 0 : i64, scratch_operands = 1 : i64, tpu.core_type = #tpu.core_type<tc>, window_params = [{transform_indices = @transform_0, window_bounds = array<i64: 16, 32>}, {transform_indices = @transform_1, window_bounds = array<i64: 32, 32>}, {pipeline_mode = #tpu.pipeline_mode<synchronous>, transform_indices = @transform_2, window_bounds = array<i64: 1, 32>}, {transform_indices = @transform_3, window_bounds = array<i64: 16, 32>}, {pipeline_mode = #tpu.pipeline_mode<synchronous>, transform_indices = @transform_4, window_bounds = array<i64: 1, 32>}, {pipeline_mode = #tpu.pipeline_mode<synchronous>, transform_indices = @transform_5, window_bounds = array<i64: 1, 32>}, {transform_indices = @transform_6, window_bounds = array<i64: 16, 32>}]} {
    %c0_i32 = arith.constant 0 : i32
    %0 = arith.cmpi eq, %arg1, %c0_i32 : i32
    %1 = arith.extui %0 : i1 to i32
    %c0_i32_0 = arith.constant 0 : i32
    %2 = arith.cmpi ne, %1, %c0_i32_0 : i32
    scf.if %2 {
      %cst_10 = arith.constant 0.000000e+00 : f32
      %12 = vector.broadcast %cst_10 : f32 to vector<16x32xf32>
      %c0_11 = arith.constant 0 : index
      %c0_12 = arith.constant 0 : index
      %13 = vector.load %arg9[%c0_11, %c0_12] : memref<16x32xf32, #tpu.memory_space<vmem>>, vector<16x32xf32>
      tpu.vector_store %arg9[%c0_11, %c0_12], %12 {strides = array<i32>} : memref<16x32xf32, #tpu.memory_space<vmem>>, vector<16x32xf32>,
    } else {
    }
    %c0 = arith.constant 0 : index
    %c0_1 = arith.constant 0 : index
    %3 = vector.load %arg9[%c0, %c0_1] : memref<16x32xf32, #tpu.memory_space<vmem>>, vector<16x32xf32>
    %c0_2 = arith.constant 0 : index
    %c0_3 = arith.constant 0 : index
    %4 = vector.load %arg2[%c0_2, %c0_3] : memref<16x32xbf16, #tpu.memory_space<vmem>>, vector<16x32xbf16>
    %c0_4 = arith.constant 0 : index
    %c0_5 = arith.constant 0 : index
    %5 = vector.load %arg3[%c0_4, %c0_5] : memref<32x32xbf16, #tpu.memory_space<vmem>>, vector<32x32xbf16>
    %cst = arith.constant dense<0.000000e+00> : vector<16x32xf32>
    %6 = tpu.matmul %4, %5, %cst {dimension_numbers = #tpu.dot_dimension_numbers<[1], [0], [0], [1], [0, 0, 1, 1], [], []>} : vector<16x32xbf16>, vector<32x32xbf16>, vector<16x32xf32> -> vector<16x32xf32>
    %7 = arith.addf %3, %6 : vector<16x32xf32>
    %c0_6 = arith.constant 0 : index
    %c0_7 = arith.constant 0 : index
    %8 = vector.load %arg9[%c0_6, %c0_7] : memref<16x32xf32, #tpu.memory_space<vmem>>, vector<16x32xf32>
    tpu.vector_store %arg9[%c0_6, %c0_7], %7 {strides = array<i32>} : memref<16x32xf32, #tpu.memory_space<vmem>>, vector<16x32xf32>,
    %c0_i32_8 = arith.constant 0 : i32
    %9 = arith.cmpi eq, %arg1, %c0_i32_8 : i32
    %10 = arith.extui %9 : i1 to i32
    %c0_i32_9 = arith.constant 0 : i32
    %11 = arith.cmpi ne, %10, %c0_i32_9 : i32
    scf.if %11 {
      %c0_10 = arith.constant 0 : index
      %c0_11 = arith.constant 0 : index
      %12 = vector.load %arg9[%c0_10, %c0_11] : memref<16x32xf32, #tpu.memory_space<vmem>>, vector<16x32xf32>
      %c0_12 = arith.constant 0 : index
      %c0_13 = arith.constant 0 : index
      %13 = vector.load %arg4[%c0_12, %c0_13] : memref<1x32xbf16, #tpu.memory_space<vmem>>, vector<1x32xbf16>
      %14 = arith.extf %13 : vector<1x32xbf16> to vector<1x32xf32>
      %15 = vector.broadcast %14 : vector<1x32xf32> to vector<16x32xf32>
      %16 = arith.addf %12, %15 : vector<16x32xf32>
      %c0_14 = arith.constant 0 : index
      %c0_15 = arith.constant 0 : index
      %17 = vector.load %arg5[%c0_14, %c0_15] : memref<16x32xbf16, #tpu.memory_space<vmem>>, vector<16x32xbf16>
      %18 = arith.extf %17 : vector<16x32xbf16> to vector<16x32xf32>
      %19 = arith.addf %16, %18 : vector<16x32xf32>
      %cst_16 = arith.constant dense<0.000000e+00> : vector<16xf32>
      %20 = vector.multi_reduction <add>, %19, %cst_16 [1] : vector<16x32xf32> to vector<16xf32>
      %21 = vector.shape_cast %20 : vector<16xf32> to vector<16x1xf32>
      %cst_17 = arith.constant 3.200000e+01 : f32
      %22 = vector.broadcast %cst_17 : f32 to vector<16x1xf32>
      %23 = arith.divf %21, %22 : vector<16x1xf32>
      %24 = vector.broadcast %23 : vector<16x1xf32> to vector<16x32xf32>
      %25 = arith.subf %19, %24 : vector<16x32xf32>
      %26 = arith.mulf %25, %25 : vector<16x32xf32>
      %cst_18 = arith.constant dense<0.000000e+00> : vector<16xf32>
      %27 = vector.multi_reduction <add>, %26, %cst_18 [1] : vector<16x32xf32> to vector<16xf32>
      %28 = vector.shape_cast %27 : vector<16xf32> to vector<16x1xf32>
      %cst_19 = arith.constant 3.200000e+01 : f32
      %29 = vector.broadcast %cst_19 : f32 to vector<16x1xf32>
      %30 = arith.divf %28, %29 : vector<16x1xf32>
      %31 = vector.broadcast %23 : vector<16x1xf32> to vector<16x32xf32>
      %32 = arith.subf %19, %31 : vector<16x32xf32>
      %cst_20 = arith.constant 9.99999996E-13 : f32
      %33 = vector.broadcast %cst_20 : f32 to vector<16x1xf32>
      %34 = arith.addf %30, %33 : vector<16x1xf32>
      %35 = math.rsqrt %34 : vector<16x1xf32>
      %36 = vector.broadcast %35 : vector<16x1xf32> to vector<16x32xf32>
      %37 = arith.mulf %32, %36 : vector<16x32xf32>
      %c0_21 = arith.constant 0 : index
      %c0_22 = arith.constant 0 : index
      %38 = vector.load %arg6[%c0_21, %c0_22] : memref<1x32xbf16, #tpu.memory_space<vmem>>, vector<1x32xbf16>
      %39 = arith.extf %38 : vector<1x32xbf16> to vector<1x32xf32>
      %40 = vector.broadcast %39 : vector<1x32xf32> to vector<16x32xf32>
      %41 = arith.mulf %37, %40 : vector<16x32xf32>
      %c0_23 = arith.constant 0 : index
      %c0_24 = arith.constant 0 : index
      %42 = vector.load %arg7[%c0_23, %c0_24] : memref<1x32xbf16, #tpu.memory_space<vmem>>, vector<1x32xbf16>
      %43 = arith.extf %42 : vector<1x32xbf16> to vector<1x32xf32>
      %44 = vector.broadcast %43 : vector<1x32xf32> to vector<16x32xf32>
      %45 = arith.addf %41, %44 : vector<16x32xf32>
      %46 = arith.truncf %45 : vector<16x32xf32> to vector<16x32xbf16>
      %c0_25 = arith.constant 0 : index
      %c0_26 = arith.constant 0 : index
      %47 = vector.load %arg8[%c0_25, %c0_26] : memref<16x32xbf16, #tpu.memory_space<vmem>>, vector<16x32xbf16>
      tpu.vector_store %arg8[%c0_25, %c0_26], %46 {strides = array<i32>} : memref<16x32xbf16, #tpu.memory_space<vmem>>, vector<16x32xbf16>,
    } else {
    }
    return
  }
  func.func @transform_0(%arg0: i32, %arg1: i32) -> (i32, i32) {
    %c0_i32 = arith.constant 0 : i32
    return %arg0, %arg1 : i32, i32
  }
  func.func @transform_1(%arg0: i32, %arg1: i32) -> (i32, i32) {
    %c0_i32 = arith.constant 0 : i32
    %c0_i32_0 = arith.constant 0 : i32
    return %arg1, %c0_i32 : i32, i32
  }
  func.func @transform_2(%arg0: i32, %arg1: i32) -> (i32, i32) {
    %c0_i32 = arith.constant 0 : i32
    %c0_i32_0 = arith.constant 0 : i32
    %c0_i32_1 = arith.constant 0 : i32
    return %c0_i32, %c0_i32_0 : i32, i32
  }
  func.func @transform_3(%arg0: i32, %arg1: i32) -> (i32, i32) {
    %c0_i32 = arith.constant 0 : i32
    %c0_i32_0 = arith.constant 0 : i32
    return %arg0, %c0_i32 : i32, i32
  }
  func.func @transform_4(%arg0: i32, %arg1: i32) -> (i32, i32) {
    %c0_i32 = arith.constant 0 : i32
    %c0_i32_0 = arith.constant 0 : i32
    %c0_i32_1 = arith.constant 0 : i32
    return %c0_i32, %c0_i32_0 : i32, i32
  }
  func.func @transform_5(%arg0: i32, %arg1: i32) -> (i32, i32) {
    %c0_i32 = arith.constant 0 : i32
    %c0_i32_0 = arith.constant 0 : i32
    %c0_i32_1 = arith.constant 0 : i32
    return %c0_i32, %c0_i32_0 : i32, i32
  }
  func.func @transform_6(%arg0: i32, %arg1: i32) -> (i32, i32) {
    %c0_i32 = arith.constant 0 : i32
    %c0_i32_0 = arith.constant 0 : i32
    return %arg0, %c0_i32 : i32, i32
  }
}

module attributes {stable_mosaic.version = 11 : i64} {
  func.func @_matmul_kernel(%arg0: i32, %arg1: i32, %arg2: i32, %arg3: memref<16x32xbf16, #tpu.memory_space<vmem>>, %arg4: memref<32x64xbf16, #tpu.memory_space<vmem>>, %arg5: memref<1x64xbf16, #tpu.memory_space<vmem>>, %arg6: memref<16x64xbf16, #tpu.memory_space<vmem>>, %arg7: memref<16x64xf32, #tpu.memory_space<vmem>>) attributes {dimension_semantics = [#tpu.dimension_semantics<parallel>, #tpu.dimension_semantics<parallel>, #tpu.dimension_semantics<arbitrary>], iteration_bounds = array<i64: 1, 1, 1>, scalar_prefetch = 0 : i64, scratch_operands = 1 : i64, tpu.core_type = #tpu.core_type<tc>, window_params = [{transform_indices = @transform_0, window_bounds = array<i64: 16, 32>}, {transform_indices = @transform_1, window_bounds = array<i64: 32, 64>}, {transform_indices = @transform_2, window_bounds = array<i64: 1, 64>}, {transform_indices = @transform_3, window_bounds = array<i64: 16, 64>}]} {
    %c0_i32 = arith.constant 0 : i32
    %0 = arith.cmpi eq, %arg2, %c0_i32 : i32
    %1 = arith.extui %0 : i1 to i32
    %c0_i32_0 = arith.constant 0 : i32
    %2 = arith.cmpi ne, %1, %c0_i32_0 : i32
    scf.if %2 {
      %cst_10 = arith.constant 0.000000e+00 : f32
      %12 = vector.broadcast %cst_10 : f32 to vector<16x64xf32>
      %c0_11 = arith.constant 0 : index
      %c0_12 = arith.constant 0 : index
      %13 = vector.load %arg7[%c0_11, %c0_12] : memref<16x64xf32, #tpu.memory_space<vmem>>, vector<16x64xf32>
      tpu.vector_store %arg7[%c0_11, %c0_12], %12 {strides = array<i32>} : memref<16x64xf32, #tpu.memory_space<vmem>>, vector<16x64xf32>,
    } else {
    }
    %c0 = arith.constant 0 : index
    %c0_1 = arith.constant 0 : index
    %3 = vector.load %arg7[%c0, %c0_1] : memref<16x64xf32, #tpu.memory_space<vmem>>, vector<16x64xf32>
    %c0_2 = arith.constant 0 : index
    %c0_3 = arith.constant 0 : index
    %4 = vector.load %arg3[%c0_2, %c0_3] : memref<16x32xbf16, #tpu.memory_space<vmem>>, vector<16x32xbf16>
    %c0_4 = arith.constant 0 : index
    %c0_5 = arith.constant 0 : index
    %5 = vector.load %arg4[%c0_4, %c0_5] : memref<32x64xbf16, #tpu.memory_space<vmem>>, vector<32x64xbf16>
    %cst = arith.constant dense<0.000000e+00> : vector<16x64xf32>
    %6 = tpu.matmul %4, %5, %cst {dimension_numbers = #tpu.dot_dimension_numbers<[1], [0], [0], [1], [0, 0, 1, 1], [], []>} : vector<16x32xbf16>, vector<32x64xbf16>, vector<16x64xf32> -> vector<16x64xf32>
    %7 = arith.addf %3, %6 : vector<16x64xf32>
    %c0_6 = arith.constant 0 : index
    %c0_7 = arith.constant 0 : index
    %8 = vector.load %arg7[%c0_6, %c0_7] : memref<16x64xf32, #tpu.memory_space<vmem>>, vector<16x64xf32>
    tpu.vector_store %arg7[%c0_6, %c0_7], %7 {strides = array<i32>} : memref<16x64xf32, #tpu.memory_space<vmem>>, vector<16x64xf32>,
    %c0_i32_8 = arith.constant 0 : i32
    %9 = arith.cmpi eq, %arg2, %c0_i32_8 : i32
    %10 = arith.extui %9 : i1 to i32
    %c0_i32_9 = arith.constant 0 : i32
    %11 = arith.cmpi ne, %10, %c0_i32_9 : i32
    scf.if %11 {
      %c0_10 = arith.constant 0 : index
      %c0_11 = arith.constant 0 : index
      %12 = vector.load %arg7[%c0_10, %c0_11] : memref<16x64xf32, #tpu.memory_space<vmem>>, vector<16x64xf32>
      %c0_12 = arith.constant 0 : index
      %c0_13 = arith.constant 0 : index
      %13 = vector.load %arg5[%c0_12, %c0_13] : memref<1x64xbf16, #tpu.memory_space<vmem>>, vector<1x64xbf16>
      %14 = arith.extf %13 : vector<1x64xbf16> to vector<1x64xf32>
      %15 = vector.broadcast %14 : vector<1x64xf32> to vector<16x64xf32>
      %16 = arith.addf %12, %15 : vector<16x64xf32>
      %cst_14 = arith.constant 5.000000e-01 : f32
      %17 = vector.broadcast %cst_14 : f32 to vector<16x64xf32>
      %18 = arith.mulf %17, %16 : vector<16x64xf32>
      %cst_15 = arith.constant 4.471500e-02 : f32
      %19 = vector.broadcast %cst_15 : f32 to vector<16x64xf32>
      %20 = arith.mulf %19, %16 : vector<16x64xf32>
      %21 = arith.mulf %20, %16 : vector<16x64xf32>
      %22 = arith.mulf %21, %16 : vector<16x64xf32>
      %23 = arith.addf %16, %22 : vector<16x64xf32>
      %cst_16 = arith.constant 0.797884583 : f32
      %24 = vector.broadcast %cst_16 : f32 to vector<16x64xf32>
      %25 = arith.mulf %24, %23 : vector<16x64xf32>
      %26 = math.tanh %25 : vector<16x64xf32>
      %cst_17 = arith.constant 1.000000e+00 : f32
      %27 = vector.broadcast %cst_17 : f32 to vector<16x64xf32>
      %28 = arith.addf %27, %26 : vector<16x64xf32>
      %29 = arith.mulf %18, %28 : vector<16x64xf32>
      %30 = arith.truncf %29 : vector<16x64xf32> to vector<16x64xbf16>
      %c0_18 = arith.constant 0 : index
      %c0_19 = arith.constant 0 : index
      %31 = vector.load %arg6[%c0_18, %c0_19] : memref<16x64xbf16, #tpu.memory_space<vmem>>, vector<16x64xbf16>
      tpu.vector_store %arg6[%c0_18, %c0_19], %30 {strides = array<i32>} : memref<16x64xbf16, #tpu.memory_space<vmem>>, vector<16x64xbf16>,
    } else {
    }
    return
  }
  func.func @transform_0(%arg0: i32, %arg1: i32, %arg2: i32) -> (i32, i32) {
    %c0_i32 = arith.constant 0 : i32
    return %arg0, %arg2 : i32, i32
  }
  func.func @transform_1(%arg0: i32, %arg1: i32, %arg2: i32) -> (i32, i32) {
    %c0_i32 = arith.constant 0 : i32
    return %arg2, %arg1 : i32, i32
  }
  func.func @transform_2(%arg0: i32, %arg1: i32, %arg2: i32) -> (i32, i32) {
    %c0_i32 = arith.constant 0 : i32
    %c0_i32_0 = arith.constant 0 : i32
    return %c0_i32, %arg1 : i32, i32
  }
  func.func @transform_3(%arg0: i32, %arg1: i32, %arg2: i32) -> (i32, i32) {
    %c0_i32 = arith.constant 0 : i32
    return %arg0, %arg1 : i32, i32
  }
}

module attributes {stable_mosaic.version = 11 : i64} {
  func.func @_matmul_add_ln_kernel(%arg0: i32, %arg1: i32, %arg2: memref<16x64xbf16, #tpu.memory_space<vmem>>, %arg3: memref<64x32xbf16, #tpu.memory_space<vmem>>, %arg4: memref<1x32xbf16, #tpu.memory_space<vmem>>, %arg5: memref<16x32xbf16, #tpu.memory_space<vmem>>, %arg6: memref<1x32xbf16, #tpu.memory_space<vmem>>, %arg7: memref<1x32xbf16, #tpu.memory_space<vmem>>, %arg8: memref<16x32xbf16, #tpu.memory_space<vmem>>, %arg9: memref<16x32xf32, #tpu.memory_space<vmem>>) attributes {dimension_semantics = [#tpu.dimension_semantics<parallel>, #tpu.dimension_semantics<arbitrary>], iteration_bounds = array<i64: 1, 1>, scalar_prefetch = 0 : i64, scratch_operands = 1 : i64, tpu.core_type = #tpu.core_type<tc>, window_params = [{transform_indices = @transform_0, window_bounds = array<i64: 16, 64>}, {transform_indices = @transform_1, window_bounds = array<i64: 64, 32>}, {pipeline_mode = #tpu.pipeline_mode<synchronous>, transform_indices = @transform_2, window_bounds = array<i64: 1, 32>}, {transform_indices = @transform_3, window_bounds = array<i64: 16, 32>}, {pipeline_mode = #tpu.pipeline_mode<synchronous>, transform_indices = @transform_4, window_bounds = array<i64: 1, 32>}, {pipeline_mode = #tpu.pipeline_mode<synchronous>, transform_indices = @transform_5, window_bounds = array<i64: 1, 32>}, {transform_indices = @transform_6, window_bounds = array<i64: 16, 32>}]} {
    %c0_i32 = arith.constant 0 : i32
    %0 = arith.cmpi eq, %arg1, %c0_i32 : i32
    %1 = arith.extui %0 : i1 to i32
    %c0_i32_0 = arith.constant 0 : i32
    %2 = arith.cmpi ne, %1, %c0_i32_0 : i32
    scf.if %2 {
      %cst_10 = arith.constant 0.000000e+00 : f32
      %12 = vector.broadcast %cst_10 : f32 to vector<16x32xf32>
      %c0_11 = arith.constant 0 : index
      %c0_12 = arith.constant 0 : index
      %13 = vector.load %arg9[%c0_11, %c0_12] : memref<16x32xf32, #tpu.memory_space<vmem>>, vector<16x32xf32>
      tpu.vector_store %arg9[%c0_11, %c0_12], %12 {strides = array<i32>} : memref<16x32xf32, #tpu.memory_space<vmem>>, vector<16x32xf32>,
    } else {
    }
    %c0 = arith.constant 0 : index
    %c0_1 = arith.constant 0 : index
    %3 = vector.load %arg9[%c0, %c0_1] : memref<16x32xf32, #tpu.memory_space<vmem>>, vector<16x32xf32>
    %c0_2 = arith.constant 0 : index
    %c0_3 = arith.constant 0 : index
    %4 = vector.load %arg2[%c0_2, %c0_3] : memref<16x64xbf16, #tpu.memory_space<vmem>>, vector<16x64xbf16>
    %c0_4 = arith.constant 0 : index
    %c0_5 = arith.constant 0 : index
    %5 = vector.load %arg3[%c0_4, %c0_5] : memref<64x32xbf16, #tpu.memory_space<vmem>>, vector<64x32xbf16>
    %cst = arith.constant dense<0.000000e+00> : vector<16x32xf32>
    %6 = tpu.matmul %4, %5, %cst {dimension_numbers = #tpu.dot_dimension_numbers<[1], [0], [0], [1], [0, 0, 1, 1], [], []>} : vector<16x64xbf16>, vector<64x32xbf16>, vector<16x32xf32> -> vector<16x32xf32>
    %7 = arith.addf %3, %6 : vector<16x32xf32>
    %c0_6 = arith.constant 0 : index
    %c0_7 = arith.constant 0 : index
    %8 = vector.load %arg9[%c0_6, %c0_7] : memref<16x32xf32, #tpu.memory_space<vmem>>, vector<16x32xf32>
    tpu.vector_store %arg9[%c0_6, %c0_7], %7 {strides = array<i32>} : memref<16x32xf32, #tpu.memory_space<vmem>>, vector<16x32xf32>,
    %c0_i32_8 = arith.constant 0 : i32
    %9 = arith.cmpi eq, %arg1, %c0_i32_8 : i32
    %10 = arith.extui %9 : i1 to i32
    %c0_i32_9 = arith.constant 0 : i32
    %11 = arith.cmpi ne, %10, %c0_i32_9 : i32
    scf.if %11 {
      %c0_10 = arith.constant 0 : index
      %c0_11 = arith.constant 0 : index
      %12 = vector.load %arg9[%c0_10, %c0_11] : memref<16x32xf32, #tpu.memory_space<vmem>>, vector<16x32xf32>
      %c0_12 = arith.constant 0 : index
      %c0_13 = arith.constant 0 : index
      %13 = vector.load %arg4[%c0_12, %c0_13] : memref<1x32xbf16, #tpu.memory_space<vmem>>, vector<1x32xbf16>
      %14 = arith.extf %13 : vector<1x32xbf16> to vector<1x32xf32>
      %15 = vector.broadcast %14 : vector<1x32xf32> to vector<16x32xf32>
      %16 = arith.addf %12, %15 : vector<16x32xf32>
      %c0_14 = arith.constant 0 : index
      %c0_15 = arith.constant 0 : index
      %17 = vector.load %arg5[%c0_14, %c0_15] : memref<16x32xbf16, #tpu.memory_space<vmem>>, vector<16x32xbf16>
      %18 = arith.extf %17 : vector<16x32xbf16> to vector<16x32xf32>
      %19 = arith.addf %16, %18 : vector<16x32xf32>
      %cst_16 = arith.constant dense<0.000000e+00> : vector<16xf32>
      %20 = vector.multi_reduction <add>, %19, %cst_16 [1] : vector<16x32xf32> to vector<16xf32>
      %21 = vector.shape_cast %20 : vector<16xf32> to vector<16x1xf32>
      %cst_17 = arith.constant 3.200000e+01 : f32
      %22 = vector.broadcast %cst_17 : f32 to vector<16x1xf32>
      %23 = arith.divf %21, %22 : vector<16x1xf32>
      %24 = vector.broadcast %23 : vector<16x1xf32> to vector<16x32xf32>
      %25 = arith.subf %19, %24 : vector<16x32xf32>
      %26 = arith.mulf %25, %25 : vector<16x32xf32>
      %cst_18 = arith.constant dense<0.000000e+00> : vector<16xf32>
      %27 = vector.multi_reduction <add>, %26, %cst_18 [1] : vector<16x32xf32> to vector<16xf32>
      %28 = vector.shape_cast %27 : vector<16xf32> to vector<16x1xf32>
      %cst_19 = arith.constant 3.200000e+01 : f32
      %29 = vector.broadcast %cst_19 : f32 to vector<16x1xf32>
      %30 = arith.divf %28, %29 : vector<16x1xf32>
      %31 = vector.broadcast %23 : vector<16x1xf32> to vector<16x32xf32>
      %32 = arith.subf %19, %31 : vector<16x32xf32>
      %cst_20 = arith.constant 9.99999996E-13 : f32
      %33 = vector.broadcast %cst_20 : f32 to vector<16x1xf32>
      %34 = arith.addf %30, %33 : vector<16x1xf32>
      %35 = math.rsqrt %34 : vector<16x1xf32>
      %36 = vector.broadcast %35 : vector<16x1xf32> to vector<16x32xf32>
      %37 = arith.mulf %32, %36 : vector<16x32xf32>
      %c0_21 = arith.constant 0 : index
      %c0_22 = arith.constant 0 : index
      %38 = vector.load %arg6[%c0_21, %c0_22] : memref<1x32xbf16, #tpu.memory_space<vmem>>, vector<1x32xbf16>
      %39 = arith.extf %38 : vector<1x32xbf16> to vector<1x32xf32>
      %40 = vector.broadcast %39 : vector<1x32xf32> to vector<16x32xf32>
      %41 = arith.mulf %37, %40 : vector<16x32xf32>
      %c0_23 = arith.constant 0 : index
      %c0_24 = arith.constant 0 : index
      %42 = vector.load %arg7[%c0_23, %c0_24] : memref<1x32xbf16, #tpu.memory_space<vmem>>, vector<1x32xbf16>
      %43 = arith.extf %42 : vector<1x32xbf16> to vector<1x32xf32>
      %44 = vector.broadcast %43 : vector<1x32xf32> to vector<16x32xf32>
      %45 = arith.addf %41, %44 : vector<16x32xf32>
      %46 = arith.truncf %45 : vector<16x32xf32> to vector<16x32xbf16>
      %c0_25 = arith.constant 0 : index
      %c0_26 = arith.constant 0 : index
      %47 = vector.load %arg8[%c0_25, %c0_26] : memref<16x32xbf16, #tpu.memory_space<vmem>>, vector<16x32xbf16>
      tpu.vector_store %arg8[%c0_25, %c0_26], %46 {strides = array<i32>} : memref<16x32xbf16, #tpu.memory_space<vmem>>, vector<16x32xbf16>,
    } else {
    }
    return
  }
  func.func @transform_0(%arg0: i32, %arg1: i32) -> (i32, i32) {
    %c0_i32 = arith.constant 0 : i32
    return %arg0, %arg1 : i32, i32
  }
  func.func @transform_1(%arg0: i32, %arg1: i32) -> (i32, i32) {
    %c0_i32 = arith.constant 0 : i32
    %c0_i32_0 = arith.constant 0 : i32
    return %arg1, %c0_i32 : i32, i32
  }
  func.func @transform_2(%arg0: i32, %arg1: i32) -> (i32, i32) {
    %c0_i32 = arith.constant 0 : i32
    %c0_i32_0 = arith.constant 0 : i32
    %c0_i32_1 = arith.constant 0 : i32
    return %c0_i32, %c0_i32_0 : i32, i32
  }
  func.func @transform_3(%arg0: i32, %arg1: i32) -> (i32, i32) {
    %c0_i32 = arith.constant 0 : i32
    %c0_i32_0 = arith.constant 0 : i32
    return %arg0, %c0_i32 : i32, i32
  }
  func.func @transform_4(%arg0: i32, %arg1: i32) -> (i32, i32) {
    %c0_i32 = arith.constant 0 : i32
    %c0_i32_0 = arith.constant 0 : i32
    %c0_i32_1 = arith.constant 0 : i32
    return %c0_i32, %c0_i32_0 : i32, i32
  }
  func.func @transform_5(%arg0: i32, %arg1: i32) -> (i32, i32) {
    %c0_i32 = arith.constant 0 : i32
    %c0_i32_0 = arith.constant 0 : i32
    %c0_i32_1 = arith.constant 0 : i32
    return %c0_i32, %c0_i32_0 : i32, i32
  }
  func.func @transform_6(%arg0: i32, %arg1: i32) -> (i32, i32) {
    %c0_i32 = arith.constant 0 : i32
    %c0_i32_0 = arith.constant 0 : i32
    return %arg0, %c0_i32 : i32, i32
  }
}

module attributes {stable_mosaic.version = 11 : i64} {
  func.func @_matmul_kernel(%arg0: i32, %arg1: i32, %arg2: i32, %arg3: memref<16x32xbf16, #tpu.memory_space<vmem>>, %arg4: memref<32x16xbf16, #tpu.memory_space<vmem>>, %arg5: memref<1x16xbf16, #tpu.memory_space<vmem>>, %arg6: memref<16x16xbf16, #tpu.memory_space<vmem>>, %arg7: memref<16x16xf32, #tpu.memory_space<vmem>>) attributes {dimension_semantics = [#tpu.dimension_semantics<parallel>, #tpu.dimension_semantics<parallel>, #tpu.dimension_semantics<arbitrary>], iteration_bounds = array<i64: 1, 1, 1>, scalar_prefetch = 0 : i64, scratch_operands = 1 : i64, tpu.core_type = #tpu.core_type<tc>, window_params = [{transform_indices = @transform_0, window_bounds = array<i64: 16, 32>}, {transform_indices = @transform_1, window_bounds = array<i64: 32, 16>}, {transform_indices = @transform_2, window_bounds = array<i64: 1, 16>}, {transform_indices = @transform_3, window_bounds = array<i64: 16, 16>}]} {
    %c0_i32 = arith.constant 0 : i32
    %0 = arith.cmpi eq, %arg2, %c0_i32 : i32
    %1 = arith.extui %0 : i1 to i32
    %c0_i32_0 = arith.constant 0 : i32
    %2 = arith.cmpi ne, %1, %c0_i32_0 : i32
    scf.if %2 {
      %cst_10 = arith.constant 0.000000e+00 : f32
      %12 = vector.broadcast %cst_10 : f32 to vector<16x16xf32>
      %c0_11 = arith.constant 0 : index
      %c0_12 = arith.constant 0 : index
      %13 = vector.load %arg7[%c0_11, %c0_12] : memref<16x16xf32, #tpu.memory_space<vmem>>, vector<16x16xf32>
      tpu.vector_store %arg7[%c0_11, %c0_12], %12 {strides = array<i32>} : memref<16x16xf32, #tpu.memory_space<vmem>>, vector<16x16xf32>,
    } else {
    }
    %c0 = arith.constant 0 : index
    %c0_1 = arith.constant 0 : index
    %3 = vector.load %arg7[%c0, %c0_1] : memref<16x16xf32, #tpu.memory_space<vmem>>, vector<16x16xf32>
    %c0_2 = arith.constant 0 : index
    %c0_3 = arith.constant 0 : index
    %4 = vector.load %arg3[%c0_2, %c0_3] : memref<16x32xbf16, #tpu.memory_space<vmem>>, vector<16x32xbf16>
    %c0_4 = arith.constant 0 : index
    %c0_5 = arith.constant 0 : index
    %5 = vector.load %arg4[%c0_4, %c0_5] : memref<32x16xbf16, #tpu.memory_space<vmem>>, vector<32x16xbf16>
    %cst = arith.constant dense<0.000000e+00> : vector<16x16xf32>
    %6 = tpu.matmul %4, %5, %cst {dimension_numbers = #tpu.dot_dimension_numbers<[1], [0], [0], [1], [0, 0, 1, 1], [], []>} : vector<16x32xbf16>, vector<32x16xbf16>, vector<16x16xf32> -> vector<16x16xf32>
    %7 = arith.addf %3, %6 : vector<16x16xf32>
    %c0_6 = arith.constant 0 : index
    %c0_7 = arith.constant 0 : index
    %8 = vector.load %arg7[%c0_6, %c0_7] : memref<16x16xf32, #tpu.memory_space<vmem>>, vector<16x16xf32>
    tpu.vector_store %arg7[%c0_6, %c0_7], %7 {strides = array<i32>} : memref<16x16xf32, #tpu.memory_space<vmem>>, vector<16x16xf32>,
    %c0_i32_8 = arith.constant 0 : i32
    %9 = arith.cmpi eq, %arg2, %c0_i32_8 : i32
    %10 = arith.extui %9 : i1 to i32
    %c0_i32_9 = arith.constant 0 : i32
    %11 = arith.cmpi ne, %10, %c0_i32_9 : i32
    scf.if %11 {
      %c0_10 = arith.constant 0 : index
      %c0_11 = arith.constant 0 : index
      %12 = vector.load %arg7[%c0_10, %c0_11] : memref<16x16xf32, #tpu.memory_space<vmem>>, vector<16x16xf32>
      %c0_12 = arith.constant 0 : index
      %c0_13 = arith.constant 0 : index
      %13 = vector.load %arg5[%c0_12, %c0_13] : memref<1x16xbf16, #tpu.memory_space<vmem>>, vector<1x16xbf16>
      %14 = arith.extf %13 : vector<1x16xbf16> to vector<1x16xf32>
      %15 = vector.broadcast %14 : vector<1x16xf32> to vector<16x16xf32>
      %16 = arith.addf %12, %15 : vector<16x16xf32>
      %17 = arith.truncf %16 : vector<16x16xf32> to vector<16x16xbf16>
      %c0_14 = arith.constant 0 : index
      %c0_15 = arith.constant 0 : index
      %18 = vector.load %arg6[%c0_14, %c0_15] : memref<16x16xbf16, #tpu.memory_space<vmem>>, vector<16x16xbf16>
      tpu.vector_store %arg6[%c0_14, %c0_15], %17 {strides = array<i32>} : memref<16x16xbf16, #tpu.memory_space<vmem>>, vector<16x16xbf16>,
    } else {
    }
    return
  }
  func.func @transform_0(%arg0: i32, %arg1: i32, %arg2: i32) -> (i32, i32) {
    %c0_i32 = arith.constant 0 : i32
    return %arg0, %arg2 : i32, i32
  }
  func.func @transform_1(%arg0: i32, %arg1: i32, %arg2: i32) -> (i32, i32) {
    %c0_i32 = arith.constant 0 : i32
    return %arg2, %arg1 : i32, i32
  }
  func.func @transform_2(%arg0: i32, %arg1: i32, %arg2: i32) -> (i32, i32) {
    %c0_i32 = arith.constant 0 : i32
    %c0_i32_0 = arith.constant 0 : i32
    return %c0_i32, %arg1 : i32, i32
  }
  func.func @transform_3(%arg0: i32, %arg1: i32, %arg2: i32) -> (i32, i32) {
    %c0_i32 = arith.constant 0 : i32
    return %arg0, %arg1 : i32, i32
  }
}

module attributes {stable_mosaic.version = 11 : i64} {
  func.func @_matmul_kernel(%arg0: i32, %arg1: i32, %arg2: i32, %arg3: memref<16x32xbf16, #tpu.memory_space<vmem>>, %arg4: memref<32x16xbf16, #tpu.memory_space<vmem>>, %arg5: memref<1x16xbf16, #tpu.memory_space<vmem>>, %arg6: memref<16x16xbf16, #tpu.memory_space<vmem>>, %arg7: memref<16x16xbf16, #tpu.memory_space<vmem>>, %arg8: memref<16x16xf32, #tpu.memory_space<vmem>>) attributes {dimension_semantics = [#tpu.dimension_semantics<parallel>, #tpu.dimension_semantics<parallel>, #tpu.dimension_semantics<arbitrary>], iteration_bounds = array<i64: 1, 1, 1>, scalar_prefetch = 0 : i64, scratch_operands = 1 : i64, tpu.core_type = #tpu.core_type<tc>, window_params = [{transform_indices = @transform_0, window_bounds = array<i64: 16, 32>}, {transform_indices = @transform_1, window_bounds = array<i64: 32, 16>}, {transform_indices = @transform_2, window_bounds = array<i64: 1, 16>}, {transform_indices = @transform_3, window_bounds = array<i64: 16, 16>}, {transform_indices = @transform_4, window_bounds = array<i64: 16, 16>}]} {
    %c0_i32 = arith.constant 0 : i32
    %0 = arith.cmpi eq, %arg2, %c0_i32 : i32
    %1 = arith.extui %0 : i1 to i32
    %c0_i32_0 = arith.constant 0 : i32
    %2 = arith.cmpi ne, %1, %c0_i32_0 : i32
    scf.if %2 {
      %cst_10 = arith.constant 0.000000e+00 : f32
      %12 = vector.broadcast %cst_10 : f32 to vector<16x16xf32>
      %c0_11 = arith.constant 0 : index
      %c0_12 = arith.constant 0 : index
      %13 = vector.load %arg8[%c0_11, %c0_12] : memref<16x16xf32, #tpu.memory_space<vmem>>, vector<16x16xf32>
      tpu.vector_store %arg8[%c0_11, %c0_12], %12 {strides = array<i32>} : memref<16x16xf32, #tpu.memory_space<vmem>>, vector<16x16xf32>,
    } else {
    }
    %c0 = arith.constant 0 : index
    %c0_1 = arith.constant 0 : index
    %3 = vector.load %arg8[%c0, %c0_1] : memref<16x16xf32, #tpu.memory_space<vmem>>, vector<16x16xf32>
    %c0_2 = arith.constant 0 : index
    %c0_3 = arith.constant 0 : index
    %4 = vector.load %arg3[%c0_2, %c0_3] : memref<16x32xbf16, #tpu.memory_space<vmem>>, vector<16x32xbf16>
    %c0_4 = arith.constant 0 : index
    %c0_5 = arith.constant 0 : index
    %5 = vector.load %arg4[%c0_4, %c0_5] : memref<32x16xbf16, #tpu.memory_space<vmem>>, vector<32x16xbf16>
    %cst = arith.constant dense<0.000000e+00> : vector<16x16xf32>
    %6 = tpu.matmul %4, %5, %cst {dimension_numbers = #tpu.dot_dimension_numbers<[1], [0], [0], [1], [0, 0, 1, 1], [], []>} : vector<16x32xbf16>, vector<32x16xbf16>, vector<16x16xf32> -> vector<16x16xf32>
    %7 = arith.addf %3, %6 : vector<16x16xf32>
    %c0_6 = arith.constant 0 : index
    %c0_7 = arith.constant 0 : index
    %8 = vector.load %arg8[%c0_6, %c0_7] : memref<16x16xf32, #tpu.memory_space<vmem>>, vector<16x16xf32>
    tpu.vector_store %arg8[%c0_6, %c0_7], %7 {strides = array<i32>} : memref<16x16xf32, #tpu.memory_space<vmem>>, vector<16x16xf32>,
    %c0_i32_8 = arith.constant 0 : i32
    %9 = arith.cmpi eq, %arg2, %c0_i32_8 : i32
    %10 = arith.extui %9 : i1 to i32
    %c0_i32_9 = arith.constant 0 : i32
    %11 = arith.cmpi ne, %10, %c0_i32_9 : i32
    scf.if %11 {
      %c0_10 = arith.constant 0 : index
      %c0_11 = arith.constant 0 : index
      %12 = vector.load %arg8[%c0_10, %c0_11] : memref<16x16xf32, #tpu.memory_space<vmem>>, vector<16x16xf32>
      %c0_12 = arith.constant 0 : index
      %c0_13 = arith.constant 0 : index
      %13 = vector.load %arg5[%c0_12, %c0_13] : memref<1x16xbf16, #tpu.memory_space<vmem>>, vector<1x16xbf16>
      %14 = arith.extf %13 : vector<1x16xbf16> to vector<1x16xf32>
      %15 = vector.broadcast %14 : vector<1x16xf32> to vector<16x16xf32>
      %16 = arith.addf %12, %15 : vector<16x16xf32>
      %c0_14 = arith.constant 0 : index
      %c0_15 = arith.constant 0 : index
      %17 = vector.load %arg6[%c0_14, %c0_15] : memref<16x16xbf16, #tpu.memory_space<vmem>>, vector<16x16xbf16>
      %18 = arith.extf %17 : vector<16x16xbf16> to vector<16x16xf32>
      %19 = arith.addf %16, %18 : vector<16x16xf32>
      %20 = arith.truncf %19 : vector<16x16xf32> to vector<16x16xbf16>
      %c0_16 = arith.constant 0 : index
      %c0_17 = arith.constant 0 : index
      %21 = vector.load %arg7[%c0_16, %c0_17] : memref<16x16xbf16, #tpu.memory_space<vmem>>, vector<16x16xbf16>
      tpu.vector_store %arg7[%c0_16, %c0_17], %20 {strides = array<i32>} : memref<16x16xbf16, #tpu.memory_space<vmem>>, vector<16x16xbf16>,
    } else {
    }
    return
  }
  func.func @transform_0(%arg0: i32, %arg1: i32, %arg2: i32) -> (i32, i32) {
    %c0_i32 = arith.constant 0 : i32
    return %arg0, %arg2 : i32, i32
  }
  func.func @transform_1(%arg0: i32, %arg1: i32, %arg2: i32) -> (i32, i32) {
    %c0_i32 = arith.constant 0 : i32
    return %arg2, %arg1 : i32, i32
  }
  func.func @transform_2(%arg0: i32, %arg1: i32, %arg2: i32) -> (i32, i32) {
    %c0_i32 = arith.constant 0 : i32
    %c0_i32_0 = arith.constant 0 : i32
    return %c0_i32, %arg1 : i32, i32
  }
  func.func @transform_3(%arg0: i32, %arg1: i32, %arg2: i32) -> (i32, i32) {
    %c0_i32 = arith.constant 0 : i32
    return %arg0, %arg1 : i32, i32
  }
  func.func @transform_4(%arg0: i32, %arg1: i32, %arg2: i32) -> (i32, i32) {
    %c0_i32 = arith.constant 0 : i32
    return %arg0, %arg1 : i32, i32
  }
}

module attributes {stable_mosaic.version = 11 : i64} {
  func.func @_qkv_attn_kernel(%arg0: i32, %arg1: i32, %arg2: memref<1x8x16xbf16, #tpu.memory_space<vmem>>, %arg3: memref<16x48xbf16, #tpu.memory_space<vmem>>, %arg4: memref<1x48xbf16, #tpu.memory_space<vmem>>, %arg5: memref<1x1x8xf32, #tpu.memory_space<vmem>>, %arg6: memref<1x8x16xbf16, #tpu.memory_space<vmem>>, %arg7: memref<8x48xf32, #tpu.memory_space<vmem>>) attributes {dimension_semantics = [#tpu.dimension_semantics<parallel>, #tpu.dimension_semantics<arbitrary>], iteration_bounds = array<i64: 2, 1>, scalar_prefetch = 0 : i64, scratch_operands = 1 : i64, tpu.core_type = #tpu.core_type<tc>, window_params = [{transform_indices = @transform_0, window_bounds = array<i64: 1, 8, 16>}, {transform_indices = @transform_1, window_bounds = array<i64: 16, 48>}, {pipeline_mode = #tpu.pipeline_mode<synchronous>, transform_indices = @transform_2, window_bounds = array<i64: 1, 48>}, {transform_indices = @transform_3, window_bounds = array<i64: 1, 1, 8>}, {transform_indices = @transform_4, window_bounds = array<i64: 1, 8, 16>}]} {
    %c0_i32 = arith.constant 0 : i32
    %0 = arith.cmpi eq, %arg1, %c0_i32 : i32
    %1 = arith.extui %0 : i1 to i32
    %c0_i32_0 = arith.constant 0 : i32
    %2 = arith.cmpi ne, %1, %c0_i32_0 : i32
    scf.if %2 {
      %cst_11 = arith.constant 0.000000e+00 : f32
      %13 = vector.broadcast %cst_11 : f32 to vector<8x48xf32>
      %c0_12 = arith.constant 0 : index
      %c0_13 = arith.constant 0 : index
      %14 = vector.load %arg7[%c0_12, %c0_13] : memref<8x48xf32, #tpu.memory_space<vmem>>, vector<8x48xf32>
      tpu.vector_store %arg7[%c0_12, %c0_13], %13 {strides = array<i32>} : memref<8x48xf32, #tpu.memory_space<vmem>>, vector<8x48xf32>,
    } else {
    }
    %c0 = arith.constant 0 : index
    %c0_1 = arith.constant 0 : index
    %3 = vector.load %arg7[%c0, %c0_1] : memref<8x48xf32, #tpu.memory_space<vmem>>, vector<8x48xf32>
    %c0_2 = arith.constant 0 : index
    %c0_3 = arith.constant 0 : index
    %c0_4 = arith.constant 0 : index
    %4 = vector.load %arg2[%c0_2, %c0_3, %c0_4] : memref<1x8x16xbf16, #tpu.memory_space<vmem>>, vector<1x8x16xbf16>
    %5 = vector.shape_cast %4 : vector<1x8x16xbf16> to vector<8x16xbf16>
    %c0_5 = arith.constant 0 : index
    %c0_6 = arith.constant 0 : index
    %6 = vector.load %arg3[%c0_5, %c0_6] : memref<16x48xbf16, #tpu.memory_space<vmem>>, vector<16x48xbf16>
    %cst = arith.constant dense<0.000000e+00> : vector<8x48xf32>
    %7 = tpu.matmul %5, %6, %cst {dimension_numbers = #tpu.dot_dimension_numbers<[1], [0], [0], [1], [0, 0, 1, 1], [], []>} : vector<8x16xbf16>, vector<16x48xbf16>, vector<8x48xf32> -> vector<8x48xf32>
    %8 = arith.addf %3, %7 : vector<8x48xf32>
    %c0_7 = arith.constant 0 : index
    %c0_8 = arith.constant 0 : index
    %9 = vector.load %arg7[%c0_7, %c0_8] : memref<8x48xf32, #tpu.memory_space<vmem>>, vector<8x48xf32>
    tpu.vector_store %arg7[%c0_7, %c0_8], %8 {strides = array<i32>} : memref<8x48xf32, #tpu.memory_space<vmem>>, vector<8x48xf32>,
    %c0_i32_9 = arith.constant 0 : i32
    %10 = arith.cmpi eq, %arg1, %c0_i32_9 : i32
    %11 = arith.extui %10 : i1 to i32
    %c0_i32_10 = arith.constant 0 : i32
    %12 = arith.cmpi ne, %11, %c0_i32_10 : i32
    scf.if %12 {
      %c0_11 = arith.constant 0 : index
      %c0_12 = arith.constant 0 : index
      %13 = vector.load %arg7[%c0_11, %c0_12] : memref<8x48xf32, #tpu.memory_space<vmem>>, vector<8x48xf32>
      %c0_13 = arith.constant 0 : index
      %c0_14 = arith.constant 0 : index
      %14 = vector.load %arg4[%c0_13, %c0_14] : memref<1x48xbf16, #tpu.memory_space<vmem>>, vector<1x48xbf16>
      %15 = arith.extf %14 : vector<1x48xbf16> to vector<1x48xf32>
      %16 = vector.broadcast %15 : vector<1x48xf32> to vector<8x48xf32>
      %17 = arith.addf %13, %16 : vector<8x48xf32>
      %18 = arith.truncf %17 : vector<8x48xf32> to vector<8x48xbf16>
      %c0_15 = arith.constant 0 : index
      %c0_16 = arith.constant 0 : index
      %c0_17 = arith.constant 0 : index
      %19 = vector.load %arg5[%c0_15, %c0_16, %c0_17] : memref<1x1x8xf32, #tpu.memory_space<vmem>>, vector<1x1x8xf32>
      %20 = vector.shape_cast %19 : vector<1x1x8xf32> to vector<1x8xf32>
      %21 = vector.extract_strided_slice %18 {offsets = [0, 0], sizes = [8, 4], strides = [1, 1]} : vector<8x48xbf16> to vector<8x4xbf16>
      %22 = vector.extract_strided_slice %18 {offsets = [0, 16], sizes = [8, 4], strides = [1, 1]} : vector<8x48xbf16> to vector<8x4xbf16>
      %23 = vector.extract_strided_slice %18 {offsets = [0, 32], sizes = [8, 4], strides = [1, 1]} : vector<8x48xbf16> to vector<8x4xbf16>
      %cst_18 = arith.constant dense<0.000000e+00> : vector<8x8xf32>
      %24 = tpu.matmul %21, %22, %cst_18 {dimension_numbers = #tpu.dot_dimension_numbers<[1], [1], [0], [0], [0, 0, 1, 0], [], []>} : vector<8x4xbf16>, vector<8x4xbf16>, vector<8x8xf32> -> vector<8x8xf32>
      %cst_19 = arith.constant 5.000000e-01 : f32
      %25 = vector.broadcast %cst_19 : f32 to vector<8x8xf32>
      %26 = arith.mulf %24, %25 : vector<8x8xf32>
      %27 = vector.broadcast %20 : vector<1x8xf32> to vector<8x8xf32>
      %28 = arith.addf %26, %27 : vector<8x8xf32>
      %cst_20 = arith.constant dense<0xFF800000> : vector<8xf32>
      %29 = vector.multi_reduction <maximumf>, %28, %cst_20 [1] : vector<8x8xf32> to vector<8xf32>
      %30 = vector.shape_cast %29 : vector<8xf32> to vector<8x1xf32>
      %31 = vector.broadcast %30 : vector<8x1xf32> to vector<8x8xf32>
      %32 = arith.subf %28, %31 : vector<8x8xf32>
      %33 = math.exp %32 : vector<8x8xf32>
      %cst_21 = arith.constant dense<0.000000e+00> : vector<8xf32>
      %34 = vector.multi_reduction <add>, %33, %cst_21 [1] : vector<8x8xf32> to vector<8xf32>
      %35 = vector.shape_cast %34 : vector<8xf32> to vector<8x1xf32>
      %36 = tpu.reciprocal %35 {approx = true} : vector<8x1xf32> -> vector<8x1xf32>
      %37 = vector.broadcast %36 : vector<8x1xf32> to vector<8x8xf32>
      %38 = arith.mulf %33, %37 : vector<8x8xf32>
      %39 = arith.truncf %38 : vector<8x8xf32> to vector<8x8xbf16>
      %cst_22 = arith.constant dense<0.000000e+00> : vector<8x4xf32>
      %40 = tpu.matmul %39, %23, %cst_22 {dimension_numbers = #tpu.dot_dimension_numbers<[1], [0], [0], [1], [0, 0, 1, 1], [], []>} : vector<8x8xbf16>, vector<8x4xbf16>, vector<8x4xf32> -> vector<8x4xf32>
      %41 = arith.truncf %40 : vector<8x4xf32> to vector<8x4xbf16>
      %c0_23 = arith.constant 0 : index
      %c0_24 = arith.constant 0 : index
      %c0_25 = arith.constant 0 : index
      %42 = vector.load %arg6[%c0_23, %c0_24, %c0_25] : memref<1x8x16xbf16, #tpu.memory_space<vmem>>, vector<1x8x4xbf16>
      %43 = vector.shape_cast %42 : vector<1x8x4xbf16> to vector<8x4xbf16>
      %44 = vector.shape_cast %41 : vector<8x4xbf16> to vector<1x8x4xbf16>
      tpu.vector_store %arg6[%c0_23, %c0_24, %c0_25], %44 {strides = array<i32>} : memref<1x8x16xbf16, #tpu.memory_space<vmem>>, vector<1x8x4xbf16>,
      %45 = vector.extract_strided_slice %18 {offsets = [0, 4], sizes = [8, 4], strides = [1, 1]} : vector<8x48xbf16> to vector<8x4xbf16>
      %46 = vector.extract_strided_slice %18 {offsets = [0, 20], sizes = [8, 4], strides = [1, 1]} : vector<8x48xbf16> to vector<8x4xbf16>
      %47 = vector.extract_strided_slice %18 {offsets = [0, 36], sizes = [8, 4], strides = [1, 1]} : vector<8x48xbf16> to vector<8x4xbf16>
      %cst_26 = arith.constant dense<0.000000e+00> : vector<8x8xf32>
      %48 = tpu.matmul %45, %46, %cst_26 {dimension_numbers = #tpu.dot_dimension_numbers<[1], [1], [0], [0], [0, 0, 1, 0], [], []>} : vector<8x4xbf16>, vector<8x4xbf16>, vector<8x8xf32> -> vector<8x8xf32>
      %cst_27 = arith.constant 5.000000e-01 : f32
      %49 = vector.broadcast %cst_27 : f32 to vector<8x8xf32>
      %50 = arith.mulf %48, %49 : vector<8x8xf32>
      %51 = vector.broadcast %20 : vector<1x8xf32> to vector<8x8xf32>
      %52 = arith.addf %50, %51 : vector<8x8xf32>
      %cst_28 = arith.constant dense<0xFF800000> : vector<8xf32>
      %53 = vector.multi_reduction <maximumf>, %52, %cst_28 [1] : vector<8x8xf32> to vector<8xf32>
      %54 = vector.shape_cast %53 : vector<8xf32> to vector<8x1xf32>
      %55 = vector.broadcast %54 : vector<8x1xf32> to vector<8x8xf32>
      %56 = arith.subf %52, %55 : vector<8x8xf32>
      %57 = math.exp %56 : vector<8x8xf32>
      %cst_29 = arith.constant dense<0.000000e+00> : vector<8xf32>
      %58 = vector.multi_reduction <add>, %57, %cst_29 [1] : vector<8x8xf32> to vector<8xf32>
      %59 = vector.shape_cast %58 : vector<8xf32> to vector<8x1xf32>
      %60 = tpu.reciprocal %59 {approx = true} : vector<8x1xf32> -> vector<8x1xf32>
      %61 = vector.broadcast %60 : vector<8x1xf32> to vector<8x8xf32>
      %62 = arith.mulf %57, %61 : vector<8x8xf32>
      %63 = arith.truncf %62 : vector<8x8xf32> to vector<8x8xbf16>
      %cst_30 = arith.constant dense<0.000000e+00> : vector<8x4xf32>
      %64 = tpu.matmul %63, %47, %cst_30 {dimension_numbers = #tpu.dot_dimension_numbers<[1], [0], [0], [1], [0, 0, 1, 1], [], []>} : vector<8x8xbf16>, vector<8x4xbf16>, vector<8x4xf32> -> vector<8x4xf32>
      %65 = arith.truncf %64 : vector<8x4xf32> to vector<8x4xbf16>
      %c0_31 = arith.constant 0 : index
      %c0_32 = arith.constant 0 : index
      %c4 = arith.constant 4 : index
      %66 = vector.load %arg6[%c0_31, %c0_32, %c4] : memref<1x8x16xbf16, #tpu.memory_space<vmem>>, vector<1x8x4xbf16>
      %67 = vector.shape_cast %66 : vector<1x8x4xbf16> to vector<8x4xbf16>
      %68 = vector.shape_cast %65 : vector<8x4xbf16> to vector<1x8x4xbf16>
      tpu.vector_store %arg6[%c0_31, %c0_32, %c4], %68 {strides = array<i32>} : memref<1x8x16xbf16, #tpu.memory_space<vmem>>, vector<1x8x4xbf16>,
      %69 = vector.extract_strided_slice %18 {offsets = [0, 8], sizes = [8, 4], strides = [1, 1]} : vector<8x48xbf16> to vector<8x4xbf16>
      %70 = vector.extract_strided_slice %18 {offsets = [0, 24], sizes = [8, 4], strides = [1, 1]} : vector<8x48xbf16> to vector<8x4xbf16>
      %71 = vector.extract_strided_slice %18 {offsets = [0, 40], sizes = [8, 4], strides = [1, 1]} : vector<8x48xbf16> to vector<8x4xbf16>
      %cst_33 = arith.constant dense<0.000000e+00> : vector<8x8xf32>
      %72 = tpu.matmul %69, %70, %cst_33 {dimension_numbers = #tpu.dot_dimension_numbers<[1], [1], [0], [0], [0, 0, 1, 0], [], []>} : vector<8x4xbf16>, vector<8x4xbf16>, vector<8x8xf32> -> vector<8x8xf32>
      %cst_34 = arith.constant 5.000000e-01 : f32
      %73 = vector.broadcast %cst_34 : f32 to vector<8x8xf32>
      %74 = arith.mulf %72, %73 : vector<8x8xf32>
      %75 = vector.broadcast %20 : vector<1x8xf32> to vector<8x8xf32>
      %76 = arith.addf %74, %75 : vector<8x8xf32>
      %cst_35 = arith.constant dense<0xFF800000> : vector<8xf32>
      %77 = vector.multi_reduction <maximumf>, %76, %cst_35 [1] : vector<8x8xf32> to vector<8xf32>
      %78 = vector.shape_cast %77 : vector<8xf32> to vector<8x1xf32>
      %79 = vector.broadcast %78 : vector<8x1xf32> to vector<8x8xf32>
      %80 = arith.subf %76, %79 : vector<8x8xf32>
      %81 = math.exp %80 : vector<8x8xf32>
      %cst_36 = arith.constant dense<0.000000e+00> : vector<8xf32>
      %82 = vector.multi_reduction <add>, %81, %cst_36 [1] : vector<8x8xf32> to vector<8xf32>
      %83 = vector.shape_cast %82 : vector<8xf32> to vector<8x1xf32>
      %84 = tpu.reciprocal %83 {approx = true} : vector<8x1xf32> -> vector<8x1xf32>
      %85 = vector.broadcast %84 : vector<8x1xf32> to vector<8x8xf32>
      %86 = arith.mulf %81, %85 : vector<8x8xf32>
      %87 = arith.truncf %86 : vector<8x8xf32> to vector<8x8xbf16>
      %cst_37 = arith.constant dense<0.000000e+00> : vector<8x4xf32>
      %88 = tpu.matmul %87, %71, %cst_37 {dimension_numbers = #tpu.dot_dimension_numbers<[1], [0], [0], [1], [0, 0, 1, 1], [], []>} : vector<8x8xbf16>, vector<8x4xbf16>, vector<8x4xf32> -> vector<8x4xf32>
      %89 = arith.truncf %88 : vector<8x4xf32> to vector<8x4xbf16>
      %c0_38 = arith.constant 0 : index
      %c0_39 = arith.constant 0 : index
      %c8 = arith.constant 8 : index
      %90 = vector.load %arg6[%c0_38, %c0_39, %c8] : memref<1x8x16xbf16, #tpu.memory_space<vmem>>, vector<1x8x4xbf16>
      %91 = vector.shape_cast %90 : vector<1x8x4xbf16> to vector<8x4xbf16>
      %92 = vector.shape_cast %89 : vector<8x4xbf16> to vector<1x8x4xbf16>
      tpu.vector_store %arg6[%c0_38, %c0_39, %c8], %92 {strides = array<i32>} : memref<1x8x16xbf16, #tpu.memory_space<vmem>>, vector<1x8x4xbf16>,
      %93 = vector.extract_strided_slice %18 {offsets = [0, 12], sizes = [8, 4], strides = [1, 1]} : vector<8x48xbf16> to vector<8x4xbf16>
      %94 = vector.extract_strided_slice %18 {offsets = [0, 28], sizes = [8, 4], strides = [1, 1]} : vector<8x48xbf16> to vector<8x4xbf16>
      %95 = vector.extract_strided_slice %18 {offsets = [0, 44], sizes = [8, 4], strides = [1, 1]} : vector<8x48xbf16> to vector<8x4xbf16>
      %cst_40 = arith.constant dense<0.000000e+00> : vector<8x8xf32>
      %96 = tpu.matmul %93, %94, %cst_40 {dimension_numbers = #tpu.dot_dimension_numbers<[1], [1], [0], [0], [0, 0, 1, 0], [], []>} : vector<8x4xbf16>, vector<8x4xbf16>, vector<8x8xf32> -> vector<8x8xf32>
      %cst_41 = arith.constant 5.000000e-01 : f32
      %97 = vector.broadcast %cst_41 : f32 to vector<8x8xf32>
      %98 = arith.mulf %96, %97 : vector<8x8xf32>
      %99 = vector.broadcast %20 : vector<1x8xf32> to vector<8x8xf32>
      %100 = arith.addf %98, %99 : vector<8x8xf32>
      %cst_42 = arith.constant dense<0xFF800000> : vector<8xf32>
      %101 = vector.multi_reduction <maximumf>, %100, %cst_42 [1] : vector<8x8xf32> to vector<8xf32>
      %102 = vector.shape_cast %101 : vector<8xf32> to vector<8x1xf32>
      %103 = vector.broadcast %102 : vector<8x1xf32> to vector<8x8xf32>
      %104 = arith.subf %100, %103 : vector<8x8xf32>
      %105 = math.exp %104 : vector<8x8xf32>
      %cst_43 = arith.constant dense<0.000000e+00> : vector<8xf32>
      %106 = vector.multi_reduction <add>, %105, %cst_43 [1] : vector<8x8xf32> to vector<8xf32>
      %107 = vector.shape_cast %106 : vector<8xf32> to vector<8x1xf32>
      %108 = tpu.reciprocal %107 {approx = true} : vector<8x1xf32> -> vector<8x1xf32>
      %109 = vector.broadcast %108 : vector<8x1xf32> to vector<8x8xf32>
      %110 = arith.mulf %105, %109 : vector<8x8xf32>
      %111 = arith.truncf %110 : vector<8x8xf32> to vector<8x8xbf16>
      %cst_44 = arith.constant dense<0.000000e+00> : vector<8x4xf32>
      %112 = tpu.matmul %111, %95, %cst_44 {dimension_numbers = #tpu.dot_dimension_numbers<[1], [0], [0], [1], [0, 0, 1, 1], [], []>} : vector<8x8xbf16>, vector<8x4xbf16>, vector<8x4xf32> -> vector<8x4xf32>
      %113 = arith.truncf %112 : vector<8x4xf32> to vector<8x4xbf16>
      %c0_45 = arith.constant 0 : index
      %c0_46 = arith.constant 0 : index
      %c12 = arith.constant 12 : index
      %114 = vector.load %arg6[%c0_45, %c0_46, %c12] : memref<1x8x16xbf16, #tpu.memory_space<vmem>>, vector<1x8x4xbf16>
      %115 = vector.shape_cast %114 : vector<1x8x4xbf16> to vector<8x4xbf16>
      %116 = vector.shape_cast %113 : vector<8x4xbf16> to vector<1x8x4xbf16>
      tpu.vector_store %arg6[%c0_45, %c0_46, %c12], %116 {strides = array<i32>} : memref<1x8x16xbf16, #tpu.memory_space<vmem>>, vector<1x8x4xbf16>,
    } else {
    }
    return
  }
  func.func @transform_0(%arg0: i32, %arg1: i32) -> (i32, i32, i32) {
    %c0_i32 = arith.constant 0 : i32
    %c0_i32_0 = arith.constant 0 : i32
    return %arg0, %c0_i32, %arg1 : i32, i32, i32
  }
  func.func @transform_1(%arg0: i32, %arg1: i32) -> (i32, i32) {
    %c0_i32 = arith.constant 0 : i32
    %c0_i32_0 = arith.constant 0 : i32
    return %arg1, %c0_i32 : i32, i32
  }
  func.func @transform_2(%arg0: i32, %arg1: i32) -> (i32, i32) {
    %c0_i32 = arith.constant 0 : i32
    %c0_i32_0 = arith.constant 0 : i32
    %c0_i32_1 = arith.constant 0 : i32
    return %c0_i32, %c0_i32_0 : i32, i32
  }
  func.func @transform_3(%arg0: i32, %arg1: i32) -> (i32, i32, i32) {
    %c0_i32 = arith.constant 0 : i32
    %c0_i32_0 = arith.constant 0 : i32
    %c0_i32_1 = arith.constant 0 : i32
    return %arg0, %c0_i32, %c0_i32_0 : i32, i32, i32
  }
  func.func @transform_4(%arg0: i32, %arg1: i32) -> (i32, i32, i32) {
    %c0_i32 = arith.constant 0 : i32
    %c0_i32_0 = arith.constant 0 : i32
    %c0_i32_1 = arith.constant 0 : i32
    return %arg0, %c0_i32, %c0_i32_0 : i32, i32, i32
  }
}

module attributes {stable_mosaic.version = 11 : i64} {
  func.func @_matmul_add_ln_kernel(%arg0: i32, %arg1: i32, %arg2: memref<16x16xbf16, #tpu.memory_space<vmem>>, %arg3: memref<16x16xbf16, #tpu.memory_space<vmem>>, %arg4: memref<1x16xbf16, #tpu.memory_space<vmem>>, %arg5: memref<16x16xbf16, #tpu.memory_space<vmem>>, %arg6: memref<1x16xbf16, #tpu.memory_space<vmem>>, %arg7: memref<1x16xbf16, #tpu.memory_space<vmem>>, %arg8: memref<16x16xbf16, #tpu.memory_space<vmem>>, %arg9: memref<16x16xf32, #tpu.memory_space<vmem>>) attributes {dimension_semantics = [#tpu.dimension_semantics<parallel>, #tpu.dimension_semantics<arbitrary>], iteration_bounds = array<i64: 1, 1>, scalar_prefetch = 0 : i64, scratch_operands = 1 : i64, tpu.core_type = #tpu.core_type<tc>, window_params = [{transform_indices = @transform_0, window_bounds = array<i64: 16, 16>}, {transform_indices = @transform_1, window_bounds = array<i64: 16, 16>}, {pipeline_mode = #tpu.pipeline_mode<synchronous>, transform_indices = @transform_2, window_bounds = array<i64: 1, 16>}, {transform_indices = @transform_3, window_bounds = array<i64: 16, 16>}, {pipeline_mode = #tpu.pipeline_mode<synchronous>, transform_indices = @transform_4, window_bounds = array<i64: 1, 16>}, {pipeline_mode = #tpu.pipeline_mode<synchronous>, transform_indices = @transform_5, window_bounds = array<i64: 1, 16>}, {transform_indices = @transform_6, window_bounds = array<i64: 16, 16>}]} {
    %c0_i32 = arith.constant 0 : i32
    %0 = arith.cmpi eq, %arg1, %c0_i32 : i32
    %1 = arith.extui %0 : i1 to i32
    %c0_i32_0 = arith.constant 0 : i32
    %2 = arith.cmpi ne, %1, %c0_i32_0 : i32
    scf.if %2 {
      %cst_10 = arith.constant 0.000000e+00 : f32
      %12 = vector.broadcast %cst_10 : f32 to vector<16x16xf32>
      %c0_11 = arith.constant 0 : index
      %c0_12 = arith.constant 0 : index
      %13 = vector.load %arg9[%c0_11, %c0_12] : memref<16x16xf32, #tpu.memory_space<vmem>>, vector<16x16xf32>
      tpu.vector_store %arg9[%c0_11, %c0_12], %12 {strides = array<i32>} : memref<16x16xf32, #tpu.memory_space<vmem>>, vector<16x16xf32>,
    } else {
    }
    %c0 = arith.constant 0 : index
    %c0_1 = arith.constant 0 : index
    %3 = vector.load %arg9[%c0, %c0_1] : memref<16x16xf32, #tpu.memory_space<vmem>>, vector<16x16xf32>
    %c0_2 = arith.constant 0 : index
    %c0_3 = arith.constant 0 : index
    %4 = vector.load %arg2[%c0_2, %c0_3] : memref<16x16xbf16, #tpu.memory_space<vmem>>, vector<16x16xbf16>
    %c0_4 = arith.constant 0 : index
    %c0_5 = arith.constant 0 : index
    %5 = vector.load %arg3[%c0_4, %c0_5] : memref<16x16xbf16, #tpu.memory_space<vmem>>, vector<16x16xbf16>
    %cst = arith.constant dense<0.000000e+00> : vector<16x16xf32>
    %6 = tpu.matmul %4, %5, %cst {dimension_numbers = #tpu.dot_dimension_numbers<[1], [0], [0], [1], [0, 0, 1, 1], [], []>} : vector<16x16xbf16>, vector<16x16xbf16>, vector<16x16xf32> -> vector<16x16xf32>
    %7 = arith.addf %3, %6 : vector<16x16xf32>
    %c0_6 = arith.constant 0 : index
    %c0_7 = arith.constant 0 : index
    %8 = vector.load %arg9[%c0_6, %c0_7] : memref<16x16xf32, #tpu.memory_space<vmem>>, vector<16x16xf32>
    tpu.vector_store %arg9[%c0_6, %c0_7], %7 {strides = array<i32>} : memref<16x16xf32, #tpu.memory_space<vmem>>, vector<16x16xf32>,
    %c0_i32_8 = arith.constant 0 : i32
    %9 = arith.cmpi eq, %arg1, %c0_i32_8 : i32
    %10 = arith.extui %9 : i1 to i32
    %c0_i32_9 = arith.constant 0 : i32
    %11 = arith.cmpi ne, %10, %c0_i32_9 : i32
    scf.if %11 {
      %c0_10 = arith.constant 0 : index
      %c0_11 = arith.constant 0 : index
      %12 = vector.load %arg9[%c0_10, %c0_11] : memref<16x16xf32, #tpu.memory_space<vmem>>, vector<16x16xf32>
      %c0_12 = arith.constant 0 : index
      %c0_13 = arith.constant 0 : index
      %13 = vector.load %arg4[%c0_12, %c0_13] : memref<1x16xbf16, #tpu.memory_space<vmem>>, vector<1x16xbf16>
      %14 = arith.extf %13 : vector<1x16xbf16> to vector<1x16xf32>
      %15 = vector.broadcast %14 : vector<1x16xf32> to vector<16x16xf32>
      %16 = arith.addf %12, %15 : vector<16x16xf32>
      %c0_14 = arith.constant 0 : index
      %c0_15 = arith.constant 0 : index
      %17 = vector.load %arg5[%c0_14, %c0_15] : memref<16x16xbf16, #tpu.memory_space<vmem>>, vector<16x16xbf16>
      %18 = arith.extf %17 : vector<16x16xbf16> to vector<16x16xf32>
      %19 = arith.addf %16, %18 : vector<16x16xf32>
      %cst_16 = arith.constant dense<0.000000e+00> : vector<16xf32>
      %20 = vector.multi_reduction <add>, %19, %cst_16 [1] : vector<16x16xf32> to vector<16xf32>
      %21 = vector.shape_cast %20 : vector<16xf32> to vector<16x1xf32>
      %cst_17 = arith.constant 1.600000e+01 : f32
      %22 = vector.broadcast %cst_17 : f32 to vector<16x1xf32>
      %23 = arith.divf %21, %22 : vector<16x1xf32>
      %24 = vector.broadcast %23 : vector<16x1xf32> to vector<16x16xf32>
      %25 = arith.subf %19, %24 : vector<16x16xf32>
      %26 = arith.mulf %25, %25 : vector<16x16xf32>
      %cst_18 = arith.constant dense<0.000000e+00> : vector<16xf32>
      %27 = vector.multi_reduction <add>, %26, %cst_18 [1] : vector<16x16xf32> to vector<16xf32>
      %28 = vector.shape_cast %27 : vector<16xf32> to vector<16x1xf32>
      %cst_19 = arith.constant 1.600000e+01 : f32
      %29 = vector.broadcast %cst_19 : f32 to vector<16x1xf32>
      %30 = arith.divf %28, %29 : vector<16x1xf32>
      %31 = vector.broadcast %23 : vector<16x1xf32> to vector<16x16xf32>
      %32 = arith.subf %19, %31 : vector<16x16xf32>
      %cst_20 = arith.constant 9.99999996E-13 : f32
      %33 = vector.broadcast %cst_20 : f32 to vector<16x1xf32>
      %34 = arith.addf %30, %33 : vector<16x1xf32>
      %35 = math.rsqrt %34 : vector<16x1xf32>
      %36 = vector.broadcast %35 : vector<16x1xf32> to vector<16x16xf32>
      %37 = arith.mulf %32, %36 : vector<16x16xf32>
      %c0_21 = arith.constant 0 : index
      %c0_22 = arith.constant 0 : index
      %38 = vector.load %arg6[%c0_21, %c0_22] : memref<1x16xbf16, #tpu.memory_space<vmem>>, vector<1x16xbf16>
      %39 = arith.extf %38 : vector<1x16xbf16> to vector<1x16xf32>
      %40 = vector.broadcast %39 : vector<1x16xf32> to vector<16x16xf32>
      %41 = arith.mulf %37, %40 : vector<16x16xf32>
      %c0_23 = arith.constant 0 : index
      %c0_24 = arith.constant 0 : index
      %42 = vector.load %arg7[%c0_23, %c0_24] : memref<1x16xbf16, #tpu.memory_space<vmem>>, vector<1x16xbf16>
      %43 = arith.extf %42 : vector<1x16xbf16> to vector<1x16xf32>
      %44 = vector.broadcast %43 : vector<1x16xf32> to vector<16x16xf32>
      %45 = arith.addf %41, %44 : vector<16x16xf32>
      %46 = arith.truncf %45 : vector<16x16xf32> to vector<16x16xbf16>
      %c0_25 = arith.constant 0 : index
      %c0_26 = arith.constant 0 : index
      %47 = vector.load %arg8[%c0_25, %c0_26] : memref<16x16xbf16, #tpu.memory_space<vmem>>, vector<16x16xbf16>
      tpu.vector_store %arg8[%c0_25, %c0_26], %46 {strides = array<i32>} : memref<16x16xbf16, #tpu.memory_space<vmem>>, vector<16x16xbf16>,
    } else {
    }
    return
  }
  func.func @transform_0(%arg0: i32, %arg1: i32) -> (i32, i32) {
    %c0_i32 = arith.constant 0 : i32
    return %arg0, %arg1 : i32, i32
  }
  func.func @transform_1(%arg0: i32, %arg1: i32) -> (i32, i32) {
    %c0_i32 = arith.constant 0 : i32
    %c0_i32_0 = arith.constant 0 : i32
    return %arg1, %c0_i32 : i32, i32
  }
  func.func @transform_2(%arg0: i32, %arg1: i32) -> (i32, i32) {
    %c0_i32 = arith.constant 0 : i32
    %c0_i32_0 = arith.constant 0 : i32
    %c0_i32_1 = arith.constant 0 : i32
    return %c0_i32, %c0_i32_0 : i32, i32
  }
  func.func @transform_3(%arg0: i32, %arg1: i32) -> (i32, i32) {
    %c0_i32 = arith.constant 0 : i32
    %c0_i32_0 = arith.constant 0 : i32
    return %arg0, %c0_i32 : i32, i32
  }
  func.func @transform_4(%arg0: i32, %arg1: i32) -> (i32, i32) {
    %c0_i32 = arith.constant 0 : i32
    %c0_i32_0 = arith.constant 0 : i32
    %c0_i32_1 = arith.constant 0 : i32
    return %c0_i32, %c0_i32_0 : i32, i32
  }
  func.func @transform_5(%arg0: i32, %arg1: i32) -> (i32, i32) {
    %c0_i32 = arith.constant 0 : i32
    %c0_i32_0 = arith.constant 0 : i32
    %c0_i32_1 = arith.constant 0 : i32
    return %c0_i32, %c0_i32_0 : i32, i32
  }
  func.func @transform_6(%arg0: i32, %arg1: i32) -> (i32, i32) {
    %c0_i32 = arith.constant 0 : i32
    %c0_i32_0 = arith.constant 0 : i32
    return %arg0, %c0_i32 : i32, i32
  }
}

module attributes {stable_mosaic.version = 11 : i64} {
  func.func @_matmul_kernel(%arg0: i32, %arg1: i32, %arg2: i32, %arg3: memref<16x16xbf16, #tpu.memory_space<vmem>>, %arg4: memref<16x32xbf16, #tpu.memory_space<vmem>>, %arg5: memref<1x32xbf16, #tpu.memory_space<vmem>>, %arg6: memref<16x32xbf16, #tpu.memory_space<vmem>>, %arg7: memref<16x32xf32, #tpu.memory_space<vmem>>) attributes {dimension_semantics = [#tpu.dimension_semantics<parallel>, #tpu.dimension_semantics<parallel>, #tpu.dimension_semantics<arbitrary>], iteration_bounds = array<i64: 1, 1, 1>, scalar_prefetch = 0 : i64, scratch_operands = 1 : i64, tpu.core_type = #tpu.core_type<tc>, window_params = [{transform_indices = @transform_0, window_bounds = array<i64: 16, 16>}, {transform_indices = @transform_1, window_bounds = array<i64: 16, 32>}, {transform_indices = @transform_2, window_bounds = array<i64: 1, 32>}, {transform_indices = @transform_3, window_bounds = array<i64: 16, 32>}]} {
    %c0_i32 = arith.constant 0 : i32
    %0 = arith.cmpi eq, %arg2, %c0_i32 : i32
    %1 = arith.extui %0 : i1 to i32
    %c0_i32_0 = arith.constant 0 : i32
    %2 = arith.cmpi ne, %1, %c0_i32_0 : i32
    scf.if %2 {
      %cst_10 = arith.constant 0.000000e+00 : f32
      %12 = vector.broadcast %cst_10 : f32 to vector<16x32xf32>
      %c0_11 = arith.constant 0 : index
      %c0_12 = arith.constant 0 : index
      %13 = vector.load %arg7[%c0_11, %c0_12] : memref<16x32xf32, #tpu.memory_space<vmem>>, vector<16x32xf32>
      tpu.vector_store %arg7[%c0_11, %c0_12], %12 {strides = array<i32>} : memref<16x32xf32, #tpu.memory_space<vmem>>, vector<16x32xf32>,
    } else {
    }
    %c0 = arith.constant 0 : index
    %c0_1 = arith.constant 0 : index
    %3 = vector.load %arg7[%c0, %c0_1] : memref<16x32xf32, #tpu.memory_space<vmem>>, vector<16x32xf32>
    %c0_2 = arith.constant 0 : index
    %c0_3 = arith.constant 0 : index
    %4 = vector.load %arg3[%c0_2, %c0_3] : memref<16x16xbf16, #tpu.memory_space<vmem>>, vector<16x16xbf16>
    %c0_4 = arith.constant 0 : index
    %c0_5 = arith.constant 0 : index
    %5 = vector.load %arg4[%c0_4, %c0_5] : memref<16x32xbf16, #tpu.memory_space<vmem>>, vector<16x32xbf16>
    %cst = arith.constant dense<0.000000e+00> : vector<16x32xf32>
    %6 = tpu.matmul %4, %5, %cst {dimension_numbers = #tpu.dot_dimension_numbers<[1], [0], [0], [1], [0, 0, 1, 1], [], []>} : vector<16x16xbf16>, vector<16x32xbf16>, vector<16x32xf32> -> vector<16x32xf32>
    %7 = arith.addf %3, %6 : vector<16x32xf32>
    %c0_6 = arith.constant 0 : index
    %c0_7 = arith.constant 0 : index
    %8 = vector.load %arg7[%c0_6, %c0_7] : memref<16x32xf32, #tpu.memory_space<vmem>>, vector<16x32xf32>
    tpu.vector_store %arg7[%c0_6, %c0_7], %7 {strides = array<i32>} : memref<16x32xf32, #tpu.memory_space<vmem>>, vector<16x32xf32>,
    %c0_i32_8 = arith.constant 0 : i32
    %9 = arith.cmpi eq, %arg2, %c0_i32_8 : i32
    %10 = arith.extui %9 : i1 to i32
    %c0_i32_9 = arith.constant 0 : i32
    %11 = arith.cmpi ne, %10, %c0_i32_9 : i32
    scf.if %11 {
      %c0_10 = arith.constant 0 : index
      %c0_11 = arith.constant 0 : index
      %12 = vector.load %arg7[%c0_10, %c0_11] : memref<16x32xf32, #tpu.memory_space<vmem>>, vector<16x32xf32>
      %c0_12 = arith.constant 0 : index
      %c0_13 = arith.constant 0 : index
      %13 = vector.load %arg5[%c0_12, %c0_13] : memref<1x32xbf16, #tpu.memory_space<vmem>>, vector<1x32xbf16>
      %14 = arith.extf %13 : vector<1x32xbf16> to vector<1x32xf32>
      %15 = vector.broadcast %14 : vector<1x32xf32> to vector<16x32xf32>
      %16 = arith.addf %12, %15 : vector<16x32xf32>
      %cst_14 = arith.constant 5.000000e-01 : f32
      %17 = vector.broadcast %cst_14 : f32 to vector<16x32xf32>
      %18 = arith.mulf %17, %16 : vector<16x32xf32>
      %cst_15 = arith.constant 4.471500e-02 : f32
      %19 = vector.broadcast %cst_15 : f32 to vector<16x32xf32>
      %20 = arith.mulf %19, %16 : vector<16x32xf32>
      %21 = arith.mulf %20, %16 : vector<16x32xf32>
      %22 = arith.mulf %21, %16 : vector<16x32xf32>
      %23 = arith.addf %16, %22 : vector<16x32xf32>
      %cst_16 = arith.constant 0.797884583 : f32
      %24 = vector.broadcast %cst_16 : f32 to vector<16x32xf32>
      %25 = arith.mulf %24, %23 : vector<16x32xf32>
      %26 = math.tanh %25 : vector<16x32xf32>
      %cst_17 = arith.constant 1.000000e+00 : f32
      %27 = vector.broadcast %cst_17 : f32 to vector<16x32xf32>
      %28 = arith.addf %27, %26 : vector<16x32xf32>
      %29 = arith.mulf %18, %28 : vector<16x32xf32>
      %30 = arith.truncf %29 : vector<16x32xf32> to vector<16x32xbf16>
      %c0_18 = arith.constant 0 : index
      %c0_19 = arith.constant 0 : index
      %31 = vector.load %arg6[%c0_18, %c0_19] : memref<16x32xbf16, #tpu.memory_space<vmem>>, vector<16x32xbf16>
      tpu.vector_store %arg6[%c0_18, %c0_19], %30 {strides = array<i32>} : memref<16x32xbf16, #tpu.memory_space<vmem>>, vector<16x32xbf16>,
    } else {
    }
    return
  }
  func.func @transform_0(%arg0: i32, %arg1: i32, %arg2: i32) -> (i32, i32) {
    %c0_i32 = arith.constant 0 : i32
    return %arg0, %arg2 : i32, i32
  }
  func.func @transform_1(%arg0: i32, %arg1: i32, %arg2: i32) -> (i32, i32) {
    %c0_i32 = arith.constant 0 : i32
    return %arg2, %arg1 : i32, i32
  }
  func.func @transform_2(%arg0: i32, %arg1: i32, %arg2: i32) -> (i32, i32) {
    %c0_i32 = arith.constant 0 : i32
    %c0_i32_0 = arith.constant 0 : i32
    return %c0_i32, %arg1 : i32, i32
  }
  func.func @transform_3(%arg0: i32, %arg1: i32, %arg2: i32) -> (i32, i32) {
    %c0_i32 = arith.constant 0 : i32
    return %arg0, %arg1 : i32, i32
  }
}

module attributes {stable_mosaic.version = 11 : i64} {
  func.func @_matmul_add_ln_kernel(%arg0: i32, %arg1: i32, %arg2: memref<16x32xbf16, #tpu.memory_space<vmem>>, %arg3: memref<32x16xbf16, #tpu.memory_space<vmem>>, %arg4: memref<1x16xbf16, #tpu.memory_space<vmem>>, %arg5: memref<16x16xbf16, #tpu.memory_space<vmem>>, %arg6: memref<1x16xbf16, #tpu.memory_space<vmem>>, %arg7: memref<1x16xbf16, #tpu.memory_space<vmem>>, %arg8: memref<16x16xbf16, #tpu.memory_space<vmem>>, %arg9: memref<16x16xf32, #tpu.memory_space<vmem>>) attributes {dimension_semantics = [#tpu.dimension_semantics<parallel>, #tpu.dimension_semantics<arbitrary>], iteration_bounds = array<i64: 1, 1>, scalar_prefetch = 0 : i64, scratch_operands = 1 : i64, tpu.core_type = #tpu.core_type<tc>, window_params = [{transform_indices = @transform_0, window_bounds = array<i64: 16, 32>}, {transform_indices = @transform_1, window_bounds = array<i64: 32, 16>}, {pipeline_mode = #tpu.pipeline_mode<synchronous>, transform_indices = @transform_2, window_bounds = array<i64: 1, 16>}, {transform_indices = @transform_3, window_bounds = array<i64: 16, 16>}, {pipeline_mode = #tpu.pipeline_mode<synchronous>, transform_indices = @transform_4, window_bounds = array<i64: 1, 16>}, {pipeline_mode = #tpu.pipeline_mode<synchronous>, transform_indices = @transform_5, window_bounds = array<i64: 1, 16>}, {transform_indices = @transform_6, window_bounds = array<i64: 16, 16>}]} {
    %c0_i32 = arith.constant 0 : i32
    %0 = arith.cmpi eq, %arg1, %c0_i32 : i32
    %1 = arith.extui %0 : i1 to i32
    %c0_i32_0 = arith.constant 0 : i32
    %2 = arith.cmpi ne, %1, %c0_i32_0 : i32
    scf.if %2 {
      %cst_10 = arith.constant 0.000000e+00 : f32
      %12 = vector.broadcast %cst_10 : f32 to vector<16x16xf32>
      %c0_11 = arith.constant 0 : index
      %c0_12 = arith.constant 0 : index
      %13 = vector.load %arg9[%c0_11, %c0_12] : memref<16x16xf32, #tpu.memory_space<vmem>>, vector<16x16xf32>
      tpu.vector_store %arg9[%c0_11, %c0_12], %12 {strides = array<i32>} : memref<16x16xf32, #tpu.memory_space<vmem>>, vector<16x16xf32>,
    } else {
    }
    %c0 = arith.constant 0 : index
    %c0_1 = arith.constant 0 : index
    %3 = vector.load %arg9[%c0, %c0_1] : memref<16x16xf32, #tpu.memory_space<vmem>>, vector<16x16xf32>
    %c0_2 = arith.constant 0 : index
    %c0_3 = arith.constant 0 : index
    %4 = vector.load %arg2[%c0_2, %c0_3] : memref<16x32xbf16, #tpu.memory_space<vmem>>, vector<16x32xbf16>
    %c0_4 = arith.constant 0 : index
    %c0_5 = arith.constant 0 : index
    %5 = vector.load %arg3[%c0_4, %c0_5] : memref<32x16xbf16, #tpu.memory_space<vmem>>, vector<32x16xbf16>
    %cst = arith.constant dense<0.000000e+00> : vector<16x16xf32>
    %6 = tpu.matmul %4, %5, %cst {dimension_numbers = #tpu.dot_dimension_numbers<[1], [0], [0], [1], [0, 0, 1, 1], [], []>} : vector<16x32xbf16>, vector<32x16xbf16>, vector<16x16xf32> -> vector<16x16xf32>
    %7 = arith.addf %3, %6 : vector<16x16xf32>
    %c0_6 = arith.constant 0 : index
    %c0_7 = arith.constant 0 : index
    %8 = vector.load %arg9[%c0_6, %c0_7] : memref<16x16xf32, #tpu.memory_space<vmem>>, vector<16x16xf32>
    tpu.vector_store %arg9[%c0_6, %c0_7], %7 {strides = array<i32>} : memref<16x16xf32, #tpu.memory_space<vmem>>, vector<16x16xf32>,
    %c0_i32_8 = arith.constant 0 : i32
    %9 = arith.cmpi eq, %arg1, %c0_i32_8 : i32
    %10 = arith.extui %9 : i1 to i32
    %c0_i32_9 = arith.constant 0 : i32
    %11 = arith.cmpi ne, %10, %c0_i32_9 : i32
    scf.if %11 {
      %c0_10 = arith.constant 0 : index
      %c0_11 = arith.constant 0 : index
      %12 = vector.load %arg9[%c0_10, %c0_11] : memref<16x16xf32, #tpu.memory_space<vmem>>, vector<16x16xf32>
      %c0_12 = arith.constant 0 : index
      %c0_13 = arith.constant 0 : index
      %13 = vector.load %arg4[%c0_12, %c0_13] : memref<1x16xbf16, #tpu.memory_space<vmem>>, vector<1x16xbf16>
      %14 = arith.extf %13 : vector<1x16xbf16> to vector<1x16xf32>
      %15 = vector.broadcast %14 : vector<1x16xf32> to vector<16x16xf32>
      %16 = arith.addf %12, %15 : vector<16x16xf32>
      %c0_14 = arith.constant 0 : index
      %c0_15 = arith.constant 0 : index
      %17 = vector.load %arg5[%c0_14, %c0_15] : memref<16x16xbf16, #tpu.memory_space<vmem>>, vector<16x16xbf16>
      %18 = arith.extf %17 : vector<16x16xbf16> to vector<16x16xf32>
      %19 = arith.addf %16, %18 : vector<16x16xf32>
      %cst_16 = arith.constant dense<0.000000e+00> : vector<16xf32>
      %20 = vector.multi_reduction <add>, %19, %cst_16 [1] : vector<16x16xf32> to vector<16xf32>
      %21 = vector.shape_cast %20 : vector<16xf32> to vector<16x1xf32>
      %cst_17 = arith.constant 1.600000e+01 : f32
      %22 = vector.broadcast %cst_17 : f32 to vector<16x1xf32>
      %23 = arith.divf %21, %22 : vector<16x1xf32>
      %24 = vector.broadcast %23 : vector<16x1xf32> to vector<16x16xf32>
      %25 = arith.subf %19, %24 : vector<16x16xf32>
      %26 = arith.mulf %25, %25 : vector<16x16xf32>
      %cst_18 = arith.constant dense<0.000000e+00> : vector<16xf32>
      %27 = vector.multi_reduction <add>, %26, %cst_18 [1] : vector<16x16xf32> to vector<16xf32>
      %28 = vector.shape_cast %27 : vector<16xf32> to vector<16x1xf32>
      %cst_19 = arith.constant 1.600000e+01 : f32
      %29 = vector.broadcast %cst_19 : f32 to vector<16x1xf32>
      %30 = arith.divf %28, %29 : vector<16x1xf32>
      %31 = vector.broadcast %23 : vector<16x1xf32> to vector<16x16xf32>
      %32 = arith.subf %19, %31 : vector<16x16xf32>
      %cst_20 = arith.constant 9.99999996E-13 : f32
      %33 = vector.broadcast %cst_20 : f32 to vector<16x1xf32>
      %34 = arith.addf %30, %33 : vector<16x1xf32>
      %35 = math.rsqrt %34 : vector<16x1xf32>
      %36 = vector.broadcast %35 : vector<16x1xf32> to vector<16x16xf32>
      %37 = arith.mulf %32, %36 : vector<16x16xf32>
      %c0_21 = arith.constant 0 : index
      %c0_22 = arith.constant 0 : index
      %38 = vector.load %arg6[%c0_21, %c0_22] : memref<1x16xbf16, #tpu.memory_space<vmem>>, vector<1x16xbf16>
      %39 = arith.extf %38 : vector<1x16xbf16> to vector<1x16xf32>
      %40 = vector.broadcast %39 : vector<1x16xf32> to vector<16x16xf32>
      %41 = arith.mulf %37, %40 : vector<16x16xf32>
      %c0_23 = arith.constant 0 : index
      %c0_24 = arith.constant 0 : index
      %42 = vector.load %arg7[%c0_23, %c0_24] : memref<1x16xbf16, #tpu.memory_space<vmem>>, vector<1x16xbf16>
      %43 = arith.extf %42 : vector<1x16xbf16> to vector<1x16xf32>
      %44 = vector.broadcast %43 : vector<1x16xf32> to vector<16x16xf32>
      %45 = arith.addf %41, %44 : vector<16x16xf32>
      %46 = arith.truncf %45 : vector<16x16xf32> to vector<16x16xbf16>
      %c0_25 = arith.constant 0 : index
      %c0_26 = arith.constant 0 : index
      %47 = vector.load %arg8[%c0_25, %c0_26] : memref<16x16xbf16, #tpu.memory_space<vmem>>, vector<16x16xbf16>
      tpu.vector_store %arg8[%c0_25, %c0_26], %46 {strides = array<i32>} : memref<16x16xbf16, #tpu.memory_space<vmem>>, vector<16x16xbf16>,
    } else {
    }
    return
  }
  func.func @transform_0(%arg0: i32, %arg1: i32) -> (i32, i32) {
    %c0_i32 = arith.constant 0 : i32
    return %arg0, %arg1 : i32, i32
  }
  func.func @transform_1(%arg0: i32, %arg1: i32) -> (i32, i32) {
    %c0_i32 = arith.constant 0 : i32
    %c0_i32_0 = arith.constant 0 : i32
    return %arg1, %c0_i32 : i32, i32
  }
  func.func @transform_2(%arg0: i32, %arg1: i32) -> (i32, i32) {
    %c0_i32 = arith.constant 0 : i32
    %c0_i32_0 = arith.constant 0 : i32
    %c0_i32_1 = arith.constant 0 : i32
    return %c0_i32, %c0_i32_0 : i32, i32
  }
  func.func @transform_3(%arg0: i32, %arg1: i32) -> (i32, i32) {
    %c0_i32 = arith.constant 0 : i32
    %c0_i32_0 = arith.constant 0 : i32
    return %arg0, %c0_i32 : i32, i32
  }
  func.func @transform_4(%arg0: i32, %arg1: i32) -> (i32, i32) {
    %c0_i32 = arith.constant 0 : i32
    %c0_i32_0 = arith.constant 0 : i32
    %c0_i32_1 = arith.constant 0 : i32
    return %c0_i32, %c0_i32_0 : i32, i32
  }
  func.func @transform_5(%arg0: i32, %arg1: i32) -> (i32, i32) {
    %c0_i32 = arith.constant 0 : i32
    %c0_i32_0 = arith.constant 0 : i32
    %c0_i32_1 = arith.constant 0 : i32
    return %c0_i32, %c0_i32_0 : i32, i32
  }
  func.func @transform_6(%arg0: i32, %arg1: i32) -> (i32, i32) {
    %c0_i32 = arith.constant 0 : i32
    %c0_i32_0 = arith.constant 0 : i32
    return %arg0, %c0_i32 : i32, i32
  }
}

module attributes {stable_mosaic.version = 11 : i64} {
  func.func @_matmul_kernel(%arg0: i32, %arg1: i32, %arg2: i32, %arg3: memref<2x16xbf16, #tpu.memory_space<vmem>>, %arg4: memref<16x32xbf16, #tpu.memory_space<vmem>>, %arg5: memref<1x32xbf16, #tpu.memory_space<vmem>>, %arg6: memref<2x32xbf16, #tpu.memory_space<vmem>>, %arg7: memref<2x32xbf16, #tpu.memory_space<vmem>>, %arg8: memref<2x32xf32, #tpu.memory_space<vmem>>) attributes {dimension_semantics = [#tpu.dimension_semantics<parallel>, #tpu.dimension_semantics<parallel>, #tpu.dimension_semantics<arbitrary>], iteration_bounds = array<i64: 1, 1, 1>, scalar_prefetch = 0 : i64, scratch_operands = 1 : i64, tpu.core_type = #tpu.core_type<tc>, window_params = [{transform_indices = @transform_0, window_bounds = array<i64: 2, 16>}, {transform_indices = @transform_1, window_bounds = array<i64: 16, 32>}, {transform_indices = @transform_2, window_bounds = array<i64: 1, 32>}, {transform_indices = @transform_3, window_bounds = array<i64: 2, 32>}, {transform_indices = @transform_4, window_bounds = array<i64: 2, 32>}]} {
    %c0_i32 = arith.constant 0 : i32
    %0 = arith.cmpi eq, %arg2, %c0_i32 : i32
    %1 = arith.extui %0 : i1 to i32
    %c0_i32_0 = arith.constant 0 : i32
    %2 = arith.cmpi ne, %1, %c0_i32_0 : i32
    scf.if %2 {
      %cst_10 = arith.constant 0.000000e+00 : f32
      %12 = vector.broadcast %cst_10 : f32 to vector<2x32xf32>
      %c0_11 = arith.constant 0 : index
      %c0_12 = arith.constant 0 : index
      %13 = vector.load %arg8[%c0_11, %c0_12] : memref<2x32xf32, #tpu.memory_space<vmem>>, vector<2x32xf32>
      tpu.vector_store %arg8[%c0_11, %c0_12], %12 {strides = array<i32>} : memref<2x32xf32, #tpu.memory_space<vmem>>, vector<2x32xf32>,
    } else {
    }
    %c0 = arith.constant 0 : index
    %c0_1 = arith.constant 0 : index
    %3 = vector.load %arg8[%c0, %c0_1] : memref<2x32xf32, #tpu.memory_space<vmem>>, vector<2x32xf32>
    %c0_2 = arith.constant 0 : index
    %c0_3 = arith.constant 0 : index
    %4 = vector.load %arg3[%c0_2, %c0_3] : memref<2x16xbf16, #tpu.memory_space<vmem>>, vector<2x16xbf16>
    %c0_4 = arith.constant 0 : index
    %c0_5 = arith.constant 0 : index
    %5 = vector.load %arg4[%c0_4, %c0_5] : memref<16x32xbf16, #tpu.memory_space<vmem>>, vector<16x32xbf16>
    %cst = arith.constant dense<0.000000e+00> : vector<2x32xf32>
    %6 = tpu.matmul %4, %5, %cst {dimension_numbers = #tpu.dot_dimension_numbers<[1], [0], [0], [1], [0, 0, 1, 1], [], []>} : vector<2x16xbf16>, vector<16x32xbf16>, vector<2x32xf32> -> vector<2x32xf32>
    %7 = arith.addf %3, %6 : vector<2x32xf32>
    %c0_6 = arith.constant 0 : index
    %c0_7 = arith.constant 0 : index
    %8 = vector.load %arg8[%c0_6, %c0_7] : memref<2x32xf32, #tpu.memory_space<vmem>>, vector<2x32xf32>
    tpu.vector_store %arg8[%c0_6, %c0_7], %7 {strides = array<i32>} : memref<2x32xf32, #tpu.memory_space<vmem>>, vector<2x32xf32>,
    %c0_i32_8 = arith.constant 0 : i32
    %9 = arith.cmpi eq, %arg2, %c0_i32_8 : i32
    %10 = arith.extui %9 : i1 to i32
    %c0_i32_9 = arith.constant 0 : i32
    %11 = arith.cmpi ne, %10, %c0_i32_9 : i32
    scf.if %11 {
      %c0_10 = arith.constant 0 : index
      %c0_11 = arith.constant 0 : index
      %12 = vector.load %arg8[%c0_10, %c0_11] : memref<2x32xf32, #tpu.memory_space<vmem>>, vector<2x32xf32>
      %c0_12 = arith.constant 0 : index
      %c0_13 = arith.constant 0 : index
      %13 = vector.load %arg5[%c0_12, %c0_13] : memref<1x32xbf16, #tpu.memory_space<vmem>>, vector<1x32xbf16>
      %14 = arith.extf %13 : vector<1x32xbf16> to vector<1x32xf32>
      %15 = vector.broadcast %14 : vector<1x32xf32> to vector<2x32xf32>
      %16 = arith.addf %12, %15 : vector<2x32xf32>
      %c0_14 = arith.constant 0 : index
      %c0_15 = arith.constant 0 : index
      %17 = vector.load %arg6[%c0_14, %c0_15] : memref<2x32xbf16, #tpu.memory_space<vmem>>, vector<2x32xbf16>
      %18 = arith.extf %17 : vector<2x32xbf16> to vector<2x32xf32>
      %19 = arith.addf %16, %18 : vector<2x32xf32>
      %20 = arith.truncf %19 : vector<2x32xf32> to vector<2x32xbf16>
      %c0_16 = arith.constant 0 : index
      %c0_17 = arith.constant 0 : index
      %21 = vector.load %arg7[%c0_16, %c0_17] : memref<2x32xbf16, #tpu.memory_space<vmem>>, vector<2x32xbf16>
      tpu.vector_store %arg7[%c0_16, %c0_17], %20 {strides = array<i32>} : memref<2x32xbf16, #tpu.memory_space<vmem>>, vector<2x32xbf16>,
    } else {
    }
    return
  }
  func.func @transform_0(%arg0: i32, %arg1: i32, %arg2: i32) -> (i32, i32) {
    %c0_i32 = arith.constant 0 : i32
    return %arg0, %arg2 : i32, i32
  }
  func.func @transform_1(%arg0: i32, %arg1: i32, %arg2: i32) -> (i32, i32) {
    %c0_i32 = arith.constant 0 : i32
    return %arg2, %arg1 : i32, i32
  }
  func.func @transform_2(%arg0: i32, %arg1: i32, %arg2: i32) -> (i32, i32) {
    %c0_i32 = arith.constant 0 : i32
    %c0_i32_0 = arith.constant 0 : i32
    return %c0_i32, %arg1 : i32, i32
  }
  func.func @transform_3(%arg0: i32, %arg1: i32, %arg2: i32) -> (i32, i32) {
    %c0_i32 = arith.constant 0 : i32
    return %arg0, %arg1 : i32, i32
  }
  func.func @transform_4(%arg0: i32, %arg1: i32, %arg2: i32) -> (i32, i32) {
    %c0_i32 = arith.constant 0 : i32
    return %arg0, %arg1 : i32, i32
  }
}

module attributes {stable_mosaic.version = 11 : i64} {
  func.func @_matmul_kernel(%arg0: i32, %arg1: i32, %arg2: i32, %arg3: memref<2x32xbf16, #tpu.memory_space<vmem>>, %arg4: memref<32x32xbf16, #tpu.memory_space<vmem>>, %arg5: memref<1x32xbf16, #tpu.memory_space<vmem>>, %arg6: memref<2x32xbf16, #tpu.memory_space<vmem>>, %arg7: memref<2x32xf32, #tpu.memory_space<vmem>>) attributes {dimension_semantics = [#tpu.dimension_semantics<parallel>, #tpu.dimension_semantics<parallel>, #tpu.dimension_semantics<arbitrary>], iteration_bounds = array<i64: 1, 1, 1>, scalar_prefetch = 0 : i64, scratch_operands = 1 : i64, tpu.core_type = #tpu.core_type<tc>, window_params = [{transform_indices = @transform_0, window_bounds = array<i64: 2, 32>}, {transform_indices = @transform_1, window_bounds = array<i64: 32, 32>}, {transform_indices = @transform_2, window_bounds = array<i64: 1, 32>}, {transform_indices = @transform_3, window_bounds = array<i64: 2, 32>}]} {
    %c0_i32 = arith.constant 0 : i32
    %0 = arith.cmpi eq, %arg2, %c0_i32 : i32
    %1 = arith.extui %0 : i1 to i32
    %c0_i32_0 = arith.constant 0 : i32
    %2 = arith.cmpi ne, %1, %c0_i32_0 : i32
    scf.if %2 {
      %cst_10 = arith.constant 0.000000e+00 : f32
      %12 = vector.broadcast %cst_10 : f32 to vector<2x32xf32>
      %c0_11 = arith.constant 0 : index
      %c0_12 = arith.constant 0 : index
      %13 = vector.load %arg7[%c0_11, %c0_12] : memref<2x32xf32, #tpu.memory_space<vmem>>, vector<2x32xf32>
      tpu.vector_store %arg7[%c0_11, %c0_12], %12 {strides = array<i32>} : memref<2x32xf32, #tpu.memory_space<vmem>>, vector<2x32xf32>,
    } else {
    }
    %c0 = arith.constant 0 : index
    %c0_1 = arith.constant 0 : index
    %3 = vector.load %arg7[%c0, %c0_1] : memref<2x32xf32, #tpu.memory_space<vmem>>, vector<2x32xf32>
    %c0_2 = arith.constant 0 : index
    %c0_3 = arith.constant 0 : index
    %4 = vector.load %arg3[%c0_2, %c0_3] : memref<2x32xbf16, #tpu.memory_space<vmem>>, vector<2x32xbf16>
    %c0_4 = arith.constant 0 : index
    %c0_5 = arith.constant 0 : index
    %5 = vector.load %arg4[%c0_4, %c0_5] : memref<32x32xbf16, #tpu.memory_space<vmem>>, vector<32x32xbf16>
    %cst = arith.constant dense<0.000000e+00> : vector<2x32xf32>
    %6 = tpu.matmul %4, %5, %cst {dimension_numbers = #tpu.dot_dimension_numbers<[1], [0], [0], [1], [0, 0, 1, 1], [], []>} : vector<2x32xbf16>, vector<32x32xbf16>, vector<2x32xf32> -> vector<2x32xf32>
    %7 = arith.addf %3, %6 : vector<2x32xf32>
    %c0_6 = arith.constant 0 : index
    %c0_7 = arith.constant 0 : index
    %8 = vector.load %arg7[%c0_6, %c0_7] : memref<2x32xf32, #tpu.memory_space<vmem>>, vector<2x32xf32>
    tpu.vector_store %arg7[%c0_6, %c0_7], %7 {strides = array<i32>} : memref<2x32xf32, #tpu.memory_space<vmem>>, vector<2x32xf32>,
    %c0_i32_8 = arith.constant 0 : i32
    %9 = arith.cmpi eq, %arg2, %c0_i32_8 : i32
    %10 = arith.extui %9 : i1 to i32
    %c0_i32_9 = arith.constant 0 : i32
    %11 = arith.cmpi ne, %10, %c0_i32_9 : i32
    scf.if %11 {
      %c0_10 = arith.constant 0 : index
      %c0_11 = arith.constant 0 : index
      %12 = vector.load %arg7[%c0_10, %c0_11] : memref<2x32xf32, #tpu.memory_space<vmem>>, vector<2x32xf32>
      %c0_12 = arith.constant 0 : index
      %c0_13 = arith.constant 0 : index
      %13 = vector.load %arg5[%c0_12, %c0_13] : memref<1x32xbf16, #tpu.memory_space<vmem>>, vector<1x32xbf16>
      %14 = arith.extf %13 : vector<1x32xbf16> to vector<1x32xf32>
      %15 = vector.broadcast %14 : vector<1x32xf32> to vector<2x32xf32>
      %16 = arith.addf %12, %15 : vector<2x32xf32>
      %17 = math.tanh %16 : vector<2x32xf32>
      %18 = arith.truncf %17 : vector<2x32xf32> to vector<2x32xbf16>
      %c0_14 = arith.constant 0 : index
      %c0_15 = arith.constant 0 : index
      %19 = vector.load %arg6[%c0_14, %c0_15] : memref<2x32xbf16, #tpu.memory_space<vmem>>, vector<2x32xbf16>
      tpu.vector_store %arg6[%c0_14, %c0_15], %18 {strides = array<i32>} : memref<2x32xbf16, #tpu.memory_space<vmem>>, vector<2x32xbf16>,
    } else {
    }
    return
  }
  func.func @transform_0(%arg0: i32, %arg1: i32, %arg2: i32) -> (i32, i32) {
    %c0_i32 = arith.constant 0 : i32
    return %arg0, %arg2 : i32, i32
  }
  func.func @transform_1(%arg0: i32, %arg1: i32, %arg2: i32) -> (i32, i32) {
    %c0_i32 = arith.constant 0 : i32
    return %arg2, %arg1 : i32, i32
  }
  func.func @transform_2(%arg0: i32, %arg1: i32, %arg2: i32) -> (i32, i32) {
    %c0_i32 = arith.constant 0 : i32
    %c0_i32_0 = arith.constant 0 : i32
    return %c0_i32, %arg1 : i32, i32
  }
  func.func @transform_3(%arg0: i32, %arg1: i32, %arg2: i32) -> (i32, i32) {
    %c0_i32 = arith.constant 0 : i32
    return %arg0, %arg1 : i32, i32
  }
}

</mosaic_0001>

<bundles_post_ra>
// kernel: _lambda_.25
= control target key start
LH: loop header
LB: loop body
LE: loop exit
PB: predicated region body
PF: predicated region fallthrough
CT: control target
= control target key end

     0   :  { %vm28_vm0 = vcmask 261120   ;;  %v214_v0 = vmov 0.0   ;;  %vm215_vm1 = vmmov 0   ;;  %v112_v4 = vlaneseq  ;;  %s287_s1 = inlined_call_operand.vmem [shape: bf16[32,32], index: 1, kind: input, shape index: {}]   ;;  %s288_s0 = inlined_call_operand.vmem [shape: bf16[16,32], index: 0, kind: input, shape index: {}]   ;;  %s289_s2 = inlined_call_operand.vmem [shape: bf16[1,32], index: 2, kind: input, shape index: {}]   ;;  %s290_s3 = inlined_call_operand.vmem [shape: bf16[16,32], index: 3, kind: input, shape index: {}]   ;;  %s291_s4 = inlined_call_operand.vmem [shape: bf16[1,32], index: 4, kind: input, shape index: {}]   ;;  %s292_s5 = inlined_call_operand.vmem [shape: bf16[1,32], index: 5, kind: input, shape index: {}]   ;;  %s293_s6 = inlined_call_operand.vmem [shape: bf16[16,32], index: 6, kind: output, shape index: {}]  }
   0x1   :  { %197 = vmatprep.subr.bf16.mxu0 %v214_v0  ;;  %v207_v1 = vld [vmem:[%s287_s1] sm:$0xff]   ;;  %201 = vmatprep.mubr.msk.bf16.mxu0 %vm215_vm1, %v214_v0  ;;  %29 = vst.msk [vmem:[#allocation2] sm:$0xff] %vm28_vm0, %v214_v0  ;;  %30 = vst.msk [vmem:[#allocation2 + $0x8] sm:$0xff] %vm28_vm0, %v214_v0  ;;  %v208_v2 = vld [vmem:[%s287_s1 + $0x8] sm:$0xff]   ;;  %vm175_vm2 = vcmask 257024  }
   0x2   :  { %198 = vmatpush3.bf16.msra.mxu0 %v207_v1  ;;  %v209_v3 = vld [vmem:[%s288_s0] sm:$0xff]   ;;  %v113_v6 = vshrl.u32 %v112_v4, 7 }
   0x3   :  { %199 = vmatprep.subr.bf16.mxu0 %v214_v0  ;;  %v110_v9 = vld [vmem:[%s289_s2] sm:$0x1] }
   0x4   :  { %v111_v15 = vunpack.c.l.bf16 %v110_v9  ;;  %v114_v16 = vsub.s32 0, %v113_v6  ;;  %v191_v17 = vld [vmem:[%s290_s3] sm:$0xff]  }
   0x5   :  { %v192_v19 = vunpack.c.l.bf16 %v191_v17  ;;  %v193_v22 = vunpack.c.h.bf16 %v191_v17  ;;  %v151_v44 = vld [vmem:[%s291_s4] sm:$0x1] }
   0x6   :  { %200 = vmatpush3.bf16.msra.mxu0 %v208_v2  ;;  %v115_v18 = vrot.slane %v111_v15, %v114_v16  ;;  %v159_v46 = vld [vmem:[%s292_s5] sm:$0x1]  ;;  %v152_v47 = vunpack.c.l.bf16 %v151_v44 }
   0x7   :  { %v160_v48 = vunpack.c.l.bf16 %v159_v46 }
   0x8   :  { %v31_v5 = vld [vmem:[#allocation2] sm:$0xff]  ;;  %v32_v8 = vld [vmem:[#allocation2 + $0x8] sm:$0xff]  ;;  %v156_v49 = vrot.slane %v152_v47, %v114_v16 }
   0x9   :  { %202 = vmatmul.mubr.msk.bf16.vlgmr.msra.gmra.mrb[0].mxu0 %vm28_vm0, %v209_v3  ;;  %v164_v51 = vrot.slane %v160_v48, %v114_v16 }
  0xdc   :  { %v94_v7 = vpop.f32.mrb[0].mxu0 }
  0xdd   :  { %v101_v10 = vadd.f32 %v94_v7, %v31_v5  ;;  %v203_v11 = vpop.f32.mrb[1].mxu0 }
  0xde   :  { %v97_v12 = vpop.f32.mrb[2].mxu0 }
  0xdf   :  { %103 = vst.msk [vmem:[#allocation2] sm:$0xff] %vm28_vm0, %v101_v10  ;;  %v102_v13 = vadd.f32 %v97_v12, %v32_v8  ;;  %v204_v14 = vpop.f32.mrb[3].mxu0 }
  0xe1   :  { %104 = vst.msk [vmem:[#allocation2 + $0x8] sm:$0xff] %vm28_vm0, %v102_v13 }
  0xe6   :  { %v108_v20 = vld [vmem:[#allocation2] sm:$0xff] }
  0xe7   :  { %v116_v21 = vadd.f32 %v115_v18, %v108_v20 }
  0xe8   :  { %v109_v23 = vld [vmem:[#allocation2 + $0x8] sm:$0xff] }
  0xe9   :  { %v122_v24 = vadd.f32 %v192_v19, %v116_v21  ;;  %v117_v25 = vadd.f32 %v115_v18, %v109_v23 }
  0xeb   :  { %v124_v26 = vsel %vm28_vm0, %v122_v24, 0.0  ;;  %v123_v27 = vadd.f32 %v193_v22, %v117_v25 }
  0xec   :  { %125 = vadd.xlane.f32.xlu0 %v124_v26 }
  0xed   :  { %v127_v28 = vsel %vm28_vm0, %v123_v27, 0.0 }
  0xf0   :  { %128 = vadd.xlane.f32.xlu0 %v127_v28 }
 0x179   :  { %v126_v29 = vpop.xlane.xlu0 %125 }
 0x17a   :  { %v131_v30 = vmul.f32 0.03125, %v126_v29 }
 0x17c   :  { %v133_v31 = vsub.f32 %v122_v24, %v131_v30 }
 0x17d   :  { %v129_v32 = vpop.xlane.xlu0 %128 }
 0x17e   :  { %v132_v33 = vmul.f32 0.03125, %v129_v32  ;;  %v135_v34 = vmul.f32 %v133_v31, %v133_v31 }
 0x180   :  { %v134_v35 = vsub.f32 %v123_v27, %v132_v33  ;;  %v137_v36 = vsel %vm28_vm0, %v135_v34, 0.0 }
 0x181   :  { %138 = vadd.xlane.f32.xlu1 %v137_v36 }
 0x182   :  { %v136_v37 = vmul.f32 %v134_v35, %v134_v35 }
 0x184   :  { %v140_v38 = vsel %vm28_vm0, %v136_v37, 0.0 }
 0x185   :  { %141 = vadd.xlane.f32.xlu1 %v140_v38 }
 0x20e   :  { %v139_v39 = vpop.xlane.xlu1 %138 }
 0x20f   :  { %v143_v40 = vmul.f32 0.03125, %v139_v39 }
 0x211   :  { %v145_v41 = vadd.f32 1e-12, %v143_v40 }
 0x212   :  { %v142_v42 = vpop.xlane.xlu1 %141 }
 0x213   :  { %210 = vrsqrt.f32 %v145_v41  ;;  %v144_v43 = vmul.f32 0.03125, %v142_v42 }
 0x215   :  { %v146_v45 = vadd.f32 1e-12, %v144_v43 }
 0x217   :  { %212 = vrsqrt.f32 %v146_v45 }
 0x21d   :  { %v211_v50 = vpop.eup %210 }
 0x21e   :  { %v149_v52 = vmul.f32 %v211_v50, %v133_v31 }
 0x220   :  { %v157_v53 = vmul.f32 %v156_v49, %v149_v52 }
 0x221   :  { %v213_v54 = vpop.eup %212 }
 0x222   :  { %v165_v55 = vadd.f32 %v164_v51, %v157_v53  ;;  %v150_v56 = vmul.f32 %v213_v54, %v134_v35 }
 0x224   :  { %v188_v57 = vpack.c.bf16 %v165_v55, %v165_v55  ;;  %v158_v58 = vmul.f32 %v156_v49, %v150_v56 }
 0x226   :  { %176 = vst.msk [vmem:[%s293_s6] sm:$0xf] %vm175_vm2, %v188_v57  ;;  %v166_v59 = vadd.f32 %v164_v51, %v158_v58 }
 0x228   :  { %v189_v60 = vpack.c.bf16 %v166_v59, %v166_v59 }
 0x22a   :  { %177 = vst.msk [vmem:[%s293_s6 + $0x4] sm:$0xf] %vm175_vm2, %v189_v60 }

// kernel: _lambda_.22
= control target key start
LH: loop header
LB: loop body
LE: loop exit
PB: predicated region body
PF: predicated region fallthrough
CT: control target
= control target key end

     0   :  { %vm27_vm0 = vcmask 261120   ;;  %v57_v22 = vlaneseq  ;;  %vm79_vm1 = vcmask 257024   ;;  %s149_s0 = inlined_call_operand.vmem [shape: bf16[16,32], index: 0, kind: input, shape index: {}]   ;;  %s150_s1 = inlined_call_operand.vmem [shape: bf16[16,32], index: 1, kind: input, shape index: {}]   ;;  %s151_s2 = inlined_call_operand.vmem [shape: bf16[1,32], index: 2, kind: input, shape index: {}]   ;;  %s152_s3 = inlined_call_operand.vmem [shape: bf16[1,32], index: 3, kind: input, shape index: {}]   ;;  %s153_s4 = inlined_call_operand.vmem [shape: bf16[16,32], index: 4, kind: output, shape index: {}]  }
   0x1   :  { %v91_v0 = vld [vmem:[%s149_s0] sm:$0xff]  }
   0x2   :  { %v95_v1 = vld [vmem:[%s150_s1] sm:$0xff]   ;;  %v92_v2 = vunpack.c.l.bf16 %v91_v0  ;;  %v93_v4 = vunpack.c.h.bf16 %v91_v0  ;;  %v58_v26 = vshrl.u32 %v57_v22, 7 }
   0x3   :  { %v96_v3 = vunpack.c.l.bf16 %v95_v1  ;;  %v97_v5 = vunpack.c.h.bf16 %v95_v1  ;;  %v55_v27 = vld [vmem:[%s151_s2] sm:$0x1] }
   0x4   :  { %v63_v29 = vld [vmem:[%s152_s3] sm:$0x1]  ;;  %v56_v30 = vunpack.c.l.bf16 %v55_v27  ;;  %v59_v31 = vsub.s32 0, %v58_v26 }
   0x5   :  { %v25_v6 = vadd.f32 %v96_v3, %v92_v2  ;;  %v26_v7 = vadd.f32 %v97_v5, %v93_v4  ;;  %v64_v32 = vunpack.c.l.bf16 %v63_v29 }
   0x6   :  { %v60_v33 = vrot.slane %v56_v30, %v59_v31 }
   0x7   :  { %v28_v8 = vsel %vm27_vm0, %v25_v6, 0.0  ;;  %v31_v9 = vsel %vm27_vm0, %v26_v7, 0.0  ;;  %v68_v35 = vrot.slane %v64_v32, %v59_v31 }
   0x8   :  { %29 = vadd.xlane.f32.xlu0 %v28_v8 }
   0xc   :  { %32 = vadd.xlane.f32.xlu0 %v31_v9 }
  0x95   :  { %v30_v10 = vpop.xlane.xlu0 %29 }
  0x96   :  { %v35_v11 = vmul.f32 0.03125, %v30_v10 }
  0x98   :  { %v37_v12 = vsub.f32 %v25_v6, %v35_v11 }
  0x99   :  { %v33_v13 = vpop.xlane.xlu0 %32 }
  0x9a   :  { %v36_v14 = vmul.f32 0.03125, %v33_v13  ;;  %v39_v15 = vmul.f32 %v37_v12, %v37_v12 }
  0x9c   :  { %v38_v16 = vsub.f32 %v26_v7, %v36_v14  ;;  %v41_v17 = vsel %vm27_vm0, %v39_v15, 0.0 }
  0x9d   :  { %42 = vadd.xlane.f32.xlu1 %v41_v17 }
  0x9e   :  { %v40_v18 = vmul.f32 %v38_v16, %v38_v16 }
  0xa0   :  { %v44_v19 = vsel %vm27_vm0, %v40_v18, 0.0 }
  0xa1   :  { %45 = vadd.xlane.f32.xlu1 %v44_v19 }
 0x12a   :  { %v43_v20 = vpop.xlane.xlu1 %42 }
 0x12b   :  { %v47_v21 = vmul.f32 0.03125, %v43_v20 }
 0x12d   :  { %v49_v23 = vadd.f32 1e-12, %v47_v21 }
 0x12e   :  { %v46_v24 = vpop.xlane.xlu1 %45 }
 0x12f   :  { %98 = vrsqrt.f32 %v49_v23  ;;  %v48_v25 = vmul.f32 0.03125, %v46_v24 }
 0x131   :  { %v50_v28 = vadd.f32 1e-12, %v48_v25 }
 0x133   :  { %100 = vrsqrt.f32 %v50_v28 }
 0x139   :  { %v99_v34 = vpop.eup %98 }
 0x13a   :  { %v53_v36 = vmul.f32 %v99_v34, %v37_v12 }
 0x13c   :  { %v61_v37 = vmul.f32 %v60_v33, %v53_v36 }
 0x13d   :  { %v101_v38 = vpop.eup %100 }
 0x13e   :  { %v69_v39 = vadd.f32 %v68_v35, %v61_v37  ;;  %v54_v40 = vmul.f32 %v101_v38, %v38_v16 }
 0x140   :  { %v88_v41 = vpack.c.bf16 %v69_v39, %v69_v39  ;;  %v62_v42 = vmul.f32 %v60_v33, %v54_v40 }
 0x142   :  { %80 = vst.msk [vmem:[%s153_s4] sm:$0xf] %vm79_vm1, %v88_v41  ;;  %v70_v43 = vadd.f32 %v68_v35, %v62_v42 }
 0x144   :  { %v89_v44 = vpack.c.bf16 %v70_v43, %v70_v43 }
 0x146   :  { %81 = vst.msk [vmem:[%s153_s4 + $0x4] sm:$0xf] %vm79_vm1, %v89_v44 }

// kernel: _lambda_.26
= control target key start
LH: loop header
LB: loop body
LE: loop exit
PB: predicated region body
PF: predicated region fallthrough
CT: control target
= control target key end

     0   :  { %vm19_vm0 = vcmask 523264   ;;  %v171_v0 = vmov 0.0   ;;  %vm172_vm1 = vmmov 0   ;;  %vm47_vm2 = vcmask 261120   ;;  %s215_s1 = inlined_call_operand.vmem [shape: bf16[32,64], index: 1, kind: input, shape index: {}]   ;;  %s216_s0 = inlined_call_operand.vmem [shape: bf16[16,32], index: 0, kind: input, shape index: {}]   ;;  %s217_s2 = inlined_call_operand.vmem [shape: bf16[1,64], index: 2, kind: input, shape index: {}]   ;;  %s218_s3 = inlined_call_operand.vmem [shape: bf16[16,64], index: 3, kind: output, shape index: {}]  }
   0x1   :  { %154 = vmatprep.subr.bf16.mxu0 %v171_v0  ;;  %v164_v1 = vld [vmem:[%s215_s1] sm:$0xff]   ;;  %158 = vmatprep.mubr.msk.bf16.mxu0 %vm172_vm1, %v171_v0  ;;  %20 = vst.msk [vmem:[#allocation2] sm:$0xff] %vm19_vm0, %v171_v0  ;;  %21 = vst.msk [vmem:[#allocation2 + $0x8] sm:$0xff] %vm19_vm0, %v171_v0  ;;  %v165_v2 = vld [vmem:[%s215_s1 + $0x8] sm:$0xff]   ;;  %v104_v4 = vlaneseq  ;;  %vm136_vm3 = vcmask 519168  }
   0x2   :  { %155 = vmatpush3.bf16.msra.mxu0 %v164_v1  ;;  %v166_v3 = vld [vmem:[%s216_s0] sm:$0xff]  }
   0x3   :  { %156 = vmatprep.subr.bf16.mxu0 %v171_v0  ;;  %v105_v6 = vshrl.u32 %v104_v4, 7  ;;  %v102_v8 = vld [vmem:[%s217_s2] sm:$0x1] }
   0x4   :  { %v103_v13 = vunpack.c.l.bf16 %v102_v8 }
   0x5   :  { %v106_v14 = vsub.s32 0, %v105_v6 }
   0x6   :  { %157 = vmatpush3.bf16.msra.mxu0 %v165_v2 }
   0x7   :  { %v107_v17 = vrot.slane %v103_v13, %v106_v14 }
   0x8   :  { %v22_v5 = vld [vmem:[#allocation2] sm:$0xff]  ;;  %v23_v9 = vld [vmem:[#allocation2 + $0x8] sm:$0xff] }
   0x9   :  { %159 = vmatmul.mubr.msk.bf16.vlgmr.msra.gmra.mrb[0].mxu0 %vm47_vm2, %v166_v3 }
  0xdc   :  { %v85_v7 = vpop.f32.mrb[0].mxu0 }
  0xdd   :  { %v92_v10 = vadd.f32 %v85_v7, %v22_v5  ;;  %v160_v11 = vpop.f32.mrb[1].mxu0 }
  0xde   :  { %v88_v12 = vpop.f32.mrb[2].mxu0 }
  0xdf   :  { %95 = vst.msk [vmem:[#allocation2] sm:$0xff] %vm19_vm0, %v92_v10  ;;  %v93_v15 = vadd.f32 %v88_v12, %v23_v9  ;;  %v161_v16 = vpop.f32.mrb[3].mxu0 }
  0xe1   :  { %96 = vst.msk [vmem:[#allocation2 + $0x8] sm:$0xff] %vm19_vm0, %v93_v15 }
  0xe6   :  { %v100_v18 = vld [vmem:[#allocation2] sm:$0xff] }
  0xe7   :  { %v108_v19 = vadd.f32 %v107_v17, %v100_v18 }
  0xe8   :  { %v101_v20 = vld [vmem:[#allocation2 + $0x8] sm:$0xff] }
  0xe9   :  { %v112_v21 = vmul.f32 0.044715, %v108_v19  ;;  %v109_v22 = vadd.f32 %v107_v17, %v101_v20  ;;  %v110_v33 = vmul.f32 0.5, %v108_v19 }
  0xeb   :  { %v114_v23 = vmul.f32 %v112_v21, %v108_v19  ;;  %v113_v24 = vmul.f32 0.044715, %v109_v22  ;;  %v111_v37 = vmul.f32 0.5, %v109_v22 }
  0xed   :  { %v116_v25 = vmul.f32 %v114_v23, %v108_v19  ;;  %v115_v26 = vmul.f32 %v113_v24, %v109_v22 }
  0xef   :  { %v118_v27 = vadd.f32 %v116_v25, %v108_v19  ;;  %v117_v28 = vmul.f32 %v115_v26, %v109_v22 }
  0xf1   :  { %v120_v29 = vmul.f32 0.7978846, %v118_v27  ;;  %v119_v30 = vadd.f32 %v117_v28, %v109_v22 }
  0xf3   :  { %167 = vtanh.f32 %v120_v29  ;;  %v121_v31 = vmul.f32 0.7978846, %v119_v30 }
  0xf5   :  { %169 = vtanh.f32 %v121_v31 }
  0xfd   :  { %v168_v32 = vpop.eup %167 }
  0xfe   :  { %v124_v34 = vadd.f32 1.0, %v168_v32 }
  0xff   :  { %v170_v35 = vpop.eup %169 }
 0x100   :  { %v126_v36 = vmul.f32 %v124_v34, %v110_v33  ;;  %v125_v38 = vadd.f32 1.0, %v170_v35 }
 0x102   :  { %v149_v39 = vpack.c.bf16 %v126_v36, %v126_v36  ;;  %v127_v40 = vmul.f32 %v125_v38, %v111_v37 }
 0x104   :  { %137 = vst.msk [vmem:[%s218_s3] sm:$0xf] %vm136_vm3, %v149_v39  ;;  %v150_v41 = vpack.c.bf16 %v127_v40, %v127_v40 }
 0x106   :  { %138 = vst.msk [vmem:[%s218_s3 + $0x4] sm:$0xf] %vm136_vm3, %v150_v41 }

// kernel: _lambda_.24
= control target key start
LH: loop header
LB: loop body
LE: loop exit
PB: predicated region body
PF: predicated region fallthrough
CT: control target
= control target key end

     0   :  { %s1137_s15 = smov 0   ;;  %s1139_s16 = smov 0   ;;  %s1265_s0 = inlined_call_operand.vmem [shape: bf16[2,8,32], index: 0, kind: input, shape index: {}]   ;;  %s1266_s1 = inlined_call_operand.vmem [shape: bf16[32,96], index: 1, kind: input, shape index: {}]   ;;  %s1267_s2 = inlined_call_operand.vmem [shape: bf16[1,96], index: 2, kind: input, shape index: {}]   ;;  %s1268_s3 = inlined_call_operand.vmem [shape: f32[2,1,8], index: 3, kind: input, shape index: {}]   ;;  %s1269_s4 = inlined_call_operand.vmem [shape: bf16[2,8,32], index: 4, kind: output, shape index: {}]  }
   0x1   :  { %s1141_s17 = smov 0  }
   0x2 LB: > { %s26_s18 = sadd.s32 1, %s1090_s16  ;;  %p916_p0 = scmp.ge.s32.totalorder %s1094_s17, 1  ;;  %s1094_s17 = sphi %s1141_s17, %s14_s17   ;;  %s1090_s16 = sphi %s1139_s16, %s1271_s16   ;;  %s1086_s15 = sphi %s1137_s15, %s1270_s15  }
   0x3   : > { %p28_p1 = scmp.ge.s32.totalorder %s26_s18, 2  ;;  %p197_p2 = scmp.lt.s32.totalorder %s1094_s17, 3 }
   0x5   : > { %s1273_s18 = smov (%p28_p1, %s26_s18), 0  ;;  %p198_p3 = pnand %p916_p0, %p197_p2 }
   0x6   : > { %v1054_v0 = vld [vmem:[%s1266_s1] sm:$0xff] (!%p198_p3)   ;;  %v1096_v1 = vmov (!%p198_p3), 0.0   ;;  %v1055_v2 = vld [vmem:[%s1266_s1 + $0x8] sm:$0xff] (!%p198_p3)   ;;  %vm1097_vm0 = vmmov (!%p198_p3), 0   ;;  %p232_p4 = scmp.lt.s32.totalorder (!%p198_p3), %s1086_s15, 1  ;;  %vm257_vm1 = vcmask (!%p198_p3), 785408   ;;  %v330_v4 = vlaneseq (!%p198_p3) }
   0x7   : > { %201 = sbr.rel (%p198_p3) target bundleno = 1291 (0x50b), region = 36  ;;  %958 = vmatprep.subr.bf16.mxu0 (!%p198_p3), %v1096_v1  ;;  %966 = vmatprep.subr.bf16.mxu1 (!%p198_p3), %v1096_v1  ;;  %258 = vst.msk [vmem:[#allocation2] sm:$0xff] (!%p198_p3), %vm257_vm1, %v1096_v1  ;;  %vm277_vm2 = vcmask (!%p198_p3), 261120   ;;  %v328_v8 = vld [vmem:[%s1267_s2] sm:$0x1] (!%p198_p3)  ;;  %s1098_s29 = smov (!%p198_p3), 120  }
   0x8   : > { %959 = vmatpush3.bf16.msra.mxu0 (!%p198_p3), %v1054_v0  ;;  %962 = vmatprep.mubr.msk.bf16.mxu0 (!%p198_p3), %vm1097_vm0, %v1096_v1  ;;  %v331_v6 = vshrl.u32 (!%p198_p3), %v330_v4, 7  ;;  %v329_v12 = vunpack.c.l.bf16 (!%p198_p3), %v328_v8  ;;  %s1099_s30 = smov (!%p198_p3), 96   ;;  %s1100_s5 = smov (!%p198_p3), 80   ;;  %vm340_vm3 = vcmask (!%p198_p3), 64512   ;;  %vm412_vm4 = vcmask (!%p198_p3), 1043456  }
   0x9   : > { %960 = vmatprep.subr.bf16.mxu0 (!%p198_p3), %v1096_v1  ;;  %968 = vmatprep.mubr.msk.bf16.mxu1 (!%p198_p3), %vm1097_vm0, %v1096_v1  ;;  %s1101_s6 = smov (!%p198_p3), 88   ;;  %s1102_s7 = smov (!%p198_p3), 72   ;;  %vm457_vm5 = vcmask (!%p198_p3), 60416   ;;  %vm578_vm6 = vcmask (!%p198_p3), 126016   ;;  %vm699_vm7 = vcmask (!%p198_p3), 191616   ;;  %vm820_vm8 = vcmask (!%p198_p3), 257216  }
   0xa   : > { %v332_v13 = vsub.s32 (!%p198_p3), 0, %v331_v6  ;;  %s1103_s8 = smov (!%p198_p3), 112   ;;  %s1104_s9 = smov (!%p198_p3), 104  }
   0xb   : > { %s1105_s13 = smov (!%p198_p3), 56   ;;  %s1106_s14 = smov (!%p198_p3), 64  }
   0xc   : > { %961 = vmatpush3.bf16.msra.mxu0 (!%p198_p3), %v1055_v2  ;;  %v333_v15 = vrot.slane (!%p198_p3), %v329_v12, %v332_v13  ;;  %s1107_s19 = smov (!%p198_p3), 40   ;;  %s1108_s20 = smov (!%p198_p3), 48  }
   0xd   : > { %972 = vmatprep.subr.bf16.mxu0 (!%p198_p3), %v1096_v1  ;;  %s1109_s25 = smov (!%p198_p3), 8  }
   0xe   : > { %s1275_s15 = smov (!%p232_p4, %s1086_s15), 1  ;;  %v259_v5 = vld [vmem:[#allocation2] sm:$0xff] }
   0xf   : > { %s917_s23 = sshll.u32 %s1275_s15, 2  ;;  %s247_s12 = scalar_lea.vmem %s1268_s3, %s1275_s15 }
  0x10   : > { %s238_s26 = scalar_lea.vmem %s1265_s0, %s917_s23  ;;  %v923_v31 = vld [vmem:[%s247_s12] ss:$0 sm:$0xff]  ;;  %s1250_s24 = scalar_lea.vmem %s1269_s4, %s917_s23 }
  0x11   : > { %v260_v3 = vld [vmem:[%s238_s26] sm:$0xf]  ;;  %s1110_s15 = smov 16   ;;  %s1111_s23 = smov 24  }
  0x12   : > { %963 = vmatmul.mubr.msk.bf16.vlgmr.msra.gmra.mrb[0].mxu0 %vm277_vm2, %v260_v3 }
  0x13   : > { %974 = vmatprep.mubr.msk.bf16.mxu0 %vm1097_vm0, %v1096_v1 }
  0xe5   : > { %v315_v7 = vpop.f32.mrb[0].mxu0 }
  0xe6   : > { %v321_v9 = vadd.f32 %v315_v7, %v259_v5  ;;  %v964_v10 = vpop.f32.mrb[1].mxu0 }
  0xe7   : > { %v318_v11 = vpop.f32.mrb[2].mxu0 }
  0xe8   : > { %323 = vst.msk [vmem:[#allocation2] sm:$0xff] %vm257_vm1, %v321_v9  ;;  %v965_v14 = vpop.f32.mrb[3].mxu0 }
  0xef   : > { %v327_v16 = vld [vmem:[#allocation2] sm:$0xff] }
  0xf0   : > { %v334_v17 = vadd.f32 %v333_v15, %v327_v16 }
  0xf2   : > { %v1185_v18 = vpack.c.bf16 %v334_v17, %v334_v17 }
  0xf4   : > { %459 = vrot.lane.b32.xlu1 %v1185_v18, %s1098_s29  ;;  %338 = vrot.lane.b32.xlu0 %v1185_v18, %s1099_s30 }
  0xf8   : > { %582 = vrot.lane.b32.xlu1 %v1185_v18, %s1100_s5  ;;  %461 = vrot.lane.b32.xlu0 %v1185_v18, %s1101_s6 }
  0xfc   : > { %703 = vrot.lane.b32.xlu1 %v1185_v18, %s1102_s7  ;;  %580 = vrot.lane.b32.xlu0 %v1185_v18, %s1103_s8 }
 0x100   : > { %701 = vrot.lane.b32.xlu0 %v1185_v18, %s1104_s9 }
 0x166   : > { %v339_v19 = vpop.permute.xlu0 %338  ;;  %v460_v22 = vpop.permute.xlu1 %459 }
 0x167   : > { %v345_v20 = vsel %vm340_vm3, %v339_v19, 0 }
 0x168   : > { %967 = vmatpush3.bf16.xpose.msra.mxu1 %v345_v20 }
 0x169   : > { %978 = vmatprep.subr.bf16.mxu1 %v1096_v1 }
 0x16a   : > { %v462_v21 = vpop.permute.xlu0 %461  ;;  %v583_v24 = vpop.permute.xlu1 %582 }
 0x16b   : > { %v467_v23 = vsel %vm340_vm3, %v462_v21, 0  ;;  %v588_v25 = vsel %vm340_vm3, %v583_v24, 0 }
 0x16e   : > { %v704_v26 = vpop.permute.xlu1 %703  ;;  %v581_v27 = vpop.permute.xlu0 %580 }
 0x16f   : > { %969 = vmatmul.mubr.msk.bf16.vlgmr.msra.gmra.mrb[0].mxu1 %vm340_vm3, %v1185_v18  ;;  %v709_v28 = vsel %vm340_vm3, %v704_v26, 0 }
 0x170   : > { %979 = vmatpush3.bf16.xpose.msra.mxu1 %v467_v23  ;;  %980 = vmatprep.mubr.msk.bf16.mxu1 %vm1097_vm0, %v1096_v1 }
 0x171   : > { %990 = vmatprep.subr.bf16.mxu1 %v1096_v1 }
 0x172   : > { %v702_v29 = vpop.permute.xlu0 %701 }
 0x177   : > { %981 = vmatmul.mubr.msk.bf16.vlgmr.msra.gmra.mrb[4].mxu1 %vm340_vm3, %v460_v22 }
 0x178   : > { %991 = vmatpush3.bf16.xpose.msra.mxu1 %v588_v25  ;;  %992 = vmatprep.mubr.msk.bf16.mxu1 %vm1097_vm0, %v1096_v1 }
 0x179   : > { %1002 = vmatprep.subr.bf16.mxu1 %v1096_v1 }
 0x17f   : > { %993 = vmatmul.mubr.msk.bf16.vlgmr.msra.gmra.mrb[8].mxu1 %vm340_vm3, %v581_v27 }
 0x180   : > { %1003 = vmatpush3.bf16.xpose.msra.mxu1 %v709_v28  ;;  %1004 = vmatprep.mubr.msk.bf16.mxu1 %vm1097_vm0, %v1096_v1 }
 0x187   : > { %1005 = vmatmul.mubr.msk.bf16.vlgmr.msra.gmra.mrb[12].mxu1 %vm340_vm3, %v702_v29 }
 0x242   : > { %v381_v30 = vpop.f32.mrb[0].mxu1 }
 0x243   : > { %v387_v32 = vmul.f32 0.35355338, %v381_v30  ;;  %v970_v33 = vpop.f32.mrb[1].mxu1 }
 0x244   : > { %v384_v34 = vpop.f32.mrb[2].mxu1 }
 0x245   : > { %v971_v35 = vpop.f32.mrb[3].mxu1  ;;  %v394_v36 = vadd.f32 %v923_v31, %v387_v32 }
 0x247   : > { %v395_v37 = vsel %vm340_vm3, %v394_v36, -inf }
 0x248   : > { %396 = vmax.xlane.f32.xlu1 %v395_v37 }
 0x24a   : > { %v503_v38 = vpop.f32.mrb[4].mxu1 }
 0x24b   : > { %v509_v39 = vmul.f32 0.35355338, %v503_v38  ;;  %v982_v40 = vpop.f32.mrb[5].mxu1 }
 0x24c   : > { %v506_v41 = vpop.f32.mrb[6].mxu1 }
 0x24d   : > { %v983_v42 = vpop.f32.mrb[7].mxu1  ;;  %v510_v43 = vadd.f32 %v923_v31, %v509_v39 }
 0x24f   : > { %v511_v44 = vsel %vm340_vm3, %v510_v43, -inf }
 0x250   : > { %512 = vmax.xlane.f32.xlu0 %v511_v44 }
 0x252   : > { %v624_v45 = vpop.f32.mrb[8].mxu1 }
 0x253   : > { %v630_v46 = vmul.f32 0.35355338, %v624_v45  ;;  %v994_v47 = vpop.f32.mrb[9].mxu1 }
 0x254   : > { %v627_v48 = vpop.f32.mrb[10].mxu1 }
 0x255   : > { %v995_v49 = vpop.f32.mrb[11].mxu1  ;;  %v631_v50 = vadd.f32 %v923_v31, %v630_v46 }
 0x257   : > { %v632_v51 = vsel %vm340_vm3, %v631_v50, -inf }
 0x258   : > { %633 = vmax.xlane.f32.xlu0 %v632_v51 }
 0x25a   : > { %v745_v52 = vpop.f32.mrb[12].mxu1 }
 0x25b   : > { %v751_v53 = vmul.f32 0.35355338, %v745_v52  ;;  %v1006_v54 = vpop.f32.mrb[13].mxu1 }
 0x25c   : > { %v748_v55 = vpop.f32.mrb[14].mxu1 }
 0x25d   : > { %v1007_v56 = vpop.f32.mrb[15].mxu1  ;;  %v752_v57 = vadd.f32 %v923_v31, %v751_v53 }
 0x25f   : > { %v753_v58 = vsel %vm340_vm3, %v752_v57, -inf }
 0x260   : > { %754 = vmax.xlane.f32.xlu1 %v753_v58 }
 0x2d5   : > { %v397_v59 = vpop.xlane.xlu1 %396 }
 0x2d6   : > { %v398_v60 = vsub.f32 %v394_v36, %v397_v59 }
 0x2d8   : > { %v399_v61 = vmul.f32 1.442695, %v398_v60 }
 0x2da   : > { %1056 = vpow2.f32 %v399_v61 }
 0x2dd   : > { %v513_v62 = vpop.xlane.xlu0 %512 }
 0x2de   : > { %v514_v63 = vsub.f32 %v510_v43, %v513_v62 }
 0x2e0   : > { %v515_v0 = vmul.f32 1.442695, %v514_v63 }
 0x2e2   : > { %1058 = vpow2.f32 %v515_v0 }
 0x2e4   : > { %v1057_v2 = vpop.eup %1056 }
 0x2e5   : > { %v634_v3 = vpop.xlane.xlu0 %633  ;;  %v401_v4 = vsel %vm340_vm3, %v1057_v2, 0.0 }
 0x2e6   : > { %v635_v5 = vsub.f32 %v631_v50, %v634_v3  ;;  %402 = vadd.xlane.f32.xlu0 %v401_v4 }
 0x2e8   : > { %v636_v6 = vmul.f32 1.442695, %v635_v5 }
 0x2ea   : > { %1060 = vpow2.f32 %v636_v6 }
 0x2ec   : > { %v1059_v7 = vpop.eup %1058 }
 0x2ed   : > { %v517_v8 = vsel %vm340_vm3, %v1059_v7, 0.0  ;;  %v755_v11 = vpop.xlane.xlu1 %754 }
 0x2ee   : > { %518 = vadd.xlane.f32.xlu1 %v517_v8  ;;  %v756_v12 = vsub.f32 %v752_v57, %v755_v11 }
 0x2f0   : > { %v757_v13 = vmul.f32 1.442695, %v756_v12 }
 0x2f2   : > { %1062 = vpow2.f32 %v757_v13 }
 0x2f4   : > { %v1061_v9 = vpop.eup %1060 }
 0x2f5   : > { %v638_v10 = vsel %vm340_vm3, %v1061_v9, 0.0 }
 0x2f6   : > { %639 = vadd.xlane.f32.xlu0 %v638_v10 }
 0x2fc   : > { %v1063_v14 = vpop.eup %1062 }
 0x2fd   : > { %v759_v15 = vsel %vm340_vm3, %v1063_v14, 0.0 }
 0x2ff   : > { %523 = vrot.lane.b32.xlu1 %v1185_v18, %s1105_s13 }
 0x30c   : > { %407 = vrot.lane.b32.xlu0 %v1185_v18, %s1106_s14 }
 0x310   : > { %765 = vrot.lane.b32.xlu0 %v1185_v18, %s1107_s19 }
 0x323   : > { %760 = vadd.xlane.f32.xlu1 %v759_v15 }
 0x334   : > { %644 = vrot.lane.b32.xlu1 %v1185_v18, %s1108_s20 }
 0x373   : > { %v403_v16 = vpop.xlane.xlu0 %402 }
 0x374   : > { %1064 = vrcp.f32 %v403_v16 }
 0x37b   : > { %v519_v17 = vpop.xlane.xlu1 %518 }
 0x37c   : > { %1066 = vrcp.f32 %v519_v17 }
 0x37e   : > { %v1065_v19 = vpop.eup %1064 }
 0x37f   : > { %v405_v21 = vmul.f32 %v1065_v19, %v1057_v2  ;;  %v524_v24 = vpop.permute.xlu1 %523 }
 0x380   : > { %v529_v27 = vsel %vm412_vm4, %v524_v24, 0 }
 0x381   : > { %v406_v25 = vpack.c.bf16 %v405_v21, %v405_v21 }
 0x383   : > { %v640_v20 = vpop.xlane.xlu0 %639 }
 0x384   : > { %1068 = vrcp.f32 %v640_v20 }
 0x386   : > { %v1067_v26 = vpop.eup %1066 }
 0x387   : > { %v408_v22 = vpop.permute.xlu0 %407  ;;  %v521_v18 = vmul.f32 %v1067_v26, %v1059_v7 }
 0x388   : > { %v414_v23 = vsel %vm412_vm4, %v408_v22, 0 }
 0x389   : > { %973 = vmatpush3.bf16.msra.mxu0 %v414_v23  ;;  %v522_v28 = vpack.c.bf16 %v521_v18, %v521_v18 }
 0x38a   : > { %984 = vmatprep.subr.bf16.mxu0 %v1096_v1 }
 0x38b   : > { %v766_v34 = vpop.permute.xlu0 %765 }
 0x38c   : > { %975 = vmatmul.mubr.msk.bf16.vlgmr.msra.gmra.mrb[4].mxu0 %vm340_vm3, %v406_v25  ;;  %v771_v36 = vsel %vm412_vm4, %v766_v34, 0 }
 0x38d   : > { %985 = vmatpush3.bf16.msra.mxu0 %v529_v27  ;;  %986 = vmatprep.mubr.msk.bf16.mxu0 %vm1097_vm0, %v1096_v1 }
 0x38e   : > { %996 = vmatprep.subr.bf16.mxu0 %v1096_v1  ;;  %v1069_v29 = vpop.eup %1068 }
 0x38f   : > { %v642_v31 = vmul.f32 %v1069_v29, %v1061_v9 }
 0x391   : > { %v643_v35 = vpack.c.bf16 %v642_v31, %v642_v31 }
 0x394   : > { %987 = vmatmul.mubr.msk.bf16.vlgmr.msra.gmra.mrb[8].mxu0 %vm340_vm3, %v522_v28 }
 0x395   : > { %998 = vmatprep.mubr.msk.bf16.mxu0 %vm1097_vm0, %v1096_v1 }
 0x3b0   : > { %v761_v30 = vpop.xlane.xlu1 %760 }
 0x3b1   : > { %1070 = vrcp.f32 %v761_v30 }
 0x3b4   : > { %v645_v32 = vpop.permute.xlu1 %644 }
 0x3b5   : > { %v650_v33 = vsel %vm412_vm4, %v645_v32, 0 }
 0x3b6   : > { %997 = vmatpush3.bf16.msra.mxu0 %v650_v33 }
 0x3b7   : > { %1008 = vmatprep.subr.bf16.mxu0 %v1096_v1 }
 0x3b9   : > { %999 = vmatmul.mubr.msk.bf16.vlgmr.msra.gmra.mrb[12].mxu0 %vm340_vm3, %v643_v35 }
 0x3ba   : > { %1009 = vmatpush3.bf16.msra.mxu0 %v771_v36  ;;  %1010 = vmatprep.mubr.msk.bf16.mxu0 %vm1097_vm0, %v1096_v1 }
 0x3bb   : > { %v1071_v37 = vpop.eup %1070 }
 0x3bc   : > { %v763_v38 = vmul.f32 %v1071_v37, %v1063_v14 }
 0x3be   : > { %v764_v39 = vpack.c.bf16 %v763_v38, %v763_v38 }
 0x3c1   : > { %1011 = vmatmul.mubr.msk.bf16.vlgmr.msra.gmra.mrb[16].mxu0 %vm340_vm3, %v764_v39 }
 0x45f   : > { %v450_v40 = vpop.f32.mrb[4].mxu0 }
 0x460   : > { %v456_v41 = vpack.c.bf16 %v450_v40, %v450_v40  ;;  %v976_v42 = vpop.f32.mrb[5].mxu0 }
 0x461   : > { %v453_v43 = vpop.f32.mrb[6].mxu0 }
 0x462   : > { %458 = vst.msk [vmem:[%s1250_s24] sm:$0xf] %vm457_vm5, %v456_v41  ;;  %v977_v44 = vpop.f32.mrb[7].mxu0 }
 0x467   : > { %v565_v1 = vpop.f32.mrb[8].mxu0 }
 0x468   : > { %v936_v45 = vpack.c.bf16 %v565_v1, %v565_v1  ;;  %v988_v46 = vpop.f32.mrb[9].mxu0 }
 0x469   : > { %v568_v47 = vpop.f32.mrb[10].mxu0 }
 0x46a   : > { %575 = vrot.lane.b32.xlu1 %v936_v45, %s1109_s25  ;;  %v989_v48 = vpop.f32.mrb[11].mxu0 }
 0x48c   : > { %v686_v49 = vpop.f32.mrb[12].mxu0 }
 0x48d   : > { %v937_v50 = vpack.c.bf16 %v686_v49, %v686_v49  ;;  %v1000_v51 = vpop.f32.mrb[13].mxu0 }
 0x48e   : > { %v689_v52 = vpop.f32.mrb[14].mxu0 }
 0x48f   : > { %696 = vrot.lane.b32.xlu0 %v937_v50, %s1110_s15  ;;  %v1001_v53 = vpop.f32.mrb[15].mxu0 }
 0x494   : > { %v807_v54 = vpop.f32.mrb[16].mxu0 }
 0x495   : > { %v938_v55 = vpack.c.bf16 %v807_v54, %v807_v54  ;;  %v1012_v56 = vpop.f32.mrb[17].mxu0 }
 0x496   : > { %v810_v57 = vpop.f32.mrb[18].mxu0 }
 0x497   : > { %817 = vrot.lane.b32.xlu1 %v938_v55, %s1111_s23  ;;  %v1013_v58 = vpop.f32.mrb[19].mxu0 }
 0x4dc   : > { %v576_v59 = vpop.permute.xlu1 %575 }
 0x4dd   : > { %579 = vst.msk [vmem:[%s1250_s24] sm:$0xf] %vm578_vm6, %v576_v59 }
 0x501   : > { %v697_v60 = vpop.permute.xlu0 %696 }
 0x502   : > { %700 = vst.msk [vmem:[%s1250_s24] sm:$0xf] %vm699_vm7, %v697_v60 }
 0x509   : > { %v818_v61 = vpop.permute.xlu1 %817 }
 0x50a   : > { %821 = vst.msk [vmem:[%s1250_s24] sm:$0xf] %vm820_vm8, %v818_v61 }
 0x50b PF: > { %s14_s17 = sadd.s32 1, %s1094_s17   ;;  %s1270_s15 = smov %s1090_s16 }
 0x50c   : > { %p11_p5 = scmp.ge.s32.totalorder %s14_s17, 4   ;;  %s1271_s16 = smov %s1273_s18 }
 0x50e   :  { %13 = sbr.rel (!%p11_p5) target bundleno = 2 (0x2), region = 80 }

// kernel: _lambda_.23
= control target key start
LH: loop header
LB: loop body
LE: loop exit
PB: predicated region body
PF: predicated region fallthrough
CT: control target
= control target key end

     0   :  { %vm19_vm0 = vcmask 130048   ;;  %v149_v0 = vmov 0.0   ;;  %vm150_vm1 = vmmov 0   ;;  %vm47_vm2 = vcmask 261120   ;;  %s193_s1 = inlined_call_operand.vmem [shape: bf16[32,16], index: 1, kind: input, shape index: {}]   ;;  %s194_s0 = inlined_call_operand.vmem [shape: bf16[16,32], index: 0, kind: input, shape index: {}]   ;;  %s195_s2 = inlined_call_operand.vmem [shape: bf16[1,16], index: 2, kind: input, shape index: {}]   ;;  %s196_s3 = inlined_call_operand.vmem [shape: bf16[16,16], index: 3, kind: output, shape index: {}]  }
   0x1   :  { %136 = vmatprep.subr.bf16.mxu0 %v149_v0  ;;  %v146_v1 = vld [vmem:[%s193_s1] sm:$0xff]   ;;  %140 = vmatprep.mubr.msk.bf16.mxu0 %vm150_vm1, %v149_v0  ;;  %20 = vst.msk [vmem:[#allocation2] sm:$0xff] %vm19_vm0, %v149_v0  ;;  %21 = vst.msk [vmem:[#allocation2 + $0x8] sm:$0xff] %vm19_vm0, %v149_v0  ;;  %v147_v2 = vld [vmem:[%s193_s1 + $0x8] sm:$0xff]   ;;  %v104_v4 = vlaneseq  ;;  %vm118_vm3 = vcmask 125952  }
   0x2   :  { %137 = vmatpush3.bf16.msra.mxu0 %v146_v1  ;;  %v148_v3 = vld [vmem:[%s194_s0] sm:$0xff]  }
   0x3   :  { %138 = vmatprep.subr.bf16.mxu0 %v149_v0  ;;  %v105_v6 = vshrl.u32 %v104_v4, 7  ;;  %v102_v8 = vld [vmem:[%s195_s2] sm:$0x1] }
   0x4   :  { %v103_v13 = vunpack.c.l.bf16 %v102_v8 }
   0x5   :  { %v106_v14 = vsub.s32 0, %v105_v6 }
   0x6   :  { %139 = vmatpush3.bf16.msra.mxu0 %v147_v2 }
   0x7   :  { %v107_v17 = vrot.slane %v103_v13, %v106_v14 }
   0x8   :  { %v22_v5 = vld [vmem:[#allocation2] sm:$0xff]  ;;  %v23_v9 = vld [vmem:[#allocation2 + $0x8] sm:$0xff] }
   0x9   :  { %141 = vmatmul.mubr.msk.bf16.vlgmr.msra.gmra.mrb[0].mxu0 %vm47_vm2, %v148_v3 }
  0xdc   :  { %v85_v7 = vpop.f32.mrb[0].mxu0 }
  0xdd   :  { %v92_v10 = vadd.f32 %v85_v7, %v22_v5  ;;  %v142_v11 = vpop.f32.mrb[1].mxu0 }
  0xde   :  { %v88_v12 = vpop.f32.mrb[2].mxu0 }
  0xdf   :  { %95 = vst.msk [vmem:[#allocation2] sm:$0xff] %vm19_vm0, %v92_v10  ;;  %v93_v15 = vadd.f32 %v88_v12, %v23_v9  ;;  %v143_v16 = vpop.f32.mrb[3].mxu0 }
  0xe1   :  { %96 = vst.msk [vmem:[#allocation2 + $0x8] sm:$0xff] %vm19_vm0, %v93_v15 }
  0xe6   :  { %v100_v18 = vld [vmem:[#allocation2] sm:$0xff] }
  0xe7   :  { %v108_v19 = vadd.f32 %v107_v17, %v100_v18 }
  0xe8   :  { %v101_v20 = vld [vmem:[#allocation2 + $0x8] sm:$0xff] }
  0xe9   :  { %v131_v21 = vpack.c.bf16 %v108_v19, %v108_v19  ;;  %v109_v22 = vadd.f32 %v107_v17, %v101_v20 }
  0xeb   :  { %119 = vst.msk [vmem:[%s196_s3] sm:$0xf] %vm118_vm3, %v131_v21  ;;  %v132_v23 = vpack.c.bf16 %v109_v22, %v109_v22 }
  0xed   :  { %120 = vst.msk [vmem:[%s196_s3 + $0x4] sm:$0xf] %vm118_vm3, %v132_v23 }

// kernel: _lambda_.27
= control target key start
LH: loop header
LB: loop body
LE: loop exit
PB: predicated region body
PF: predicated region fallthrough
CT: control target
= control target key end

     0   :  { %vm28_vm0 = vcmask 261120   ;;  %v241_v0 = vmov 0.0   ;;  %vm242_vm1 = vmmov 0   ;;  %vm72_vm2 = vcmask 523264   ;;  %s319_s1 = inlined_call_operand.vmem [shape: bf16[64,32], index: 1, kind: input, shape index: {}]   ;;  %s320_s0 = inlined_call_operand.vmem [shape: bf16[16,64], index: 0, kind: input, shape index: {}]   ;;  %s321_s2 = inlined_call_operand.vmem [shape: bf16[1,32], index: 2, kind: input, shape index: {}]   ;;  %s322_s3 = inlined_call_operand.vmem [shape: bf16[16,32], index: 3, kind: input, shape index: {}]   ;;  %s323_s4 = inlined_call_operand.vmem [shape: bf16[1,32], index: 4, kind: input, shape index: {}]   ;;  %s324_s5 = inlined_call_operand.vmem [shape: bf16[1,32], index: 5, kind: input, shape index: {}]   ;;  %s325_s6 = inlined_call_operand.vmem [shape: bf16[16,32], index: 6, kind: output, shape index: {}]  }
   0x1   :  { %218 = vmatprep.subr.bf16.mxu0 %v241_v0  ;;  %v232_v1 = vld [vmem:[%s319_s1] sm:$0xff]   ;;  %226 = vmatprep.mubr.msk.bf16.mxu0 %vm242_vm1, %v241_v0  ;;  %29 = vst.msk [vmem:[#allocation2] sm:$0xff] %vm28_vm0, %v241_v0  ;;  %30 = vst.msk [vmem:[#allocation2 + $0x8] sm:$0xff] %vm28_vm0, %v241_v0  ;;  %v233_v2 = vld [vmem:[%s319_s1 + $0x8] sm:$0xff]   ;;  %v129_v6 = vlaneseq  ;;  %vm192_vm3 = vcmask 257024  }
   0x2   :  { %219 = vmatpush3.bf16.msra.mxu0 %v232_v1  ;;  %v234_v3 = vld [vmem:[%s319_s1 + $0x10] sm:$0xff]   ;;  %v235_v4 = vld [vmem:[%s319_s1 + $0x18] sm:$0xff]   ;;  %v236_v5 = vld [vmem:[%s320_s0] sm:$0xff]  }
   0x3   :  { %220 = vmatprep.subr.bf16.mxu0 %v241_v0  ;;  %v130_v8 = vshrl.u32 %v129_v6, 7  ;;  %v127_v11 = vld [vmem:[%s321_s2] sm:$0x1] }
   0x4   :  { %v128_v17 = vunpack.c.l.bf16 %v127_v11  ;;  %v210_v19 = vld [vmem:[%s322_s3] sm:$0xff]  }
   0x5   :  { %v131_v18 = vsub.s32 0, %v130_v8  ;;  %v211_v21 = vunpack.c.l.bf16 %v210_v19  ;;  %v212_v24 = vunpack.c.h.bf16 %v210_v19  ;;  %v168_v46 = vld [vmem:[%s323_s4] sm:$0x1] }
   0x6   :  { %221 = vmatpush3.bf16.msra.mxu0 %v233_v2  ;;  %v176_v48 = vld [vmem:[%s324_s5] sm:$0x1]  ;;  %v169_v49 = vunpack.c.l.bf16 %v168_v46 }
   0x7   :  { %222 = vmatprep.subr.bf16.mxu0 %v241_v0  ;;  %v132_v20 = vrot.slane %v128_v17, %v131_v18  ;;  %v177_v50 = vunpack.c.l.bf16 %v176_v48 }
   0x8   :  { %v31_v7 = vld [vmem:[#allocation2] sm:$0xff]  ;;  %v32_v10 = vld [vmem:[#allocation2 + $0x8] sm:$0xff]  ;;  %v173_v51 = vrot.slane %v169_v49, %v131_v18 }
   0x9   :  { %v181_v53 = vrot.slane %v177_v50, %v131_v18 }
   0xa   :  { %223 = vmatpush3.bf16.msra.mxu0 %v234_v3 }
   0xb   :  { %224 = vmatprep.subr.bf16.mxu0 %v241_v0 }
   0xe   :  { %225 = vmatpush3.bf16.msra.mxu0 %v235_v4 }
  0x11   :  { %227 = vmatmul.mubr.msk.bf16.vlgmr.msra.gmra.mrb[0].mxu0 %vm72_vm2, %v236_v5 }
  0xe4   :  { %v110_v9 = vpop.f32.mrb[0].mxu0 }
  0xe5   :  { %v117_v12 = vadd.f32 %v110_v9, %v31_v7  ;;  %v228_v13 = vpop.f32.mrb[1].mxu0 }
  0xe6   :  { %v113_v14 = vpop.f32.mrb[2].mxu0 }
  0xe7   :  { %120 = vst.msk [vmem:[#allocation2] sm:$0xff] %vm28_vm0, %v117_v12  ;;  %v118_v15 = vadd.f32 %v113_v14, %v32_v10  ;;  %v229_v16 = vpop.f32.mrb[3].mxu0 }
  0xe9   :  { %121 = vst.msk [vmem:[#allocation2 + $0x8] sm:$0xff] %vm28_vm0, %v118_v15 }
  0xee   :  { %v125_v22 = vld [vmem:[#allocation2] sm:$0xff] }
  0xef   :  { %v133_v23 = vadd.f32 %v132_v20, %v125_v22 }
  0xf0   :  { %v126_v25 = vld [vmem:[#allocation2 + $0x8] sm:$0xff] }
  0xf1   :  { %v139_v26 = vadd.f32 %v211_v21, %v133_v23  ;;  %v134_v27 = vadd.f32 %v132_v20, %v126_v25 }
  0xf3   :  { %v141_v28 = vsel %vm28_vm0, %v139_v26, 0.0  ;;  %v140_v29 = vadd.f32 %v212_v24, %v134_v27 }
  0xf4   :  { %142 = vadd.xlane.f32.xlu0 %v141_v28 }
  0xf5   :  { %v144_v30 = vsel %vm28_vm0, %v140_v29, 0.0 }
  0xf8   :  { %145 = vadd.xlane.f32.xlu0 %v144_v30 }
 0x181   :  { %v143_v31 = vpop.xlane.xlu0 %142 }
 0x182   :  { %v148_v32 = vmul.f32 0.03125, %v143_v31 }
 0x184   :  { %v150_v33 = vsub.f32 %v139_v26, %v148_v32 }
 0x185   :  { %v146_v34 = vpop.xlane.xlu0 %145 }
 0x186   :  { %v149_v35 = vmul.f32 0.03125, %v146_v34  ;;  %v152_v36 = vmul.f32 %v150_v33, %v150_v33 }
 0x188   :  { %v151_v37 = vsub.f32 %v140_v29, %v149_v35  ;;  %v154_v38 = vsel %vm28_vm0, %v152_v36, 0.0 }
 0x189   :  { %155 = vadd.xlane.f32.xlu1 %v154_v38 }
 0x18a   :  { %v153_v39 = vmul.f32 %v151_v37, %v151_v37 }
 0x18c   :  { %v157_v40 = vsel %vm28_vm0, %v153_v39, 0.0 }
 0x18d   :  { %158 = vadd.xlane.f32.xlu1 %v157_v40 }
 0x216   :  { %v156_v41 = vpop.xlane.xlu1 %155 }
 0x217   :  { %v160_v42 = vmul.f32 0.03125, %v156_v41 }
 0x219   :  { %v162_v43 = vadd.f32 1e-12, %v160_v42 }
 0x21a   :  { %v159_v44 = vpop.xlane.xlu1 %158 }
 0x21b   :  { %237 = vrsqrt.f32 %v162_v43  ;;  %v161_v45 = vmul.f32 0.03125, %v159_v44 }
 0x21d   :  { %v163_v47 = vadd.f32 1e-12, %v161_v45 }
 0x21f   :  { %239 = vrsqrt.f32 %v163_v47 }
 0x225   :  { %v238_v52 = vpop.eup %237 }
 0x226   :  { %v166_v54 = vmul.f32 %v238_v52, %v150_v33 }
 0x228   :  { %v174_v55 = vmul.f32 %v173_v51, %v166_v54 }
 0x229   :  { %v240_v56 = vpop.eup %239 }
 0x22a   :  { %v182_v57 = vadd.f32 %v181_v53, %v174_v55  ;;  %v167_v58 = vmul.f32 %v240_v56, %v151_v37 }
 0x22c   :  { %v207_v59 = vpack.c.bf16 %v182_v57, %v182_v57  ;;  %v175_v60 = vmul.f32 %v173_v51, %v167_v58 }
 0x22e   :  { %193 = vst.msk [vmem:[%s325_s6] sm:$0xf] %vm192_vm3, %v207_v59  ;;  %v183_v61 = vadd.f32 %v181_v53, %v175_v60 }
 0x230   :  { %v208_v62 = vpack.c.bf16 %v183_v61, %v183_v61 }
 0x232   :  { %194 = vst.msk [vmem:[%s325_s6 + $0x4] sm:$0xf] %vm192_vm3, %v208_v62 }

// kernel: _lambda_.28
= control target key start
LH: loop header
LB: loop body
LE: loop exit
PB: predicated region body
PF: predicated region fallthrough
CT: control target
= control target key end

     0   :  { %vm22_vm0 = vcmask 130048   ;;  %v162_v0 = vmov 0.0   ;;  %vm163_vm1 = vmmov 0   ;;  %vm50_vm2 = vcmask 261120   ;;  %s214_s1 = inlined_call_operand.vmem [shape: bf16[32,16], index: 1, kind: input, shape index: {}]   ;;  %s215_s0 = inlined_call_operand.vmem [shape: bf16[16,32], index: 0, kind: input, shape index: {}]   ;;  %s216_s2 = inlined_call_operand.vmem [shape: bf16[1,16], index: 2, kind: input, shape index: {}]   ;;  %s217_s3 = inlined_call_operand.vmem [shape: bf16[16,16], index: 3, kind: input, shape index: {}]   ;;  %s218_s4 = inlined_call_operand.vmem [shape: bf16[16,16], index: 4, kind: output, shape index: {}]  }
   0x1   :  { %149 = vmatprep.subr.bf16.mxu0 %v162_v0  ;;  %v159_v1 = vld [vmem:[%s214_s1] sm:$0xff]   ;;  %153 = vmatprep.mubr.msk.bf16.mxu0 %vm163_vm1, %v162_v0  ;;  %23 = vst.msk [vmem:[#allocation2] sm:$0xff] %vm22_vm0, %v162_v0  ;;  %24 = vst.msk [vmem:[#allocation2 + $0x8] sm:$0xff] %vm22_vm0, %v162_v0  ;;  %v160_v2 = vld [vmem:[%s214_s1 + $0x8] sm:$0xff]   ;;  %v107_v4 = vlaneseq  ;;  %vm127_vm3 = vcmask 125952  }
   0x2   :  { %150 = vmatpush3.bf16.msra.mxu0 %v159_v1  ;;  %v161_v3 = vld [vmem:[%s215_s0] sm:$0xff]  }
   0x3   :  { %151 = vmatprep.subr.bf16.mxu0 %v162_v0  ;;  %v108_v6 = vshrl.u32 %v107_v4, 7  ;;  %v105_v8 = vld [vmem:[%s216_s2] sm:$0x1] }
   0x4   :  { %v106_v13 = vunpack.c.l.bf16 %v105_v8  ;;  %v143_v17 = vld [vmem:[%s217_s3] sm:$0xff]  }
   0x5   :  { %v109_v14 = vsub.s32 0, %v108_v6  ;;  %v144_v19 = vunpack.c.l.bf16 %v143_v17  ;;  %v145_v22 = vunpack.c.h.bf16 %v143_v17 }
   0x6   :  { %152 = vmatpush3.bf16.msra.mxu0 %v160_v2 }
   0x7   :  { %v110_v18 = vrot.slane %v106_v13, %v109_v14 }
   0x8   :  { %v25_v5 = vld [vmem:[#allocation2] sm:$0xff]  ;;  %v26_v9 = vld [vmem:[#allocation2 + $0x8] sm:$0xff] }
   0x9   :  { %154 = vmatmul.mubr.msk.bf16.vlgmr.msra.gmra.mrb[0].mxu0 %vm50_vm2, %v161_v3 }
  0xdc   :  { %v88_v7 = vpop.f32.mrb[0].mxu0 }
  0xdd   :  { %v95_v10 = vadd.f32 %v88_v7, %v25_v5  ;;  %v155_v11 = vpop.f32.mrb[1].mxu0 }
  0xde   :  { %v91_v12 = vpop.f32.mrb[2].mxu0 }
  0xdf   :  { %98 = vst.msk [vmem:[#allocation2] sm:$0xff] %vm22_vm0, %v95_v10  ;;  %v96_v15 = vadd.f32 %v91_v12, %v26_v9  ;;  %v156_v16 = vpop.f32.mrb[3].mxu0 }
  0xe1   :  { %99 = vst.msk [vmem:[#allocation2 + $0x8] sm:$0xff] %vm22_vm0, %v96_v15 }
  0xe6   :  { %v103_v20 = vld [vmem:[#allocation2] sm:$0xff] }
  0xe7   :  { %v111_v21 = vadd.f32 %v110_v18, %v103_v20 }
  0xe8   :  { %v104_v23 = vld [vmem:[#allocation2 + $0x8] sm:$0xff] }
  0xe9   :  { %v117_v24 = vadd.f32 %v144_v19, %v111_v21  ;;  %v112_v25 = vadd.f32 %v110_v18, %v104_v23 }
  0xeb   :  { %v140_v26 = vpack.c.bf16 %v117_v24, %v117_v24  ;;  %v118_v27 = vadd.f32 %v145_v22, %v112_v25 }
  0xed   :  { %128 = vst.msk [vmem:[%s218_s4] sm:$0xf] %vm127_vm3, %v140_v26  ;;  %v141_v28 = vpack.c.bf16 %v118_v27, %v118_v27 }
  0xef   :  { %129 = vst.msk [vmem:[%s218_s4 + $0x4] sm:$0xf] %vm127_vm3, %v141_v28 }

// kernel: _lambda_.29
= control target key start
LH: loop header
LB: loop body
LE: loop exit
PB: predicated region body
PF: predicated region fallthrough
CT: control target
= control target key end

     0   :  { %s1125_s15 = smov 0   ;;  %s1127_s16 = smov 0   ;;  %s1249_s0 = inlined_call_operand.vmem [shape: bf16[2,8,16], index: 0, kind: input, shape index: {}]   ;;  %s1250_s1 = inlined_call_operand.vmem [shape: bf16[16,48], index: 1, kind: input, shape index: {}]   ;;  %s1251_s2 = inlined_call_operand.vmem [shape: bf16[1,48], index: 2, kind: input, shape index: {}]   ;;  %s1252_s3 = inlined_call_operand.vmem [shape: f32[2,1,8], index: 3, kind: input, shape index: {}]   ;;  %s1253_s4 = inlined_call_operand.vmem [shape: bf16[2,8,16], index: 4, kind: output, shape index: {}]  }
   0x1   :  { %s1129_s17 = smov 0  }
   0x2 LB: > { %s26_s18 = sadd.s32 1, %s1078_s16  ;;  %p909_p0 = scmp.ge.s32.totalorder %s1082_s17, 1  ;;  %s1082_s17 = sphi %s1129_s17, %s14_s17   ;;  %s1078_s16 = sphi %s1127_s16, %s1255_s16   ;;  %s1074_s15 = sphi %s1125_s15, %s1254_s15  }
   0x3   : > { %p28_p1 = scmp.ge.s32.totalorder %s26_s18, 2  ;;  %p197_p2 = scmp.lt.s32.totalorder %s1082_s17, 3 }
   0x5   : > { %s1257_s18 = smov (%p28_p1, %s26_s18), 0  ;;  %p198_p3 = pnand %p909_p0, %p197_p2 }
   0x6   : > { %v1043_v0 = vld [vmem:[%s1250_s1] sm:$0xff] (!%p198_p3)   ;;  %v1084_v1 = vmov (!%p198_p3), 0.0   ;;  %p232_p4 = scmp.lt.s32.totalorder (!%p198_p3), %s1074_s15, 1  ;;  %vm257_vm0 = vcmask (!%p198_p3), 392192   ;;  %vm1085_vm1 = vmmov (!%p198_p3), 0   ;;  %vm269_vm2 = vcmask (!%p198_p3), 130048  }
   0x7   : > { %201 = sbr.rel (%p198_p3) target bundleno = 1291 (0x50b), region = 36  ;;  %949 = vmatprep.subr.bf16.mxu0 (!%p198_p3), %v1084_v1  ;;  %955 = vmatprep.subr.bf16.mxu1 (!%p198_p3), %v1084_v1  ;;  %258 = vst.msk [vmem:[#allocation2] sm:$0xff] (!%p198_p3), %vm257_vm0, %v1084_v1  ;;  %v322_v3 = vlaneseq (!%p198_p3)  ;;  %v320_v7 = vld [vmem:[%s1251_s2] sm:$0x1] (!%p198_p3)  ;;  %s1086_s27 = smov (!%p198_p3), 124   ;;  %vm332_vm3 = vcmask (!%p198_p3), 31744  }
   0x8   : > { %950 = vmatpush3.bf16.msra.mxu0 (!%p198_p3), %v1043_v0  ;;  %951 = vmatprep.mubr.msk.bf16.mxu0 (!%p198_p3), %vm1085_vm1, %v1084_v1  ;;  %v321_v11 = vunpack.c.l.bf16 (!%p198_p3), %v320_v7  ;;  %s1087_s28 = smov (!%p198_p3), 112   ;;  %s1088_s29 = smov (!%p198_p3), 104   ;;  %vm387_vm4 = vcmask (!%p198_p3), 64512   ;;  %vm405_vm5 = vcmask (!%p198_p3), 1043456   ;;  %vm450_vm6 = vcmask (!%p198_p3), 27648  }
   0x9   : > { %957 = vmatprep.mubr.msk.bf16.mxu1 (!%p198_p3), %vm1085_vm1, %v1084_v1  ;;  %961 = vmatprep.subr.bf16.mxu0 (!%p198_p3), %v1084_v1  ;;  %v323_v5 = vshrl.u32 (!%p198_p3), %v322_v3, 7  ;;  %s1089_s30 = smov (!%p198_p3), 108   ;;  %s1090_s5 = smov (!%p198_p3), 100   ;;  %vm571_vm7 = vcmask (!%p198_p3), 60448   ;;  %vm692_vm8 = vcmask (!%p198_p3), 93248   ;;  %vm813_vm9 = vcmask (!%p198_p3), 126048  }
   0xa   : > { %s1091_s6 = smov (!%p198_p3), 120   ;;  %s1092_s7 = smov (!%p198_p3), 116  }
   0xb   : > { %v324_v12 = vsub.s32 (!%p198_p3), 0, %v323_v5  ;;  %s1093_s11 = smov (!%p198_p3), 92   ;;  %s1094_s12 = smov (!%p198_p3), 96  }
   0xc   : > { %s1095_s13 = smov (!%p198_p3), 84   ;;  %s1096_s14 = smov (!%p198_p3), 88  }
   0xd   : > { %v325_v14 = vrot.slane (!%p198_p3), %v321_v11, %v324_v12  ;;  %s1097_s23 = smov (!%p198_p3), 4  }
   0xe   : > { %s1259_s15 = smov (!%p232_p4, %s1074_s15), 1  ;;  %v259_v4 = vld [vmem:[#allocation2] sm:$0xff] }
   0xf   : > { %s910_s21 = sshll.u32 %s1259_s15, 2  ;;  %s247_s10 = scalar_lea.vmem %s1252_s3, %s1259_s15 }
  0x10   : > { %s238_s24 = scalar_lea.vmem %s1249_s0, %s910_s21  ;;  %v915_v30 = vld [vmem:[%s247_s10] ss:$0 sm:$0xff]  ;;  %s1234_s22 = scalar_lea.vmem %s1253_s4, %s910_s21 }
  0x11   : > { %v260_v2 = vld [vmem:[%s238_s24] sm:$0xf]  ;;  %s1098_s15 = smov 8   ;;  %s1099_s21 = smov 12  }
  0x12   : > { %952 = vmatmul.mubr.msk.bf16.vlgmr.msra.gmra.mrb[0].mxu0 %vm269_vm2, %v260_v2 }
  0x13   : > { %963 = vmatprep.mubr.msk.bf16.mxu0 %vm1085_vm1, %v1084_v1 }
  0xe5   : > { %v307_v6 = vpop.f32.mrb[0].mxu0 }
  0xe6   : > { %v313_v8 = vadd.f32 %v307_v6, %v259_v4  ;;  %v953_v9 = vpop.f32.mrb[1].mxu0 }
  0xe7   : > { %v310_v10 = vpop.f32.mrb[2].mxu0 }
  0xe8   : > { %315 = vst.msk [vmem:[#allocation2] sm:$0xff] %vm257_vm0, %v313_v8  ;;  %v954_v13 = vpop.f32.mrb[3].mxu0 }
  0xef   : > { %v319_v15 = vld [vmem:[#allocation2] sm:$0xff] }
  0xf0   : > { %v326_v16 = vadd.f32 %v325_v14, %v319_v15 }
  0xf2   : > { %v1169_v17 = vpack.c.bf16 %v326_v16, %v326_v16 }
  0xf4   : > { %452 = vrot.lane.b32.xlu1 %v1169_v17, %s1086_s27  ;;  %330 = vrot.lane.b32.xlu0 %v1169_v17, %s1087_s28 }
  0xf8   : > { %575 = vrot.lane.b32.xlu1 %v1169_v17, %s1088_s29  ;;  %454 = vrot.lane.b32.xlu0 %v1169_v17, %s1089_s30 }
  0xfc   : > { %696 = vrot.lane.b32.xlu1 %v1169_v17, %s1090_s5  ;;  %573 = vrot.lane.b32.xlu0 %v1169_v17, %s1091_s6 }
 0x100   : > { %694 = vrot.lane.b32.xlu0 %v1169_v17, %s1092_s7 }
 0x166   : > { %v331_v18 = vpop.permute.xlu0 %330  ;;  %v453_v21 = vpop.permute.xlu1 %452 }
 0x167   : > { %v337_v19 = vsel %vm332_vm3, %v331_v18, 0 }
 0x168   : > { %956 = vmatpush3.bf16.xpose.msra.mxu1 %v337_v19 }
 0x169   : > { %967 = vmatprep.subr.bf16.mxu1 %v1084_v1 }
 0x16a   : > { %v455_v20 = vpop.permute.xlu0 %454  ;;  %v576_v23 = vpop.permute.xlu1 %575 }
 0x16b   : > { %v460_v22 = vsel %vm332_vm3, %v455_v20, 0  ;;  %v581_v24 = vsel %vm332_vm3, %v576_v23, 0 }
 0x16e   : > { %v697_v25 = vpop.permute.xlu1 %696  ;;  %v574_v26 = vpop.permute.xlu0 %573 }
 0x16f   : > { %958 = vmatmul.mubr.msk.bf16.vlgmr.msra.gmra.mrb[0].mxu1 %vm332_vm3, %v1169_v17  ;;  %v702_v27 = vsel %vm332_vm3, %v697_v25, 0 }
 0x170   : > { %968 = vmatpush3.bf16.xpose.msra.mxu1 %v460_v22  ;;  %969 = vmatprep.mubr.msk.bf16.mxu1 %vm1085_vm1, %v1084_v1 }
 0x171   : > { %979 = vmatprep.subr.bf16.mxu1 %v1084_v1 }
 0x172   : > { %v695_v28 = vpop.permute.xlu0 %694 }
 0x177   : > { %970 = vmatmul.mubr.msk.bf16.vlgmr.msra.gmra.mrb[4].mxu1 %vm332_vm3, %v453_v21 }
 0x178   : > { %980 = vmatpush3.bf16.xpose.msra.mxu1 %v581_v24  ;;  %981 = vmatprep.mubr.msk.bf16.mxu1 %vm1085_vm1, %v1084_v1 }
 0x179   : > { %991 = vmatprep.subr.bf16.mxu1 %v1084_v1 }
 0x17f   : > { %982 = vmatmul.mubr.msk.bf16.vlgmr.msra.gmra.mrb[8].mxu1 %vm332_vm3, %v574_v26 }
 0x180   : > { %992 = vmatpush3.bf16.xpose.msra.mxu1 %v702_v27  ;;  %993 = vmatprep.mubr.msk.bf16.mxu1 %vm1085_vm1, %v1084_v1 }
 0x187   : > { %994 = vmatmul.mubr.msk.bf16.vlgmr.msra.gmra.mrb[12].mxu1 %vm332_vm3, %v695_v28 }
 0x242   : > { %v373_v29 = vpop.f32.mrb[0].mxu1 }
 0x243   : > { %v379_v31 = vmul.f32 0.5, %v373_v29  ;;  %v959_v32 = vpop.f32.mrb[1].mxu1 }
 0x244   : > { %v376_v33 = vpop.f32.mrb[2].mxu1 }
 0x245   : > { %v960_v34 = vpop.f32.mrb[3].mxu1  ;;  %v386_v35 = vadd.f32 %v915_v30, %v379_v31 }
 0x247   : > { %v388_v36 = vsel %vm387_vm4, %v386_v35, -inf }
 0x248   : > { %389 = vmax.xlane.f32.xlu1 %v388_v36 }
 0x24a   : > { %v496_v37 = vpop.f32.mrb[4].mxu1 }
 0x24b   : > { %v502_v38 = vmul.f32 0.5, %v496_v37  ;;  %v971_v39 = vpop.f32.mrb[5].mxu1 }
 0x24c   : > { %v499_v40 = vpop.f32.mrb[6].mxu1 }
 0x24d   : > { %v972_v41 = vpop.f32.mrb[7].mxu1  ;;  %v503_v42 = vadd.f32 %v915_v30, %v502_v38 }
 0x24f   : > { %v504_v43 = vsel %vm387_vm4, %v503_v42, -inf }
 0x250   : > { %505 = vmax.xlane.f32.xlu0 %v504_v43 }
 0x252   : > { %v617_v44 = vpop.f32.mrb[8].mxu1 }
 0x253   : > { %v623_v45 = vmul.f32 0.5, %v617_v44  ;;  %v983_v46 = vpop.f32.mrb[9].mxu1 }
 0x254   : > { %v620_v47 = vpop.f32.mrb[10].mxu1 }
 0x255   : > { %v984_v48 = vpop.f32.mrb[11].mxu1  ;;  %v624_v49 = vadd.f32 %v915_v30, %v623_v45 }
 0x257   : > { %v625_v50 = vsel %vm387_vm4, %v624_v49, -inf }
 0x258   : > { %626 = vmax.xlane.f32.xlu0 %v625_v50 }
 0x25a   : > { %v738_v51 = vpop.f32.mrb[12].mxu1 }
 0x25b   : > { %v744_v52 = vmul.f32 0.5, %v738_v51  ;;  %v995_v53 = vpop.f32.mrb[13].mxu1 }
 0x25c   : > { %v741_v54 = vpop.f32.mrb[14].mxu1 }
 0x25d   : > { %v996_v55 = vpop.f32.mrb[15].mxu1  ;;  %v745_v56 = vadd.f32 %v915_v30, %v744_v52 }
 0x25f   : > { %v746_v57 = vsel %vm387_vm4, %v745_v56, -inf }
 0x260   : > { %747 = vmax.xlane.f32.xlu1 %v746_v57 }
 0x2d5   : > { %v390_v58 = vpop.xlane.xlu1 %389 }
 0x2d6   : > { %v391_v59 = vsub.f32 %v386_v35, %v390_v58 }
 0x2d8   : > { %v392_v60 = vmul.f32 1.442695, %v391_v59 }
 0x2da   : > { %1044 = vpow2.f32 %v392_v60 }
 0x2dd   : > { %v506_v61 = vpop.xlane.xlu0 %505 }
 0x2de   : > { %v507_v62 = vsub.f32 %v503_v42, %v506_v61 }
 0x2e0   : > { %v508_v63 = vmul.f32 1.442695, %v507_v62 }
 0x2e2   : > { %1046 = vpow2.f32 %v508_v63 }
 0x2e4   : > { %v1045_v0 = vpop.eup %1044 }
 0x2e5   : > { %v627_v2 = vpop.xlane.xlu0 %626  ;;  %v394_v3 = vsel %vm387_vm4, %v1045_v0, 0.0 }
 0x2e6   : > { %v628_v4 = vsub.f32 %v624_v49, %v627_v2  ;;  %395 = vadd.xlane.f32.xlu0 %v394_v3 }
 0x2e8   : > { %v629_v5 = vmul.f32 1.442695, %v628_v4 }
 0x2ea   : > { %1048 = vpow2.f32 %v629_v5 }
 0x2ec   : > { %v1047_v6 = vpop.eup %1046 }
 0x2ed   : > { %v510_v7 = vsel %vm387_vm4, %v1047_v6, 0.0  ;;  %v748_v10 = vpop.xlane.xlu1 %747 }
 0x2ee   : > { %511 = vadd.xlane.f32.xlu1 %v510_v7  ;;  %v749_v11 = vsub.f32 %v745_v56, %v748_v10 }
 0x2f0   : > { %v750_v12 = vmul.f32 1.442695, %v749_v11 }
 0x2f2   : > { %1050 = vpow2.f32 %v750_v12 }
 0x2f4   : > { %v1049_v8 = vpop.eup %1048 }
 0x2f5   : > { %v631_v9 = vsel %vm387_vm4, %v1049_v8, 0.0 }
 0x2f6   : > { %632 = vadd.xlane.f32.xlu0 %v631_v9 }
 0x2fc   : > { %v1051_v13 = vpop.eup %1050 }
 0x2fd   : > { %v752_v14 = vsel %vm387_vm4, %v1051_v13, 0.0 }
 0x2ff   : > { %516 = vrot.lane.b32.xlu1 %v1169_v17, %s1093_s11 }
 0x30c   : > { %400 = vrot.lane.b32.xlu0 %v1169_v17, %s1094_s12 }
 0x310   : > { %758 = vrot.lane.b32.xlu0 %v1169_v17, %s1095_s13 }
 0x323   : > { %753 = vadd.xlane.f32.xlu1 %v752_v14 }
 0x334   : > { %637 = vrot.lane.b32.xlu1 %v1169_v17, %s1096_s14 }
 0x373   : > { %v396_v15 = vpop.xlane.xlu0 %395 }
 0x374   : > { %1052 = vrcp.f32 %v396_v15 }
 0x37b   : > { %v512_v16 = vpop.xlane.xlu1 %511 }
 0x37c   : > { %1054 = vrcp.f32 %v512_v16 }
 0x37e   : > { %v1053_v18 = vpop.eup %1052 }
 0x37f   : > { %v398_v20 = vmul.f32 %v1053_v18, %v1045_v0  ;;  %v517_v23 = vpop.permute.xlu1 %516 }
 0x380   : > { %v522_v26 = vsel %vm405_vm5, %v517_v23, 0 }
 0x381   : > { %v399_v24 = vpack.c.bf16 %v398_v20, %v398_v20 }
 0x383   : > { %v633_v19 = vpop.xlane.xlu0 %632 }
 0x384   : > { %1056 = vrcp.f32 %v633_v19 }
 0x386   : > { %v1055_v25 = vpop.eup %1054 }
 0x387   : > { %v401_v21 = vpop.permute.xlu0 %400  ;;  %v514_v17 = vmul.f32 %v1055_v25, %v1047_v6 }
 0x388   : > { %v407_v22 = vsel %vm405_vm5, %v401_v21, 0 }
 0x389   : > { %962 = vmatpush3.bf16.msra.mxu0 %v407_v22  ;;  %v515_v27 = vpack.c.bf16 %v514_v17, %v514_v17 }
 0x38a   : > { %973 = vmatprep.subr.bf16.mxu0 %v1084_v1 }
 0x38b   : > { %v759_v33 = vpop.permute.xlu0 %758 }
 0x38c   : > { %964 = vmatmul.mubr.msk.bf16.vlgmr.msra.gmra.mrb[4].mxu0 %vm387_vm4, %v399_v24  ;;  %v764_v35 = vsel %vm405_vm5, %v759_v33, 0 }
 0x38d   : > { %974 = vmatpush3.bf16.msra.mxu0 %v522_v26  ;;  %975 = vmatprep.mubr.msk.bf16.mxu0 %vm1085_vm1, %v1084_v1 }
 0x38e   : > { %985 = vmatprep.subr.bf16.mxu0 %v1084_v1  ;;  %v1057_v28 = vpop.eup %1056 }
 0x38f   : > { %v635_v30 = vmul.f32 %v1057_v28, %v1049_v8 }
 0x391   : > { %v636_v34 = vpack.c.bf16 %v635_v30, %v635_v30 }
 0x394   : > { %976 = vmatmul.mubr.msk.bf16.vlgmr.msra.gmra.mrb[8].mxu0 %vm387_vm4, %v515_v27 }
 0x395   : > { %987 = vmatprep.mubr.msk.bf16.mxu0 %vm1085_vm1, %v1084_v1 }
 0x3b0   : > { %v754_v29 = vpop.xlane.xlu1 %753 }
 0x3b1   : > { %1058 = vrcp.f32 %v754_v29 }
 0x3b4   : > { %v638_v31 = vpop.permute.xlu1 %637 }
 0x3b5   : > { %v643_v32 = vsel %vm405_vm5, %v638_v31, 0 }
 0x3b6   : > { %986 = vmatpush3.bf16.msra.mxu0 %v643_v32 }
 0x3b7   : > { %997 = vmatprep.subr.bf16.mxu0 %v1084_v1 }
 0x3b9   : > { %988 = vmatmul.mubr.msk.bf16.vlgmr.msra.gmra.mrb[12].mxu0 %vm387_vm4, %v636_v34 }
 0x3ba   : > { %998 = vmatpush3.bf16.msra.mxu0 %v764_v35  ;;  %999 = vmatprep.mubr.msk.bf16.mxu0 %vm1085_vm1, %v1084_v1 }
 0x3bb   : > { %v1059_v36 = vpop.eup %1058 }
 0x3bc   : > { %v756_v37 = vmul.f32 %v1059_v36, %v1051_v13 }
 0x3be   : > { %v757_v38 = vpack.c.bf16 %v756_v37, %v756_v37 }
 0x3c1   : > { %1000 = vmatmul.mubr.msk.bf16.vlgmr.msra.gmra.mrb[16].mxu0 %vm387_vm4, %v757_v38 }
 0x45f   : > { %v443_v39 = vpop.f32.mrb[4].mxu0 }
 0x460   : > { %v449_v40 = vpack.c.bf16 %v443_v39, %v443_v39  ;;  %v965_v41 = vpop.f32.mrb[5].mxu0 }
 0x461   : > { %v446_v42 = vpop.f32.mrb[6].mxu0 }
 0x462   : > { %451 = vst.msk [vmem:[%s1234_s22] sm:$0xf] %vm450_vm6, %v449_v40  ;;  %v966_v43 = vpop.f32.mrb[7].mxu0 }
 0x467   : > { %v558_v1 = vpop.f32.mrb[8].mxu0 }
 0x468   : > { %v928_v44 = vpack.c.bf16 %v558_v1, %v558_v1  ;;  %v977_v45 = vpop.f32.mrb[9].mxu0 }
 0x469   : > { %v561_v46 = vpop.f32.mrb[10].mxu0 }
 0x46a   : > { %568 = vrot.lane.b32.xlu1 %v928_v44, %s1097_s23  ;;  %v978_v47 = vpop.f32.mrb[11].mxu0 }
 0x48c   : > { %v679_v48 = vpop.f32.mrb[12].mxu0 }
 0x48d   : > { %v929_v49 = vpack.c.bf16 %v679_v48, %v679_v48  ;;  %v989_v50 = vpop.f32.mrb[13].mxu0 }
 0x48e   : > { %v682_v51 = vpop.f32.mrb[14].mxu0 }
 0x48f   : > { %689 = vrot.lane.b32.xlu0 %v929_v49, %s1098_s15  ;;  %v990_v52 = vpop.f32.mrb[15].mxu0 }
 0x494   : > { %v800_v53 = vpop.f32.mrb[16].mxu0 }
 0x495   : > { %v930_v54 = vpack.c.bf16 %v800_v53, %v800_v53  ;;  %v1001_v55 = vpop.f32.mrb[17].mxu0 }
 0x496   : > { %v803_v56 = vpop.f32.mrb[18].mxu0 }
 0x497   : > { %810 = vrot.lane.b32.xlu1 %v930_v54, %s1099_s21  ;;  %v1002_v57 = vpop.f32.mrb[19].mxu0 }
 0x4dc   : > { %v569_v58 = vpop.permute.xlu1 %568 }
 0x4dd   : > { %572 = vst.msk [vmem:[%s1234_s22] sm:$0xf] %vm571_vm7, %v569_v58 }
 0x501   : > { %v690_v59 = vpop.permute.xlu0 %689 }
 0x502   : > { %693 = vst.msk [vmem:[%s1234_s22] sm:$0xf] %vm692_vm8, %v690_v59 }
 0x509   : > { %v811_v60 = vpop.permute.xlu1 %810 }
 0x50a   : > { %814 = vst.msk [vmem:[%s1234_s22] sm:$0xf] %vm813_vm9, %v811_v60 }
 0x50b PF: > { %s14_s17 = sadd.s32 1, %s1082_s17   ;;  %s1254_s15 = smov %s1078_s16 }
 0x50c   : > { %p11_p5 = scmp.ge.s32.totalorder %s14_s17, 4   ;;  %s1255_s16 = smov %s1257_s18 }
 0x50e   :  { %13 = sbr.rel (!%p11_p5) target bundleno = 2 (0x2), region = 80 }

// kernel: _lambda_.31
= control target key start
LH: loop header
LB: loop body
LE: loop exit
PB: predicated region body
PF: predicated region fallthrough
CT: control target
= control target key end

     0   :  { %vm19_vm0 = vcmask 261120   ;;  %v158_v0 = vmov 0.0   ;;  %vm159_vm1 = vmmov 0   ;;  %vm39_vm2 = vcmask 130048   ;;  %s199_s1 = inlined_call_operand.vmem [shape: bf16[16,32], index: 1, kind: input, shape index: {}]   ;;  %s200_s0 = inlined_call_operand.vmem [shape: bf16[16,16], index: 0, kind: input, shape index: {}]   ;;  %s201_s2 = inlined_call_operand.vmem [shape: bf16[1,32], index: 2, kind: input, shape index: {}]   ;;  %s202_s3 = inlined_call_operand.vmem [shape: bf16[16,32], index: 3, kind: output, shape index: {}]  }
   0x1   :  { %20 = vst.msk [vmem:[#allocation2] sm:$0xff] %vm19_vm0, %v158_v0  ;;  %21 = vst.msk [vmem:[#allocation2 + $0x8] sm:$0xff] %vm19_vm0, %v158_v0  ;;  %144 = vmatprep.subr.bf16.mxu0 %v158_v0  ;;  %v152_v1 = vld [vmem:[%s199_s1] sm:$0xff]   ;;  %146 = vmatprep.mubr.msk.bf16.mxu0 %vm159_vm1, %v158_v0  ;;  %v96_v3 = vlaneseq  ;;  %vm128_vm3 = vcmask 257024  }
   0x2   :  { %v153_v2 = vld [vmem:[%s200_s0] sm:$0xff]   ;;  %145 = vmatpush3.bf16.msra.mxu0 %v152_v1 }
   0x3   :  { %v97_v5 = vshrl.u32 %v96_v3, 7  ;;  %v94_v7 = vld [vmem:[%s201_s2] sm:$0x1] }
   0x4   :  { %v95_v12 = vunpack.c.l.bf16 %v94_v7 }
   0x5   :  { %147 = vmatmul.mubr.msk.bf16.vlgmr.msra.gmra.mrb[0].mxu0 %vm39_vm2, %v153_v2  ;;  %v98_v13 = vsub.s32 0, %v97_v5 }
   0x7   :  { %v99_v16 = vrot.slane %v95_v12, %v98_v13 }
   0x8   :  { %v22_v4 = vld [vmem:[#allocation2] sm:$0xff]  ;;  %v23_v8 = vld [vmem:[#allocation2 + $0x8] sm:$0xff] }
  0xd8   :  { %v77_v6 = vpop.f32.mrb[0].mxu0 }
  0xd9   :  { %v84_v9 = vadd.f32 %v77_v6, %v22_v4  ;;  %v148_v10 = vpop.f32.mrb[1].mxu0 }
  0xda   :  { %v80_v11 = vpop.f32.mrb[2].mxu0 }
  0xdb   :  { %87 = vst.msk [vmem:[#allocation2] sm:$0xff] %vm19_vm0, %v84_v9  ;;  %v85_v14 = vadd.f32 %v80_v11, %v23_v8  ;;  %v149_v15 = vpop.f32.mrb[3].mxu0 }
  0xdd   :  { %88 = vst.msk [vmem:[#allocation2 + $0x8] sm:$0xff] %vm19_vm0, %v85_v14 }
  0xe2   :  { %v92_v17 = vld [vmem:[#allocation2] sm:$0xff] }
  0xe3   :  { %v100_v18 = vadd.f32 %v99_v16, %v92_v17 }
  0xe4   :  { %v93_v19 = vld [vmem:[#allocation2 + $0x8] sm:$0xff] }
  0xe5   :  { %v104_v20 = vmul.f32 0.044715, %v100_v18  ;;  %v101_v21 = vadd.f32 %v99_v16, %v93_v19  ;;  %v102_v32 = vmul.f32 0.5, %v100_v18 }
  0xe7   :  { %v106_v22 = vmul.f32 %v104_v20, %v100_v18  ;;  %v105_v23 = vmul.f32 0.044715, %v101_v21  ;;  %v103_v36 = vmul.f32 0.5, %v101_v21 }
  0xe9   :  { %v108_v24 = vmul.f32 %v106_v22, %v100_v18  ;;  %v107_v25 = vmul.f32 %v105_v23, %v101_v21 }
  0xeb   :  { %v110_v26 = vadd.f32 %v108_v24, %v100_v18  ;;  %v109_v27 = vmul.f32 %v107_v25, %v101_v21 }
  0xed   :  { %v112_v28 = vmul.f32 0.7978846, %v110_v26  ;;  %v111_v29 = vadd.f32 %v109_v27, %v101_v21 }
  0xef   :  { %154 = vtanh.f32 %v112_v28  ;;  %v113_v30 = vmul.f32 0.7978846, %v111_v29 }
  0xf1   :  { %156 = vtanh.f32 %v113_v30 }
  0xf9   :  { %v155_v31 = vpop.eup %154 }
  0xfa   :  { %v116_v33 = vadd.f32 1.0, %v155_v31 }
  0xfb   :  { %v157_v34 = vpop.eup %156 }
  0xfc   :  { %v118_v35 = vmul.f32 %v116_v33, %v102_v32  ;;  %v117_v37 = vadd.f32 1.0, %v157_v34 }
  0xfe   :  { %v140_v38 = vpack.c.bf16 %v118_v35, %v118_v35  ;;  %v119_v39 = vmul.f32 %v117_v37, %v103_v36 }
 0x100   :  { %129 = vst.msk [vmem:[%s202_s3] sm:$0xf] %vm128_vm3, %v140_v38  ;;  %v141_v40 = vpack.c.bf16 %v119_v39, %v119_v39 }
 0x102   :  { %130 = vst.msk [vmem:[%s202_s3 + $0x4] sm:$0xf] %vm128_vm3, %v141_v40 }

// kernel: _lambda_.30
= control target key start
LH: loop header
LB: loop body
LE: loop exit
PB: predicated region body
PF: predicated region fallthrough
CT: control target
= control target key end

     0   :  { %vm28_vm0 = vcmask 130048   ;;  %v201_v0 = vmov 0.0   ;;  %vm202_vm1 = vmmov 0   ;;  %v104_v3 = vlaneseq  ;;  %s271_s1 = inlined_call_operand.vmem [shape: bf16[16,16], index: 1, kind: input, shape index: {}]   ;;  %s272_s0 = inlined_call_operand.vmem [shape: bf16[16,16], index: 0, kind: input, shape index: {}]   ;;  %s273_s2 = inlined_call_operand.vmem [shape: bf16[1,16], index: 2, kind: input, shape index: {}]   ;;  %s274_s3 = inlined_call_operand.vmem [shape: bf16[16,16], index: 3, kind: input, shape index: {}]   ;;  %s275_s4 = inlined_call_operand.vmem [shape: bf16[1,16], index: 4, kind: input, shape index: {}]   ;;  %s276_s5 = inlined_call_operand.vmem [shape: bf16[1,16], index: 5, kind: input, shape index: {}]   ;;  %s277_s6 = inlined_call_operand.vmem [shape: bf16[16,16], index: 6, kind: output, shape index: {}]  }
   0x1   :  { %29 = vst.msk [vmem:[#allocation2] sm:$0xff] %vm28_vm0, %v201_v0  ;;  %30 = vst.msk [vmem:[#allocation2 + $0x8] sm:$0xff] %vm28_vm0, %v201_v0  ;;  %187 = vmatprep.subr.bf16.mxu0 %v201_v0  ;;  %v195_v1 = vld [vmem:[%s271_s1] sm:$0xff]   ;;  %189 = vmatprep.mubr.msk.bf16.mxu0 %vm202_vm1, %v201_v0  ;;  %vm167_vm2 = vcmask 125952  }
   0x2   :  { %v196_v2 = vld [vmem:[%s272_s0] sm:$0xff]   ;;  %188 = vmatpush3.bf16.msra.mxu0 %v195_v1  ;;  %v105_v5 = vshrl.u32 %v104_v3, 7 }
   0x3   :  { %v102_v8 = vld [vmem:[%s273_s2] sm:$0x1] }
   0x4   :  { %v103_v14 = vunpack.c.l.bf16 %v102_v8  ;;  %v106_v15 = vsub.s32 0, %v105_v5  ;;  %v182_v16 = vld [vmem:[%s274_s3] sm:$0xff]  }
   0x5   :  { %190 = vmatmul.mubr.msk.bf16.vlgmr.msra.gmra.mrb[0].mxu0 %vm28_vm0, %v196_v2  ;;  %v183_v18 = vunpack.c.l.bf16 %v182_v16  ;;  %v184_v21 = vunpack.c.h.bf16 %v182_v16  ;;  %v143_v43 = vld [vmem:[%s275_s4] sm:$0x1] }
   0x6   :  { %v107_v17 = vrot.slane %v103_v14, %v106_v15  ;;  %v151_v45 = vld [vmem:[%s276_s5] sm:$0x1]  ;;  %v144_v46 = vunpack.c.l.bf16 %v143_v43 }
   0x7   :  { %v152_v47 = vunpack.c.l.bf16 %v151_v45 }
   0x8   :  { %v31_v4 = vld [vmem:[#allocation2] sm:$0xff]  ;;  %v32_v7 = vld [vmem:[#allocation2 + $0x8] sm:$0xff]  ;;  %v148_v48 = vrot.slane %v144_v46, %v106_v15 }
   0x9   :  { %v156_v50 = vrot.slane %v152_v47, %v106_v15 }
  0xd8   :  { %v86_v6 = vpop.f32.mrb[0].mxu0 }
  0xd9   :  { %v93_v9 = vadd.f32 %v86_v6, %v31_v4  ;;  %v191_v10 = vpop.f32.mrb[1].mxu0 }
  0xda   :  { %v89_v11 = vpop.f32.mrb[2].mxu0 }
  0xdb   :  { %95 = vst.msk [vmem:[#allocation2] sm:$0xff] %vm28_vm0, %v93_v9  ;;  %v94_v12 = vadd.f32 %v89_v11, %v32_v7  ;;  %v192_v13 = vpop.f32.mrb[3].mxu0 }
  0xdd   :  { %96 = vst.msk [vmem:[#allocation2 + $0x8] sm:$0xff] %vm28_vm0, %v94_v12 }
  0xe2   :  { %v100_v19 = vld [vmem:[#allocation2] sm:$0xff] }
  0xe3   :  { %v108_v20 = vadd.f32 %v107_v17, %v100_v19 }
  0xe4   :  { %v101_v22 = vld [vmem:[#allocation2 + $0x8] sm:$0xff] }
  0xe5   :  { %v114_v23 = vadd.f32 %v183_v18, %v108_v20  ;;  %v109_v24 = vadd.f32 %v107_v17, %v101_v22 }
  0xe7   :  { %v116_v25 = vsel %vm28_vm0, %v114_v23, 0.0  ;;  %v115_v26 = vadd.f32 %v184_v21, %v109_v24 }
  0xe8   :  { %117 = vadd.xlane.f32.xlu0 %v116_v25 }
  0xe9   :  { %v119_v27 = vsel %vm28_vm0, %v115_v26, 0.0 }
  0xec   :  { %120 = vadd.xlane.f32.xlu0 %v119_v27 }
 0x175   :  { %v118_v28 = vpop.xlane.xlu0 %117 }
 0x176   :  { %v123_v29 = vmul.f32 0.0625, %v118_v28 }
 0x178   :  { %v125_v30 = vsub.f32 %v114_v23, %v123_v29 }
 0x179   :  { %v121_v31 = vpop.xlane.xlu0 %120 }
 0x17a   :  { %v124_v32 = vmul.f32 0.0625, %v121_v31  ;;  %v127_v33 = vmul.f32 %v125_v30, %v125_v30 }
 0x17c   :  { %v126_v34 = vsub.f32 %v115_v26, %v124_v32  ;;  %v129_v35 = vsel %vm28_vm0, %v127_v33, 0.0 }
 0x17d   :  { %130 = vadd.xlane.f32.xlu1 %v129_v35 }
 0x17e   :  { %v128_v36 = vmul.f32 %v126_v34, %v126_v34 }
 0x180   :  { %v132_v37 = vsel %vm28_vm0, %v128_v36, 0.0 }
 0x181   :  { %133 = vadd.xlane.f32.xlu1 %v132_v37 }
 0x20a   :  { %v131_v38 = vpop.xlane.xlu1 %130 }
 0x20b   :  { %v135_v39 = vmul.f32 0.0625, %v131_v38 }
 0x20d   :  { %v137_v40 = vadd.f32 1e-12, %v135_v39 }
 0x20e   :  { %v134_v41 = vpop.xlane.xlu1 %133 }
 0x20f   :  { %197 = vrsqrt.f32 %v137_v40  ;;  %v136_v42 = vmul.f32 0.0625, %v134_v41 }
 0x211   :  { %v138_v44 = vadd.f32 1e-12, %v136_v42 }
 0x213   :  { %199 = vrsqrt.f32 %v138_v44 }
 0x219   :  { %v198_v49 = vpop.eup %197 }
 0x21a   :  { %v141_v51 = vmul.f32 %v198_v49, %v125_v30 }
 0x21c   :  { %v149_v52 = vmul.f32 %v148_v48, %v141_v51 }
 0x21d   :  { %v200_v53 = vpop.eup %199 }
 0x21e   :  { %v157_v54 = vadd.f32 %v156_v50, %v149_v52  ;;  %v142_v55 = vmul.f32 %v200_v53, %v126_v34 }
 0x220   :  { %v179_v56 = vpack.c.bf16 %v157_v54, %v157_v54  ;;  %v150_v57 = vmul.f32 %v148_v48, %v142_v55 }
 0x222   :  { %168 = vst.msk [vmem:[%s277_s6] sm:$0xf] %vm167_vm2, %v179_v56  ;;  %v158_v58 = vadd.f32 %v156_v50, %v150_v57 }
 0x224   :  { %v180_v59 = vpack.c.bf16 %v158_v58, %v158_v58 }
 0x226   :  { %169 = vst.msk [vmem:[%s277_s6 + $0x4] sm:$0xf] %vm167_vm2, %v180_v59 }

// kernel: _lambda_.32
= control target key start
LH: loop header
LB: loop body
LE: loop exit
PB: predicated region body
PF: predicated region fallthrough
CT: control target
= control target key end

     0   :  { %vm28_vm0 = vcmask 130048   ;;  %v215_v0 = vmov 0.0   ;;  %vm216_vm1 = vmmov 0   ;;  %vm56_vm2 = vcmask 261120   ;;  %s287_s1 = inlined_call_operand.vmem [shape: bf16[32,16], index: 1, kind: input, shape index: {}]   ;;  %s288_s0 = inlined_call_operand.vmem [shape: bf16[16,32], index: 0, kind: input, shape index: {}]   ;;  %s289_s2 = inlined_call_operand.vmem [shape: bf16[1,16], index: 2, kind: input, shape index: {}]   ;;  %s290_s3 = inlined_call_operand.vmem [shape: bf16[16,16], index: 3, kind: input, shape index: {}]   ;;  %s291_s4 = inlined_call_operand.vmem [shape: bf16[1,16], index: 4, kind: input, shape index: {}]   ;;  %s292_s5 = inlined_call_operand.vmem [shape: bf16[1,16], index: 5, kind: input, shape index: {}]   ;;  %s293_s6 = inlined_call_operand.vmem [shape: bf16[16,16], index: 6, kind: output, shape index: {}]  }
   0x1   :  { %198 = vmatprep.subr.bf16.mxu0 %v215_v0  ;;  %v208_v1 = vld [vmem:[%s287_s1] sm:$0xff]   ;;  %202 = vmatprep.mubr.msk.bf16.mxu0 %vm216_vm1, %v215_v0  ;;  %29 = vst.msk [vmem:[#allocation2] sm:$0xff] %vm28_vm0, %v215_v0  ;;  %30 = vst.msk [vmem:[#allocation2 + $0x8] sm:$0xff] %vm28_vm0, %v215_v0  ;;  %v209_v2 = vld [vmem:[%s287_s1 + $0x8] sm:$0xff]   ;;  %v113_v4 = vlaneseq  ;;  %vm176_vm3 = vcmask 125952  }
   0x2   :  { %199 = vmatpush3.bf16.msra.mxu0 %v208_v1  ;;  %v210_v3 = vld [vmem:[%s288_s0] sm:$0xff]  }
   0x3   :  { %200 = vmatprep.subr.bf16.mxu0 %v215_v0  ;;  %v114_v6 = vshrl.u32 %v113_v4, 7  ;;  %v111_v9 = vld [vmem:[%s289_s2] sm:$0x1] }
   0x4   :  { %v112_v15 = vunpack.c.l.bf16 %v111_v9  ;;  %v192_v17 = vld [vmem:[%s290_s3] sm:$0xff]  }
   0x5   :  { %v115_v16 = vsub.s32 0, %v114_v6  ;;  %v193_v19 = vunpack.c.l.bf16 %v192_v17  ;;  %v194_v22 = vunpack.c.h.bf16 %v192_v17  ;;  %v152_v44 = vld [vmem:[%s291_s4] sm:$0x1] }
   0x6   :  { %201 = vmatpush3.bf16.msra.mxu0 %v209_v2  ;;  %v160_v46 = vld [vmem:[%s292_s5] sm:$0x1]  ;;  %v153_v47 = vunpack.c.l.bf16 %v152_v44 }
   0x7   :  { %v116_v18 = vrot.slane %v112_v15, %v115_v16  ;;  %v161_v48 = vunpack.c.l.bf16 %v160_v46 }
   0x8   :  { %v31_v5 = vld [vmem:[#allocation2] sm:$0xff]  ;;  %v32_v8 = vld [vmem:[#allocation2 + $0x8] sm:$0xff]  ;;  %v157_v49 = vrot.slane %v153_v47, %v115_v16 }
   0x9   :  { %203 = vmatmul.mubr.msk.bf16.vlgmr.msra.gmra.mrb[0].mxu0 %vm56_vm2, %v210_v3  ;;  %v165_v51 = vrot.slane %v161_v48, %v115_v16 }
  0xdc   :  { %v94_v7 = vpop.f32.mrb[0].mxu0 }
  0xdd   :  { %v101_v10 = vadd.f32 %v94_v7, %v31_v5  ;;  %v204_v11 = vpop.f32.mrb[1].mxu0 }
  0xde   :  { %v97_v12 = vpop.f32.mrb[2].mxu0 }
  0xdf   :  { %104 = vst.msk [vmem:[#allocation2] sm:$0xff] %vm28_vm0, %v101_v10  ;;  %v102_v13 = vadd.f32 %v97_v12, %v32_v8  ;;  %v205_v14 = vpop.f32.mrb[3].mxu0 }
  0xe1   :  { %105 = vst.msk [vmem:[#allocation2 + $0x8] sm:$0xff] %vm28_vm0, %v102_v13 }
  0xe6   :  { %v109_v20 = vld [vmem:[#allocation2] sm:$0xff] }
  0xe7   :  { %v117_v21 = vadd.f32 %v116_v18, %v109_v20 }
  0xe8   :  { %v110_v23 = vld [vmem:[#allocation2 + $0x8] sm:$0xff] }
  0xe9   :  { %v123_v24 = vadd.f32 %v193_v19, %v117_v21  ;;  %v118_v25 = vadd.f32 %v116_v18, %v110_v23 }
  0xeb   :  { %v125_v26 = vsel %vm28_vm0, %v123_v24, 0.0  ;;  %v124_v27 = vadd.f32 %v194_v22, %v118_v25 }
  0xec   :  { %126 = vadd.xlane.f32.xlu0 %v125_v26 }
  0xed   :  { %v128_v28 = vsel %vm28_vm0, %v124_v27, 0.0 }
  0xf0   :  { %129 = vadd.xlane.f32.xlu0 %v128_v28 }
 0x179   :  { %v127_v29 = vpop.xlane.xlu0 %126 }
 0x17a   :  { %v132_v30 = vmul.f32 0.0625, %v127_v29 }
 0x17c   :  { %v134_v31 = vsub.f32 %v123_v24, %v132_v30 }
 0x17d   :  { %v130_v32 = vpop.xlane.xlu0 %129 }
 0x17e   :  { %v133_v33 = vmul.f32 0.0625, %v130_v32  ;;  %v136_v34 = vmul.f32 %v134_v31, %v134_v31 }
 0x180   :  { %v135_v35 = vsub.f32 %v124_v27, %v133_v33  ;;  %v138_v36 = vsel %vm28_vm0, %v136_v34, 0.0 }
 0x181   :  { %139 = vadd.xlane.f32.xlu1 %v138_v36 }
 0x182   :  { %v137_v37 = vmul.f32 %v135_v35, %v135_v35 }
 0x184   :  { %v141_v38 = vsel %vm28_vm0, %v137_v37, 0.0 }
 0x185   :  { %142 = vadd.xlane.f32.xlu1 %v141_v38 }
 0x20e   :  { %v140_v39 = vpop.xlane.xlu1 %139 }
 0x20f   :  { %v144_v40 = vmul.f32 0.0625, %v140_v39 }
 0x211   :  { %v146_v41 = vadd.f32 1e-12, %v144_v40 }
 0x212   :  { %v143_v42 = vpop.xlane.xlu1 %142 }
 0x213   :  { %211 = vrsqrt.f32 %v146_v41  ;;  %v145_v43 = vmul.f32 0.0625, %v143_v42 }
 0x215   :  { %v147_v45 = vadd.f32 1e-12, %v145_v43 }
 0x217   :  { %213 = vrsqrt.f32 %v147_v45 }
 0x21d   :  { %v212_v50 = vpop.eup %211 }
 0x21e   :  { %v150_v52 = vmul.f32 %v212_v50, %v134_v31 }
 0x220   :  { %v158_v53 = vmul.f32 %v157_v49, %v150_v52 }
 0x221   :  { %v214_v54 = vpop.eup %213 }
 0x222   :  { %v166_v55 = vadd.f32 %v165_v51, %v158_v53  ;;  %v151_v56 = vmul.f32 %v214_v54, %v135_v35 }
 0x224   :  { %v189_v57 = vpack.c.bf16 %v166_v55, %v166_v55  ;;  %v159_v58 = vmul.f32 %v157_v49, %v151_v56 }
 0x226   :  { %177 = vst.msk [vmem:[%s293_s6] sm:$0xf] %vm176_vm3, %v189_v57  ;;  %v167_v59 = vadd.f32 %v165_v51, %v159_v58 }
 0x228   :  { %v190_v60 = vpack.c.bf16 %v167_v59, %v167_v59 }
 0x22a   :  { %178 = vst.msk [vmem:[%s293_s6 + $0x4] sm:$0xf] %vm176_vm3, %v190_v60 }

// kernel: _lambda_.42
= control target key start
LH: loop header
LB: loop body
LE: loop exit
PB: predicated region body
PF: predicated region fallthrough
CT: control target
= control target key end

     0   :  { %vm22_vm0 = vcmask 254976   ;;  %v115_v0 = vmov 0.0   ;;  %vm116_vm1 = vmmov 0   ;;  %vm34_vm2 = vcmask 130048   ;;  %s159_s1 = inlined_call_operand.vmem [shape: bf16[16,32], index: 1, kind: input, shape index: {}]   ;;  %s160_s0 = inlined_call_operand.vmem [shape: bf16[2,16], index: 0, kind: input, shape index: {}]   ;;  %s161_s2 = inlined_call_operand.vmem [shape: bf16[1,32], index: 2, kind: input, shape index: {}]   ;;  %s162_s3 = inlined_call_operand.vmem [shape: bf16[2,32], index: 3, kind: input, shape index: {}]   ;;  %s163_s4 = inlined_call_operand.vmem [shape: bf16[2,32], index: 4, kind: output, shape index: {}]  }
   0x1   :  { %23 = vst.msk [vmem:[#allocation2] sm:$0x3] %vm22_vm0, %v115_v0  ;;  %106 = vmatprep.subr.bf16.mxu0 %v115_v0  ;;  %v114_v1 = vld [vmem:[%s159_s1] sm:$0xff]   ;;  %108 = vmatprep.mubr.msk.bf16.mxu0 %vm116_vm1, %v115_v0  ;;  %v87_v3 = vlaneseq  ;;  %vm96_vm3 = vcmask 253952  }
   0x2   :  { %107 = vmatpush3.bf16.msra.mxu0 %v114_v1  ;;  %v25_v2 = vld [vmem:[%s160_s0] sm:$0x1] }
   0x3   :  { %v88_v5 = vshrl.u32 %v87_v3, 7  ;;  %v85_v7 = vld [vmem:[%s161_s2] sm:$0x1] }
   0x4   :  { %v86_v11 = vunpack.c.l.bf16 %v85_v7  ;;  %v92_v14 = vld [vmem:[%s162_s3] sm:$0x1] }
   0x5   :  { %109 = vmatmul.mubr.msk.bf16.vlgmr.msra.gmra.mrb[0].mxu0 %vm34_vm2, %v25_v2  ;;  %v89_v12 = vsub.s32 0, %v88_v5  ;;  %v93_v16 = vunpack.c.l.bf16 %v92_v14 }
   0x7   :  { %v90_v15 = vrot.slane %v86_v11, %v89_v12 }
   0x8   :  { %v24_v4 = vld [vmem:[#allocation2] sm:$0x3] }
  0xd8   :  { %v72_v6 = vpop.f32.mrb[0].mxu0 }
  0xd9   :  { %v78_v8 = vadd.f32 %v72_v6, %v24_v4  ;;  %v110_v9 = vpop.f32.mrb[1].mxu0 }
  0xda   :  { %v75_v10 = vpop.f32.mrb[2].mxu0 }
  0xdb   :  { %80 = vst.msk [vmem:[#allocation2] sm:$0x3] %vm22_vm0, %v78_v8  ;;  %v111_v13 = vpop.f32.mrb[3].mxu0 }
  0xe2   :  { %v84_v17 = vld [vmem:[#allocation2] sm:$0x3] }
  0xe3   :  { %v91_v18 = vadd.f32 %v90_v15, %v84_v17 }
  0xe5   :  { %v94_v19 = vadd.f32 %v93_v16, %v91_v18 }
  0xe7   :  { %v95_v20 = vpack.c.bf16 %v94_v19, %v94_v19 }
  0xe9   :  { %97 = vst.msk [vmem:[%s163_s4] sm:$0x1] %vm96_vm3, %v95_v20 }

// kernel: _lambda_.43
= control target key start
LH: loop header
LB: loop body
LE: loop exit
PB: predicated region body
PF: predicated region fallthrough
CT: control target
= control target key end

     0   :  { %vm20_vm0 = vcmask 254976   ;;  %v161_v0 = vmov 0.0   ;;  %vm162_vm1 = vmmov 0   ;;  %s210_s0 = inlined_call_operand.vmem [shape: bf16[2,32], index: 0, kind: input, shape index: {}]   ;;  %s211_s1 = inlined_call_operand.vmem [shape: bf16[32,32], index: 1, kind: input, shape index: {}]   ;;  %s212_s2 = inlined_call_operand.vmem [shape: bf16[1,32], index: 2, kind: input, shape index: {}]   ;;  %s213_s3 = inlined_call_operand.hbm [shape: bf16[2,32], index: 3, kind: output, shape index: {}]  }
   0x1   :  { %21 = vst.msk [vmem:[#allocation2] sm:$0x3] %vm20_vm0, %v161_v0  ;;  %122 = vmatprep.subr.bf16.mxu0 %v161_v0  ;;  %v133_v1 = vld [vmem:[%s211_s1] sm:$0xff]   ;;  %126 = vmatprep.mubr.msk.bf16.mxu0 %vm162_vm1, %v161_v0 }
   0x2   :  { %8 = vsyncpa [#allocation4], 0  ;;  %123 = vmatpush3.bf16.msra.mxu0 %v133_v1  ;;  %v134_v2 = vld [vmem:[%s211_s1 + $0x8] sm:$0xff]   ;;  %v23_v3 = vld [vmem:[%s210_s0] sm:$0x1]  ;;  %vm40_vm2 = vcmask 261120   ;;  %v93_v4 = vlaneseq }
   0x3   :  { %124 = vmatprep.subr.bf16.mxu0 %v161_v0  ;;  %v91_v8 = vld [vmem:[%s212_s2] sm:$0x1]  ;;  %s163_s0 = smov [#allocation3]   ;;  %vm100_vm3 = vcmask 253952  }
   0x4   :  { %v94_v6 = vshrl.u32 %v93_v4, 7  ;;  %v92_v13 = vunpack.c.l.bf16 %v91_v8  ;;  %s108_s1 = sshll.u32 %s163_s0, 4  ;;  %s109_s1 = int_to_ptr.vmem [resolvable:$true] %s108_s1 }
   0x5   :  { %s137_s2 = scalar_lea.vmem %s109_s1, 16  ;;  %s141_s20 = scalar_lea.vmem %s109_s1, 32 }
   0x6   :  { %125 = vmatpush3.bf16.msra.mxu0 %v134_v2  ;;  %v95_v14 = vsub.s32 0, %v94_v6  ;;  %p138_p0 = scmp.ne.s32.totalorder %s109_s1, %s137_s2  ;;  %p142_p1 = scmp.lt.s32.totalorder %s109_s1, %s109_s1 }
   0x7   :  { %p143_p2 = scmp.lt.s32.totalorder %s141_s20, %s137_s2 }
   0x8   :  { %v22_v5 = vld [vmem:[#allocation2] sm:$0x3]  ;;  %v96_v15 = vrot.slane %v92_v13, %v95_v14 }
   0x9   :  { %127 = vmatmul.mubr.msk.bf16.vlgmr.msra.gmra.mrb[0].mxu0 %vm40_vm2, %v23_v3  ;;  %p144_p3 = por %p143_p2, %p142_p1 }
   0xb   :  { %p145_p4 = pnand %p144_p3, %p138_p0 }
  0xdc   :  { %v78_v7 = vpop.f32.mrb[0].mxu0 }
  0xdd   :  { %v84_v9 = vadd.f32 %v78_v7, %v22_v5  ;;  %v128_v10 = vpop.f32.mrb[1].mxu0 }
  0xde   :  { %v81_v11 = vpop.f32.mrb[2].mxu0 }
  0xdf   :  { %86 = vst.msk [vmem:[#allocation2] sm:$0x3] %vm20_vm0, %v84_v9  ;;  %v129_v12 = vpop.f32.mrb[3].mxu0 }
  0xe6   :  { %v90_v16 = vld [vmem:[#allocation2] sm:$0x3] }
  0xe7   :  { %v97_v17 = vadd.f32 %v96_v15, %v90_v16 }
  0xe9   :  { %135 = vtanh.f32 %v97_v17 }
  0xf3   :  { %v136_v18 = vpop.eup %135 }
  0xf4   :  { %v99_v19 = vpack.c.bf16 %v136_v18, %v136_v18 }
  0xf6   :  { %101 = vst.msk [vmem:[#allocation3] sm:$0x1] %vm100_vm3, %v99_v19 }
  0xf7   :  { %148 = shalt.err (!%p145_p4)
}
  0xf8   :  { %s149_s23 = scalar_lea.hbm %s213_s3, 16 }
  0xf9   :  { %p150_p5 = scmp.ne.s32.totalorder %s213_s3, %s149_s23  ;;  %p153_p6 = scmp.lt.u32.totalorder %s149_s23, %s213_s3 }
  0xfb   :  { %p155_p7 = pnand %p153_p6, %p150_p5 }
  0xfd   :  { %158 = shalt.err (!%p155_p7)
}
  0xfe   :  { %111 = dma.vmem_to_hbm [thread:$0]  %s109_s1, 16, %s213_s3, [#allocation4]  }
  0xff   :  { %159 = dma.done.wait [#allocation4], 16  }
 0x100   :  { %160 = vsyncadd [#allocation4], 4294967280 }
 0x101   :  { %115 = vsyncpa [#allocation4], 1 }

</bundles_post_ra>
